<compile_context>
chip_gen: v7x
topology: tpu7x:2x2x1
jax: 0.10.0
libtpu: 0.0.40
codegen_flags: <defaults>
</compile_context>

<pallas_src>
import numpy as np
import jax
import jax.numpy as jnp
from jax import lax
from jax.experimental import pallas as pl
from jax.experimental.pallas import tpu as pltpu

# ----------------------------- config ---------------------------------------
VOCAB = 64
EMBED = 32
NUM_LAYERS = 2
HEADS = 4
D_K = EMBED // HEADS
D_FF = 2048
B = 2
S = 8          # decoder sequence length
S_ENC = 8      # encoder output sequence length
MAX_LEN = 64
EPS = 1e-5

WEIGHT_NAMES = [
    "wqkv_s", "bqkv_s", "wo_s", "bo_s",                 # self-attention (QKV fused)
    "wq_c", "bq_c", "wkv_c", "bkv_c", "wo_c", "bo_c",   # cross-attention (KV fused)
    "w1", "b1", "w2", "b2",                             # feed-forward
    "gamma", "beta",                                    # shared per-layer LayerNorm
    "wout", "bout",                                     # output projection
]


# ----------------------------- fused kernel ----------------------------------
def _decoder_kernel(x_ref, enc_ref,
                    wqkv_s_ref, bqkv_s_ref, wo_s_ref, bo_s_ref,
                    wq_c_ref, bq_c_ref, wkv_c_ref, bkv_c_ref,
                    wo_c_ref, bo_c_ref,
                    w1_ref, b1_ref, w2_ref, b2_ref,
                    gamma_ref, beta_ref,
                    wout_ref, bout_ref,
                    o_ref):
    # One grid step == one batch element; everything below is (S, ...) 2-D.
    x = x_ref[0]          # (S, E)   embeddings + positional encoding
    enc = enc_ref[0]      # (S_ENC, E)

    scale = 1.0 / (D_K ** 0.5)

    def layer_norm(h, gamma, beta):
        mu = jnp.mean(h, axis=-1, keepdims=True)
        d = h - mu
        var = jnp.mean(d * d, axis=-1, keepdims=True)
        return d * lax.rsqrt(var + EPS) * gamma + beta

    def softmax(s):
        s = s - jnp.max(s, axis=-1, keepdims=True)
        p = jnp.exp(s)                                           # EUP
        denom = jnp.sum(p, axis=-1, keepdims=True)
        return p * pl.reciprocal(denom, approx=True)             # EUP, not VALU

    def mha(q_rows, k_rows, v_rows, wo, bo):
        # q_rows: (Sq, E) projected queries; k_rows/v_rows: (Sk, E) projected K/V.
        outs = []
        for h in range(HEADS):                    # static unroll, in-VMEM slices
            col = slice(h * D_K, (h + 1) * D_K)
            q_h = q_rows[:, col] * scale          # (Sq, Dk)
            k_h = k_rows[:, col]                  # (Sk, Dk)
            v_h = v_rows[:, col]                  # (Sk, Dk)
            # q_h @ k_h.T without materializing a transpose
            s = lax.dot_general(q_h, k_h, (((1,), (1,)), ((), ())),
                                preferred_element_type=jnp.float32)
            p = softmax(s)
            outs.append(jnp.dot(p, v_h, preferred_element_type=jnp.float32))
        o = jnp.concatenate(outs, axis=-1)        # (Sq, E), heads re-merged in VMEM
        return jnp.dot(o, wo, preferred_element_type=jnp.float32) + bo

    for l in range(NUM_LAYERS):                   # static unroll over layers
        gamma = gamma_ref[l]                      # (1, E)
        beta = beta_ref[l]

        # ---- self-attention (fused QKV projection) -------------------------
        qkv = jnp.dot(x, wqkv_s_ref[l],
                      preferred_element_type=jnp.float32) + bqkv_s_ref[l]
        q = qkv[:, 0:EMBED]
        k = qkv[:, EMBED:2 * EMBED]
        v = qkv[:, 2 * EMBED:3 * EMBED]
        x2 = mha(q, k, v, wo_s_ref[l], bo_s_ref[l])
        x = layer_norm(x + x2, gamma, beta)       # dropout == identity (eval)

        # ---- cross-attention (Q from decoder stream, fused KV from encoder) -
        qc = jnp.dot(x, wq_c_ref[l],
                     preferred_element_type=jnp.float32) + bq_c_ref[l]
        kvc = jnp.dot(enc, wkv_c_ref[l],
                      preferred_element_type=jnp.float32) + bkv_c_ref[l]
        kc = kvc[:, 0:EMBED]
        vc = kvc[:, EMBED:2 * EMBED]
        x2 = mha(qc, kc, vc, wo_c_ref[l], bo_c_ref[l])
        x = layer_norm(x + x2, gamma, beta)

        # ---- feed-forward: matmul -> ReLU -> matmul, hidden stays in VMEM ---
        hid = jnp.dot(x, w1_ref[l], preferred_element_type=jnp.float32) + b1_ref[l]
        hid = jnp.maximum(hid, 0.0)               # (S, D_FF), f32 on VPU
        x2 = jnp.dot(hid, w2_ref[l], preferred_element_type=jnp.float32) + b2_ref[l]
        x = layer_norm(x + x2, gamma, beta)

    # ---- output projection ---------------------------------------------------
    logits = jnp.dot(x, wout_ref[...],
                     preferred_element_type=jnp.float32) + bout_ref[...]
    o_ref[0] = logits


# ----------------------------- wrapper ---------------------------------------
def decoder_forward(tokens, enc_out, params):
    # Embedding gather + positional encoding are cheap JAX glue (tiny gather).
    # TODO(synk): data-dependent embedding gather is left outside the kernel.
    x = params["embed"][tokens]                          # (B, S, E)
    # Reproduce the PyTorch module exactly: pe[:x.size(0)] -> (B, 1, E) broadcast.
    x = x + params["pe"][:x.shape[0]][:, None, :]

    Bx, Sx, E = x.shape
    Sk = enc_out.shape[1]
    weights = [params[n] for n in WEIGHT_NAMES]

    def whole(shape):
        nd = len(shape)
        # constant block index across the grid -> DMA'd once, stays VMEM-resident
        return pl.BlockSpec(shape, lambda b, _nd=nd: (0,) * _nd)

    in_specs = ([pl.BlockSpec((1, Sx, E), lambda b: (b, 0, 0)),
                 pl.BlockSpec((1, Sk, E), lambda b: (b, 0, 0))]
                + [whole(w.shape) for w in weights])

    out = pl.pallas_call(
        _decoder_kernel,
        out_shape=jax.ShapeDtypeStruct((Bx, Sx, VOCAB), jnp.float32),
        grid=(Bx,),
        in_specs=in_specs,
        out_specs=pl.BlockSpec((1, Sx, VOCAB), lambda b: (b, 0, 0)),
        compiler_params=pltpu.CompilerParams(
            dimension_semantics=("parallel",),      # 1 batch elem per core on v7x
            vmem_limit_bytes=64 * 1024 * 1024),
    )(x, enc_out, *weights)
    return out


decoder_forward_jit = jax.jit(decoder_forward)


# ----------------------------- pure-JAX reference -----------------------------
def decoder_forward_ref(tokens, enc_out, params):
    x = params["embed"][tokens]
    x = x + params["pe"][:x.shape[0]][:, None, :]

    def layer_norm(h, gamma, beta):
        mu = jnp.mean(h, axis=-1, keepdims=True)
        var = jnp.mean((h - mu) ** 2, axis=-1, keepdims=True)
        return (h - mu) / jnp.sqrt(var + EPS) * gamma + beta

    def mha(q, k, v, wo, bo):
        Bq, Sq, _ = q.shape
        Sk = k.shape[1]
        qh = q.reshape(Bq, Sq, HEADS, D_K).transpose(0, 2, 1, 3)
        kh = k.reshape(Bq, Sk, HEADS, D_K).transpose(0, 2, 1, 3)
        vh = v.reshape(Bq, Sk, HEADS, D_K).transpose(0, 2, 1, 3)
        s = jnp.einsum("bhqd,bhkd->bhqk", qh, kh) / (D_K ** 0.5)
        p = jax.nn.softmax(s, axis=-1)
        o = jnp.einsum("bhqk,bhkd->bhqd", p, vh)
        o = o.transpose(0, 2, 1, 3).reshape(Bq, Sq, HEADS * D_K)
        return o @ wo + bo

    for l in range(NUM_LAYERS):
        gamma = params["gamma"][l]
        beta = params["beta"][l]

        qkv = x @ params["wqkv_s"][l] + params["bqkv_s"][l]
        q, k, v = (qkv[..., :EMBED], qkv[..., EMBED:2 * EMBED],
                   qkv[..., 2 * EMBED:])
        x = layer_norm(x + mha(q, k, v, params["wo_s"][l], params["bo_s"][l]),
                       gamma, beta)

        qc = x @ params["wq_c"][l] + params["bq_c"][l]
        kvc = enc_out @ params["wkv_c"][l] + params["bkv_c"][l]
        kc, vc = kvc[..., :EMBED], kvc[..., EMBED:]
        x = layer_norm(x + mha(qc, kc, vc, params["wo_c"][l], params["bo_c"][l]),
                       gamma, beta)

        hid = jax.nn.relu(x @ params["w1"][l] + params["b1"][l])
        x2 = hid @ params["w2"][l] + params["b2"][l]
        x = layer_norm(x + x2, gamma, beta)

    return x @ params["wout"] + params["bout"]


# ----------------------------- params ----------------------------------------
def positional_encoding_table(max_len, d_model):
    position = jnp.arange(max_len, dtype=jnp.float32)[:, None]
    div_term = jnp.exp(jnp.arange(0, d_model, 2, dtype=jnp.float32)
                       * (-jnp.log(10000.0) / d_model))
    pe = jnp.zeros((max_len, d_model), dtype=jnp.float32)
    pe = pe.at[:, 0::2].set(jnp.sin(position * div_term))
    pe = pe.at[:, 1::2].set(jnp.cos(position * div_term))
    return pe


def init_params(key):
    def dense(k, fan_in, fan_out):
        w = 0.02 * jax.random.normal(k, (fan_in, fan_out), dtype=jnp.float32)
        b = jnp.zeros((1, fan_out), dtype=jnp.float32)
        return w, b

    keys = jax.random.split(key, 2 + NUM_LAYERS)
    params = {
        "embed": 0.02 * jax.random.normal(keys[0], (VOCAB, EMBED), jnp.float32),
        "pe": positional_encoding_table(MAX_LEN, EMBED),
    }
    params["wout"], params["bout"] = dense(keys[1], EMBED, VOCAB)

    per_layer = {n: [] for n in WEIGHT_NAMES if n not in ("wout", "bout")}

    for li in range(NUM_LAYERS):
        lk = jax.random.split(keys[2 + li], 10)

        # self-attention: fused QKV (x @ W_qkv == [x@Wq | x@Wk | x@Wv])
        wq, bq = dense(lk[0], EMBED, EMBED)
        wk, bk = dense(lk[1], EMBED, EMBED)
        wv, bv = dense(lk[2], EMBED, EMBED)
        wo, bo = dense(lk[3], EMBED, EMBED)
        per_layer["wqkv_s"].append(jnp.concatenate([wq, wk, wv], axis=1))
        per_layer["bqkv_s"].append(jnp.concatenate([bq, bk, bv], axis=1))
        per_layer["wo_s"].append(wo)
        per_layer["bo_s"].append(bo)

        # cross-attention: Q projection separate, fused KV applied to enc_out
        wq, bq = dense(lk[4], EMBED, EMBED)
        wk, bk = dense(lk[5], EMBED, EMBED)
        wv, bv = dense(lk[6], EMBED, EMBED)
        wo, bo = dense(lk[7], EMBED, EMBED)
        per_layer["wq_c"].append(wq)
        per_layer["bq_c"].append(bq)
        per_layer["wkv_c"].append(jnp.concatenate([wk, wv], axis=1))
        per_layer["bkv_c"].append(jnp.concatenate([bk, bv], axis=1))
        per_layer["wo_c"].append(wo)
        per_layer["bo_c"].append(bo)

        # feed-forward
        w1, b1 = dense(lk[8], EMBED, D_FF)
        w2, b2 = dense(lk[9], D_FF, EMBED)
        per_layer["w1"].append(w1)
        per_layer["b1"].append(b1)
        per_layer["w2"].append(w2)
        per_layer["b2"].append(b2)

        # ONE shared LayerNorm per layer (used three times), as in the reference
        per_layer["gamma"].append(jnp.ones((1, EMBED), jnp.float32))
        per_layer["beta"].append(jnp.zeros((1, EMBED), jnp.float32))

    for name, vals in per_layer.items():
        params[name] = jnp.stack(vals, axis=0)
    return params


# ----------------------------- main ------------------------------------------
if __name__ == "__main__":
    key = jax.random.PRNGKey(0)
    k_tok, k_enc, k_par = jax.random.split(key, 3)

    tokens = jax.random.randint(k_tok, (B, S), 0, VOCAB, dtype=jnp.int32)
    enc_out = jax.random.normal(k_enc, (B, S_ENC, EMBED), dtype=jnp.float32)
    params = init_params(k_par)

    logits = decoder_forward_jit(tokens, enc_out, params)
    jax.block_until_ready(logits)
    assert logits.shape == (B, S, VOCAB)

    # Correctness sanity check against a pure-JAX reference (loose tolerance
    # because the kernel uses the EUP approximate reciprocal in softmax).
    ref = jax.jit(decoder_forward_ref)(tokens, enc_out, params)
    jax.block_until_ready(ref)
    np.testing.assert_allclose(np.asarray(logits), np.asarray(ref),
                               rtol=1e-2, atol=1e-2)

    print("KERNEL_OK")
</pallas_src>

<mosaic_0001>
module attributes {stable_mosaic.version = 11 : i64} {
  func.func @_decoder_kernel(%arg0: i32, %arg1: memref<1x8x32xf32, #tpu.memory_space<vmem>>, %arg2: memref<1x8x32xf32, #tpu.memory_space<vmem>>, %arg3: memref<2x32x96xf32, #tpu.memory_space<vmem>>, %arg4: memref<2x1x96xf32, #tpu.memory_space<vmem>>, %arg5: memref<2x32x32xf32, #tpu.memory_space<vmem>>, %arg6: memref<2x1x32xf32, #tpu.memory_space<vmem>>, %arg7: memref<2x32x32xf32, #tpu.memory_space<vmem>>, %arg8: memref<2x1x32xf32, #tpu.memory_space<vmem>>, %arg9: memref<2x32x64xf32, #tpu.memory_space<vmem>>, %arg10: memref<2x1x64xf32, #tpu.memory_space<vmem>>, %arg11: memref<2x32x32xf32, #tpu.memory_space<vmem>>, %arg12: memref<2x1x32xf32, #tpu.memory_space<vmem>>, %arg13: memref<2x32x2048xf32, #tpu.memory_space<vmem>>, %arg14: memref<2x1x2048xf32, #tpu.memory_space<vmem>>, %arg15: memref<2x2048x32xf32, #tpu.memory_space<vmem>>, %arg16: memref<2x1x32xf32, #tpu.memory_space<vmem>>, %arg17: memref<2x1x32xf32, #tpu.memory_space<vmem>>, %arg18: memref<2x1x32xf32, #tpu.memory_space<vmem>>, %arg19: memref<32x64xf32, #tpu.memory_space<vmem>>, %arg20: memref<1x64xf32, #tpu.memory_space<vmem>>, %arg21: memref<1x8x64xf32, #tpu.memory_space<vmem>>) attributes {dimension_semantics = [#tpu.dimension_semantics<parallel>], iteration_bounds = array<i64: 2>, scalar_prefetch = 0 : i64, scratch_operands = 0 : i64, tpu.core_type = #tpu.core_type<tc>, window_params = [{transform_indices = @transform_0, window_bounds = array<i64: 1, 8, 32>}, {transform_indices = @transform_1, window_bounds = array<i64: 1, 8, 32>}, {pipeline_mode = #tpu.pipeline_mode<synchronous>, transform_indices = @transform_2, window_bounds = array<i64: 2, 32, 96>}, {pipeline_mode = #tpu.pipeline_mode<synchronous>, transform_indices = @transform_3, window_bounds = array<i64: 2, 1, 96>}, {pipeline_mode = #tpu.pipeline_mode<synchronous>, transform_indices = @transform_4, window_bounds = array<i64: 2, 32, 32>}, {pipeline_mode = #tpu.pipeline_mode<synchronous>, transform_indices = @transform_5, window_bounds = array<i64: 2, 1, 32>}, {pipeline_mode = #tpu.pipeline_mode<synchronous>, transform_indices = @transform_6, window_bounds = array<i64: 2, 32, 32>}, {pipeline_mode = #tpu.pipeline_mode<synchronous>, transform_indices = @transform_7, window_bounds = array<i64: 2, 1, 32>}, {pipeline_mode = #tpu.pipeline_mode<synchronous>, transform_indices = @transform_8, window_bounds = array<i64: 2, 32, 64>}, {pipeline_mode = #tpu.pipeline_mode<synchronous>, transform_indices = @transform_9, window_bounds = array<i64: 2, 1, 64>}, {pipeline_mode = #tpu.pipeline_mode<synchronous>, transform_indices = @transform_10, window_bounds = array<i64: 2, 32, 32>}, {pipeline_mode = #tpu.pipeline_mode<synchronous>, transform_indices = @transform_11, window_bounds = array<i64: 2, 1, 32>}, {pipeline_mode = #tpu.pipeline_mode<synchronous>, transform_indices = @transform_12, window_bounds = array<i64: 2, 32, 2048>}, {pipeline_mode = #tpu.pipeline_mode<synchronous>, transform_indices = @transform_13, window_bounds = array<i64: 2, 1, 2048>}, {pipeline_mode = #tpu.pipeline_mode<synchronous>, transform_indices = @transform_14, window_bounds = array<i64: 2, 2048, 32>}, {pipeline_mode = #tpu.pipeline_mode<synchronous>, transform_indices = @transform_15, window_bounds = array<i64: 2, 1, 32>}, {pipeline_mode = #tpu.pipeline_mode<synchronous>, transform_indices = @transform_16, window_bounds = array<i64: 2, 1, 32>}, {pipeline_mode = #tpu.pipeline_mode<synchronous>, transform_indices = @transform_17, window_bounds = array<i64: 2, 1, 32>}, {pipeline_mode = #tpu.pipeline_mode<synchronous>, transform_indices = @transform_18, window_bounds = array<i64: 32, 64>}, {pipeline_mode = #tpu.pipeline_mode<synchronous>, transform_indices = @transform_19, window_bounds = array<i64: 1, 64>}, {transform_indices = @transform_20, window_bounds = array<i64: 1, 8, 64>}]} {
    %c0 = arith.constant 0 : index
    %c0_0 = arith.constant 0 : index
    %c0_1 = arith.constant 0 : index
    %0 = vector.load %arg1[%c0, %c0_0, %c0_1] : memref<1x8x32xf32, #tpu.memory_space<vmem>>, vector<1x8x32xf32>
    %1 = vector.shape_cast %0 : vector<1x8x32xf32> to vector<8x32xf32>
    %c0_2 = arith.constant 0 : index
    %c0_3 = arith.constant 0 : index
    %c0_4 = arith.constant 0 : index
    %2 = vector.load %arg2[%c0_2, %c0_3, %c0_4] : memref<1x8x32xf32, #tpu.memory_space<vmem>>, vector<1x8x32xf32>
    %3 = vector.shape_cast %2 : vector<1x8x32xf32> to vector<8x32xf32>
    %c0_5 = arith.constant 0 : index
    %c0_6 = arith.constant 0 : index
    %c0_7 = arith.constant 0 : index
    %4 = vector.load %arg17[%c0_5, %c0_6, %c0_7] : memref<2x1x32xf32, #tpu.memory_space<vmem>>, vector<1x1x32xf32>
    %5 = vector.shape_cast %4 : vector<1x1x32xf32> to vector<1x32xf32>
    %c0_8 = arith.constant 0 : index
    %c0_9 = arith.constant 0 : index
    %c0_10 = arith.constant 0 : index
    %6 = vector.load %arg18[%c0_8, %c0_9, %c0_10] : memref<2x1x32xf32, #tpu.memory_space<vmem>>, vector<1x1x32xf32>
    %7 = vector.shape_cast %6 : vector<1x1x32xf32> to vector<1x32xf32>
    %c0_11 = arith.constant 0 : index
    %c0_12 = arith.constant 0 : index
    %c0_13 = arith.constant 0 : index
    %8 = vector.load %arg3[%c0_11, %c0_12, %c0_13] : memref<2x32x96xf32, #tpu.memory_space<vmem>>, vector<1x32x96xf32>
    %9 = vector.shape_cast %8 : vector<1x32x96xf32> to vector<32x96xf32>
    %cst = arith.constant dense<0.000000e+00> : vector<8x96xf32>
    %10 = tpu.matmul %1, %9, %cst {dimension_numbers = #tpu.dot_dimension_numbers<[1], [0], [0], [1], [0, 0, 1, 1], [], []>} : vector<8x32xf32>, vector<32x96xf32>, vector<8x96xf32> -> vector<8x96xf32>
    %c0_14 = arith.constant 0 : index
    %c0_15 = arith.constant 0 : index
    %c0_16 = arith.constant 0 : index
    %11 = vector.load %arg4[%c0_14, %c0_15, %c0_16] : memref<2x1x96xf32, #tpu.memory_space<vmem>>, vector<1x1x96xf32>
    %12 = vector.shape_cast %11 : vector<1x1x96xf32> to vector<1x96xf32>
    %13 = vector.broadcast %12 : vector<1x96xf32> to vector<8x96xf32>
    %14 = arith.addf %10, %13 : vector<8x96xf32>
    %15 = vector.extract_strided_slice %14 {offsets = [0, 0], sizes = [8, 32], strides = [1, 1]} : vector<8x96xf32> to vector<8x32xf32>
    %16 = vector.extract_strided_slice %14 {offsets = [0, 32], sizes = [8, 32], strides = [1, 1]} : vector<8x96xf32> to vector<8x32xf32>
    %17 = vector.extract_strided_slice %14 {offsets = [0, 64], sizes = [8, 32], strides = [1, 1]} : vector<8x96xf32> to vector<8x32xf32>
    %c0_17 = arith.constant 0 : index
    %c0_18 = arith.constant 0 : index
    %c0_19 = arith.constant 0 : index
    %18 = vector.load %arg5[%c0_17, %c0_18, %c0_19] : memref<2x32x32xf32, #tpu.memory_space<vmem>>, vector<1x32x32xf32>
    %19 = vector.shape_cast %18 : vector<1x32x32xf32> to vector<32x32xf32>
    %c0_20 = arith.constant 0 : index
    %c0_21 = arith.constant 0 : index
    %c0_22 = arith.constant 0 : index
    %20 = vector.load %arg6[%c0_20, %c0_21, %c0_22] : memref<2x1x32xf32, #tpu.memory_space<vmem>>, vector<1x1x32xf32>
    %21 = vector.shape_cast %20 : vector<1x1x32xf32> to vector<1x32xf32>
    %22 = vector.extract_strided_slice %15 {offsets = [0, 0], sizes = [8, 8], strides = [1, 1]} : vector<8x32xf32> to vector<8x8xf32>
    %cst_23 = arith.constant 0.353553385 : f32
    %23 = vector.broadcast %cst_23 : f32 to vector<8x8xf32>
    %24 = arith.mulf %22, %23 : vector<8x8xf32>
    %25 = vector.extract_strided_slice %16 {offsets = [0, 0], sizes = [8, 8], strides = [1, 1]} : vector<8x32xf32> to vector<8x8xf32>
    %26 = vector.extract_strided_slice %17 {offsets = [0, 0], sizes = [8, 8], strides = [1, 1]} : vector<8x32xf32> to vector<8x8xf32>
    %cst_24 = arith.constant dense<0.000000e+00> : vector<8x8xf32>
    %27 = tpu.matmul %24, %25, %cst_24 {dimension_numbers = #tpu.dot_dimension_numbers<[1], [1], [0], [0], [0, 0, 1, 0], [], []>} : vector<8x8xf32>, vector<8x8xf32>, vector<8x8xf32> -> vector<8x8xf32>
    %cst_25 = arith.constant dense<0xFF800000> : vector<8xf32>
    %28 = vector.multi_reduction <maximumf>, %27, %cst_25 [1] : vector<8x8xf32> to vector<8xf32>
    %29 = vector.shape_cast %28 : vector<8xf32> to vector<8x1xf32>
    %30 = vector.broadcast %29 : vector<8x1xf32> to vector<8x8xf32>
    %31 = arith.subf %27, %30 : vector<8x8xf32>
    %32 = math.exp %31 : vector<8x8xf32>
    %cst_26 = arith.constant dense<0.000000e+00> : vector<8xf32>
    %33 = vector.multi_reduction <add>, %32, %cst_26 [1] : vector<8x8xf32> to vector<8xf32>
    %34 = vector.shape_cast %33 : vector<8xf32> to vector<8x1xf32>
    %35 = tpu.reciprocal %34 {approx = true} : vector<8x1xf32> -> vector<8x1xf32>
    %36 = vector.broadcast %35 : vector<8x1xf32> to vector<8x8xf32>
    %37 = arith.mulf %32, %36 : vector<8x8xf32>
    %cst_27 = arith.constant dense<0.000000e+00> : vector<8x8xf32>
    %38 = tpu.matmul %37, %26, %cst_27 {dimension_numbers = #tpu.dot_dimension_numbers<[1], [0], [0], [1], [0, 0, 1, 1], [], []>} : vector<8x8xf32>, vector<8x8xf32>, vector<8x8xf32> -> vector<8x8xf32>
    %39 = vector.extract_strided_slice %15 {offsets = [0, 8], sizes = [8, 8], strides = [1, 1]} : vector<8x32xf32> to vector<8x8xf32>
    %cst_28 = arith.constant 0.353553385 : f32
    %40 = vector.broadcast %cst_28 : f32 to vector<8x8xf32>
    %41 = arith.mulf %39, %40 : vector<8x8xf32>
    %42 = vector.extract_strided_slice %16 {offsets = [0, 8], sizes = [8, 8], strides = [1, 1]} : vector<8x32xf32> to vector<8x8xf32>
    %43 = vector.extract_strided_slice %17 {offsets = [0, 8], sizes = [8, 8], strides = [1, 1]} : vector<8x32xf32> to vector<8x8xf32>
    %cst_29 = arith.constant dense<0.000000e+00> : vector<8x8xf32>
    %44 = tpu.matmul %41, %42, %cst_29 {dimension_numbers = #tpu.dot_dimension_numbers<[1], [1], [0], [0], [0, 0, 1, 0], [], []>} : vector<8x8xf32>, vector<8x8xf32>, vector<8x8xf32> -> vector<8x8xf32>
    %cst_30 = arith.constant dense<0xFF800000> : vector<8xf32>
    %45 = vector.multi_reduction <maximumf>, %44, %cst_30 [1] : vector<8x8xf32> to vector<8xf32>
    %46 = vector.shape_cast %45 : vector<8xf32> to vector<8x1xf32>
    %47 = vector.broadcast %46 : vector<8x1xf32> to vector<8x8xf32>
    %48 = arith.subf %44, %47 : vector<8x8xf32>
    %49 = math.exp %48 : vector<8x8xf32>
    %cst_31 = arith.constant dense<0.000000e+00> : vector<8xf32>
    %50 = vector.multi_reduction <add>, %49, %cst_31 [1] : vector<8x8xf32> to vector<8xf32>
    %51 = vector.shape_cast %50 : vector<8xf32> to vector<8x1xf32>
    %52 = tpu.reciprocal %51 {approx = true} : vector<8x1xf32> -> vector<8x1xf32>
    %53 = vector.broadcast %52 : vector<8x1xf32> to vector<8x8xf32>
    %54 = arith.mulf %49, %53 : vector<8x8xf32>
    %cst_32 = arith.constant dense<0.000000e+00> : vector<8x8xf32>
    %55 = tpu.matmul %54, %43, %cst_32 {dimension_numbers = #tpu.dot_dimension_numbers<[1], [0], [0], [1], [0, 0, 1, 1], [], []>} : vector<8x8xf32>, vector<8x8xf32>, vector<8x8xf32> -> vector<8x8xf32>
    %56 = vector.extract_strided_slice %15 {offsets = [0, 16], sizes = [8, 8], strides = [1, 1]} : vector<8x32xf32> to vector<8x8xf32>
    %cst_33 = arith.constant 0.353553385 : f32
    %57 = vector.broadcast %cst_33 : f32 to vector<8x8xf32>
    %58 = arith.mulf %56, %57 : vector<8x8xf32>
    %59 = vector.extract_strided_slice %16 {offsets = [0, 16], sizes = [8, 8], strides = [1, 1]} : vector<8x32xf32> to vector<8x8xf32>
    %60 = vector.extract_strided_slice %17 {offsets = [0, 16], sizes = [8, 8], strides = [1, 1]} : vector<8x32xf32> to vector<8x8xf32>
    %cst_34 = arith.constant dense<0.000000e+00> : vector<8x8xf32>
    %61 = tpu.matmul %58, %59, %cst_34 {dimension_numbers = #tpu.dot_dimension_numbers<[1], [1], [0], [0], [0, 0, 1, 0], [], []>} : vector<8x8xf32>, vector<8x8xf32>, vector<8x8xf32> -> vector<8x8xf32>
    %cst_35 = arith.constant dense<0xFF800000> : vector<8xf32>
    %62 = vector.multi_reduction <maximumf>, %61, %cst_35 [1] : vector<8x8xf32> to vector<8xf32>
    %63 = vector.shape_cast %62 : vector<8xf32> to vector<8x1xf32>
    %64 = vector.broadcast %63 : vector<8x1xf32> to vector<8x8xf32>
    %65 = arith.subf %61, %64 : vector<8x8xf32>
    %66 = math.exp %65 : vector<8x8xf32>
    %cst_36 = arith.constant dense<0.000000e+00> : vector<8xf32>
    %67 = vector.multi_reduction <add>, %66, %cst_36 [1] : vector<8x8xf32> to vector<8xf32>
    %68 = vector.shape_cast %67 : vector<8xf32> to vector<8x1xf32>
    %69 = tpu.reciprocal %68 {approx = true} : vector<8x1xf32> -> vector<8x1xf32>
    %70 = vector.broadcast %69 : vector<8x1xf32> to vector<8x8xf32>
    %71 = arith.mulf %66, %70 : vector<8x8xf32>
    %cst_37 = arith.constant dense<0.000000e+00> : vector<8x8xf32>
    %72 = tpu.matmul %71, %60, %cst_37 {dimension_numbers = #tpu.dot_dimension_numbers<[1], [0], [0], [1], [0, 0, 1, 1], [], []>} : vector<8x8xf32>, vector<8x8xf32>, vector<8x8xf32> -> vector<8x8xf32>
    %73 = vector.extract_strided_slice %15 {offsets = [0, 24], sizes = [8, 8], strides = [1, 1]} : vector<8x32xf32> to vector<8x8xf32>
    %cst_38 = arith.constant 0.353553385 : f32
    %74 = vector.broadcast %cst_38 : f32 to vector<8x8xf32>
    %75 = arith.mulf %73, %74 : vector<8x8xf32>
    %76 = vector.extract_strided_slice %16 {offsets = [0, 24], sizes = [8, 8], strides = [1, 1]} : vector<8x32xf32> to vector<8x8xf32>
    %77 = vector.extract_strided_slice %17 {offsets = [0, 24], sizes = [8, 8], strides = [1, 1]} : vector<8x32xf32> to vector<8x8xf32>
    %cst_39 = arith.constant dense<0.000000e+00> : vector<8x8xf32>
    %78 = tpu.matmul %75, %76, %cst_39 {dimension_numbers = #tpu.dot_dimension_numbers<[1], [1], [0], [0], [0, 0, 1, 0], [], []>} : vector<8x8xf32>, vector<8x8xf32>, vector<8x8xf32> -> vector<8x8xf32>
    %cst_40 = arith.constant dense<0xFF800000> : vector<8xf32>
    %79 = vector.multi_reduction <maximumf>, %78, %cst_40 [1] : vector<8x8xf32> to vector<8xf32>
    %80 = vector.shape_cast %79 : vector<8xf32> to vector<8x1xf32>
    %81 = vector.broadcast %80 : vector<8x1xf32> to vector<8x8xf32>
    %82 = arith.subf %78, %81 : vector<8x8xf32>
    %83 = math.exp %82 : vector<8x8xf32>
    %cst_41 = arith.constant dense<0.000000e+00> : vector<8xf32>
    %84 = vector.multi_reduction <add>, %83, %cst_41 [1] : vector<8x8xf32> to vector<8xf32>
    %85 = vector.shape_cast %84 : vector<8xf32> to vector<8x1xf32>
    %86 = tpu.reciprocal %85 {approx = true} : vector<8x1xf32> -> vector<8x1xf32>
    %87 = vector.broadcast %86 : vector<8x1xf32> to vector<8x8xf32>
    %88 = arith.mulf %83, %87 : vector<8x8xf32>
    %cst_42 = arith.constant dense<0.000000e+00> : vector<8x8xf32>
    %89 = tpu.matmul %88, %77, %cst_42 {dimension_numbers = #tpu.dot_dimension_numbers<[1], [0], [0], [1], [0, 0, 1, 1], [], []>} : vector<8x8xf32>, vector<8x8xf32>, vector<8x8xf32> -> vector<8x8xf32>
    %90 = tpu.concatenate %38, %55, %72, %89 in 1 : vector<8x8xf32>, vector<8x8xf32>, vector<8x8xf32>, vector<8x8xf32> -> vector<8x32xf32>
    %cst_43 = arith.constant dense<0.000000e+00> : vector<8x32xf32>
    %91 = tpu.matmul %90, %19, %cst_43 {dimension_numbers = #tpu.dot_dimension_numbers<[1], [0], [0], [1], [0, 0, 1, 1], [], []>} : vector<8x32xf32>, vector<32x32xf32>, vector<8x32xf32> -> vector<8x32xf32>
    %92 = vector.broadcast %21 : vector<1x32xf32> to vector<8x32xf32>
    %93 = arith.addf %91, %92 : vector<8x32xf32>
    %94 = arith.addf %1, %93 : vector<8x32xf32>
    %cst_44 = arith.constant dense<0.000000e+00> : vector<8xf32>
    %95 = vector.multi_reduction <add>, %94, %cst_44 [1] : vector<8x32xf32> to vector<8xf32>
    %96 = vector.shape_cast %95 : vector<8xf32> to vector<8x1xf32>
    %cst_45 = arith.constant 3.200000e+01 : f32
    %97 = vector.broadcast %cst_45 : f32 to vector<8x1xf32>
    %98 = arith.divf %96, %97 : vector<8x1xf32>
    %99 = vector.broadcast %98 : vector<8x1xf32> to vector<8x32xf32>
    %100 = arith.subf %94, %99 : vector<8x32xf32>
    %101 = arith.mulf %100, %100 : vector<8x32xf32>
    %cst_46 = arith.constant dense<0.000000e+00> : vector<8xf32>
    %102 = vector.multi_reduction <add>, %101, %cst_46 [1] : vector<8x32xf32> to vector<8xf32>
    %103 = vector.shape_cast %102 : vector<8xf32> to vector<8x1xf32>
    %cst_47 = arith.constant 3.200000e+01 : f32
    %104 = vector.broadcast %cst_47 : f32 to vector<8x1xf32>
    %105 = arith.divf %103, %104 : vector<8x1xf32>
    %cst_48 = arith.constant 9.99999974E-6 : f32
    %106 = vector.broadcast %cst_48 : f32 to vector<8x1xf32>
    %107 = arith.addf %105, %106 : vector<8x1xf32>
    %108 = math.rsqrt %107 : vector<8x1xf32>
    %109 = vector.broadcast %108 : vector<8x1xf32> to vector<8x32xf32>
    %110 = arith.mulf %100, %109 : vector<8x32xf32>
    %111 = vector.broadcast %5 : vector<1x32xf32> to vector<8x32xf32>
    %112 = arith.mulf %110, %111 : vector<8x32xf32>
    %113 = vector.broadcast %7 : vector<1x32xf32> to vector<8x32xf32>
    %114 = arith.addf %112, %113 : vector<8x32xf32>
    %c0_49 = arith.constant 0 : index
    %c0_50 = arith.constant 0 : index
    %c0_51 = arith.constant 0 : index
    %115 = vector.load %arg7[%c0_49, %c0_50, %c0_51] : memref<2x32x32xf32, #tpu.memory_space<vmem>>, vector<1x32x32xf32>
    %116 = vector.shape_cast %115 : vector<1x32x32xf32> to vector<32x32xf32>
    %cst_52 = arith.constant dense<0.000000e+00> : vector<8x32xf32>
    %117 = tpu.matmul %114, %116, %cst_52 {dimension_numbers = #tpu.dot_dimension_numbers<[1], [0], [0], [1], [0, 0, 1, 1], [], []>} : vector<8x32xf32>, vector<32x32xf32>, vector<8x32xf32> -> vector<8x32xf32>
    %c0_53 = arith.constant 0 : index
    %c0_54 = arith.constant 0 : index
    %c0_55 = arith.constant 0 : index
    %118 = vector.load %arg8[%c0_53, %c0_54, %c0_55] : memref<2x1x32xf32, #tpu.memory_space<vmem>>, vector<1x1x32xf32>
    %119 = vector.shape_cast %118 : vector<1x1x32xf32> to vector<1x32xf32>
    %120 = vector.broadcast %119 : vector<1x32xf32> to vector<8x32xf32>
    %121 = arith.addf %117, %120 : vector<8x32xf32>
    %c0_56 = arith.constant 0 : index
    %c0_57 = arith.constant 0 : index
    %c0_58 = arith.constant 0 : index
    %122 = vector.load %arg9[%c0_56, %c0_57, %c0_58] : memref<2x32x64xf32, #tpu.memory_space<vmem>>, vector<1x32x64xf32>
    %123 = vector.shape_cast %122 : vector<1x32x64xf32> to vector<32x64xf32>
    %cst_59 = arith.constant dense<0.000000e+00> : vector<8x64xf32>
    %124 = tpu.matmul %3, %123, %cst_59 {dimension_numbers = #tpu.dot_dimension_numbers<[1], [0], [0], [1], [0, 0, 1, 1], [], []>} : vector<8x32xf32>, vector<32x64xf32>, vector<8x64xf32> -> vector<8x64xf32>
    %c0_60 = arith.constant 0 : index
    %c0_61 = arith.constant 0 : index
    %c0_62 = arith.constant 0 : index
    %125 = vector.load %arg10[%c0_60, %c0_61, %c0_62] : memref<2x1x64xf32, #tpu.memory_space<vmem>>, vector<1x1x64xf32>
    %126 = vector.shape_cast %125 : vector<1x1x64xf32> to vector<1x64xf32>
    %127 = vector.broadcast %126 : vector<1x64xf32> to vector<8x64xf32>
    %128 = arith.addf %124, %127 : vector<8x64xf32>
    %129 = vector.extract_strided_slice %128 {offsets = [0, 0], sizes = [8, 32], strides = [1, 1]} : vector<8x64xf32> to vector<8x32xf32>
    %130 = vector.extract_strided_slice %128 {offsets = [0, 32], sizes = [8, 32], strides = [1, 1]} : vector<8x64xf32> to vector<8x32xf32>
    %c0_63 = arith.constant 0 : index
    %c0_64 = arith.constant 0 : index
    %c0_65 = arith.constant 0 : index
    %131 = vector.load %arg11[%c0_63, %c0_64, %c0_65] : memref<2x32x32xf32, #tpu.memory_space<vmem>>, vector<1x32x32xf32>
    %132 = vector.shape_cast %131 : vector<1x32x32xf32> to vector<32x32xf32>
    %c0_66 = arith.constant 0 : index
    %c0_67 = arith.constant 0 : index
    %c0_68 = arith.constant 0 : index
    %133 = vector.load %arg12[%c0_66, %c0_67, %c0_68] : memref<2x1x32xf32, #tpu.memory_space<vmem>>, vector<1x1x32xf32>
    %134 = vector.shape_cast %133 : vector<1x1x32xf32> to vector<1x32xf32>
    %135 = vector.extract_strided_slice %121 {offsets = [0, 0], sizes = [8, 8], strides = [1, 1]} : vector<8x32xf32> to vector<8x8xf32>
    %cst_69 = arith.constant 0.353553385 : f32
    %136 = vector.broadcast %cst_69 : f32 to vector<8x8xf32>
    %137 = arith.mulf %135, %136 : vector<8x8xf32>
    %138 = vector.extract_strided_slice %129 {offsets = [0, 0], sizes = [8, 8], strides = [1, 1]} : vector<8x32xf32> to vector<8x8xf32>
    %139 = vector.extract_strided_slice %130 {offsets = [0, 0], sizes = [8, 8], strides = [1, 1]} : vector<8x32xf32> to vector<8x8xf32>
    %cst_70 = arith.constant dense<0.000000e+00> : vector<8x8xf32>
    %140 = tpu.matmul %137, %138, %cst_70 {dimension_numbers = #tpu.dot_dimension_numbers<[1], [1], [0], [0], [0, 0, 1, 0], [], []>} : vector<8x8xf32>, vector<8x8xf32>, vector<8x8xf32> -> vector<8x8xf32>
    %cst_71 = arith.constant dense<0xFF800000> : vector<8xf32>
    %141 = vector.multi_reduction <maximumf>, %140, %cst_71 [1] : vector<8x8xf32> to vector<8xf32>
    %142 = vector.shape_cast %141 : vector<8xf32> to vector<8x1xf32>
    %143 = vector.broadcast %142 : vector<8x1xf32> to vector<8x8xf32>
    %144 = arith.subf %140, %143 : vector<8x8xf32>
    %145 = math.exp %144 : vector<8x8xf32>
    %cst_72 = arith.constant dense<0.000000e+00> : vector<8xf32>
    %146 = vector.multi_reduction <add>, %145, %cst_72 [1] : vector<8x8xf32> to vector<8xf32>
    %147 = vector.shape_cast %146 : vector<8xf32> to vector<8x1xf32>
    %148 = tpu.reciprocal %147 {approx = true} : vector<8x1xf32> -> vector<8x1xf32>
    %149 = vector.broadcast %148 : vector<8x1xf32> to vector<8x8xf32>
    %150 = arith.mulf %145, %149 : vector<8x8xf32>
    %cst_73 = arith.constant dense<0.000000e+00> : vector<8x8xf32>
    %151 = tpu.matmul %150, %139, %cst_73 {dimension_numbers = #tpu.dot_dimension_numbers<[1], [0], [0], [1], [0, 0, 1, 1], [], []>} : vector<8x8xf32>, vector<8x8xf32>, vector<8x8xf32> -> vector<8x8xf32>
    %152 = vector.extract_strided_slice %121 {offsets = [0, 8], sizes = [8, 8], strides = [1, 1]} : vector<8x32xf32> to vector<8x8xf32>
    %cst_74 = arith.constant 0.353553385 : f32
    %153 = vector.broadcast %cst_74 : f32 to vector<8x8xf32>
    %154 = arith.mulf %152, %153 : vector<8x8xf32>
    %155 = vector.extract_strided_slice %129 {offsets = [0, 8], sizes = [8, 8], strides = [1, 1]} : vector<8x32xf32> to vector<8x8xf32>
    %156 = vector.extract_strided_slice %130 {offsets = [0, 8], sizes = [8, 8], strides = [1, 1]} : vector<8x32xf32> to vector<8x8xf32>
    %cst_75 = arith.constant dense<0.000000e+00> : vector<8x8xf32>
    %157 = tpu.matmul %154, %155, %cst_75 {dimension_numbers = #tpu.dot_dimension_numbers<[1], [1], [0], [0], [0, 0, 1, 0], [], []>} : vector<8x8xf32>, vector<8x8xf32>, vector<8x8xf32> -> vector<8x8xf32>
    %cst_76 = arith.constant dense<0xFF800000> : vector<8xf32>
    %158 = vector.multi_reduction <maximumf>, %157, %cst_76 [1] : vector<8x8xf32> to vector<8xf32>
    %159 = vector.shape_cast %158 : vector<8xf32> to vector<8x1xf32>
    %160 = vector.broadcast %159 : vector<8x1xf32> to vector<8x8xf32>
    %161 = arith.subf %157, %160 : vector<8x8xf32>
    %162 = math.exp %161 : vector<8x8xf32>
    %cst_77 = arith.constant dense<0.000000e+00> : vector<8xf32>
    %163 = vector.multi_reduction <add>, %162, %cst_77 [1] : vector<8x8xf32> to vector<8xf32>
    %164 = vector.shape_cast %163 : vector<8xf32> to vector<8x1xf32>
    %165 = tpu.reciprocal %164 {approx = true} : vector<8x1xf32> -> vector<8x1xf32>
    %166 = vector.broadcast %165 : vector<8x1xf32> to vector<8x8xf32>
    %167 = arith.mulf %162, %166 : vector<8x8xf32>
    %cst_78 = arith.constant dense<0.000000e+00> : vector<8x8xf32>
    %168 = tpu.matmul %167, %156, %cst_78 {dimension_numbers = #tpu.dot_dimension_numbers<[1], [0], [0], [1], [0, 0, 1, 1], [], []>} : vector<8x8xf32>, vector<8x8xf32>, vector<8x8xf32> -> vector<8x8xf32>
    %169 = vector.extract_strided_slice %121 {offsets = [0, 16], sizes = [8, 8], strides = [1, 1]} : vector<8x32xf32> to vector<8x8xf32>
    %cst_79 = arith.constant 0.353553385 : f32
    %170 = vector.broadcast %cst_79 : f32 to vector<8x8xf32>
    %171 = arith.mulf %169, %170 : vector<8x8xf32>
    %172 = vector.extract_strided_slice %129 {offsets = [0, 16], sizes = [8, 8], strides = [1, 1]} : vector<8x32xf32> to vector<8x8xf32>
    %173 = vector.extract_strided_slice %130 {offsets = [0, 16], sizes = [8, 8], strides = [1, 1]} : vector<8x32xf32> to vector<8x8xf32>
    %cst_80 = arith.constant dense<0.000000e+00> : vector<8x8xf32>
    %174 = tpu.matmul %171, %172, %cst_80 {dimension_numbers = #tpu.dot_dimension_numbers<[1], [1], [0], [0], [0, 0, 1, 0], [], []>} : vector<8x8xf32>, vector<8x8xf32>, vector<8x8xf32> -> vector<8x8xf32>
    %cst_81 = arith.constant dense<0xFF800000> : vector<8xf32>
    %175 = vector.multi_reduction <maximumf>, %174, %cst_81 [1] : vector<8x8xf32> to vector<8xf32>
    %176 = vector.shape_cast %175 : vector<8xf32> to vector<8x1xf32>
    %177 = vector.broadcast %176 : vector<8x1xf32> to vector<8x8xf32>
    %178 = arith.subf %174, %177 : vector<8x8xf32>
    %179 = math.exp %178 : vector<8x8xf32>
    %cst_82 = arith.constant dense<0.000000e+00> : vector<8xf32>
    %180 = vector.multi_reduction <add>, %179, %cst_82 [1] : vector<8x8xf32> to vector<8xf32>
    %181 = vector.shape_cast %180 : vector<8xf32> to vector<8x1xf32>
    %182 = tpu.reciprocal %181 {approx = true} : vector<8x1xf32> -> vector<8x1xf32>
    %183 = vector.broadcast %182 : vector<8x1xf32> to vector<8x8xf32>
    %184 = arith.mulf %179, %183 : vector<8x8xf32>
    %cst_83 = arith.constant dense<0.000000e+00> : vector<8x8xf32>
    %185 = tpu.matmul %184, %173, %cst_83 {dimension_numbers = #tpu.dot_dimension_numbers<[1], [0], [0], [1], [0, 0, 1, 1], [], []>} : vector<8x8xf32>, vector<8x8xf32>, vector<8x8xf32> -> vector<8x8xf32>
    %186 = vector.extract_strided_slice %121 {offsets = [0, 24], sizes = [8, 8], strides = [1, 1]} : vector<8x32xf32> to vector<8x8xf32>
    %cst_84 = arith.constant 0.353553385 : f32
    %187 = vector.broadcast %cst_84 : f32 to vector<8x8xf32>
    %188 = arith.mulf %186, %187 : vector<8x8xf32>
    %189 = vector.extract_strided_slice %129 {offsets = [0, 24], sizes = [8, 8], strides = [1, 1]} : vector<8x32xf32> to vector<8x8xf32>
    %190 = vector.extract_strided_slice %130 {offsets = [0, 24], sizes = [8, 8], strides = [1, 1]} : vector<8x32xf32> to vector<8x8xf32>
    %cst_85 = arith.constant dense<0.000000e+00> : vector<8x8xf32>
    %191 = tpu.matmul %188, %189, %cst_85 {dimension_numbers = #tpu.dot_dimension_numbers<[1], [1], [0], [0], [0, 0, 1, 0], [], []>} : vector<8x8xf32>, vector<8x8xf32>, vector<8x8xf32> -> vector<8x8xf32>
    %cst_86 = arith.constant dense<0xFF800000> : vector<8xf32>
    %192 = vector.multi_reduction <maximumf>, %191, %cst_86 [1] : vector<8x8xf32> to vector<8xf32>
    %193 = vector.shape_cast %192 : vector<8xf32> to vector<8x1xf32>
    %194 = vector.broadcast %193 : vector<8x1xf32> to vector<8x8xf32>
    %195 = arith.subf %191, %194 : vector<8x8xf32>
    %196 = math.exp %195 : vector<8x8xf32>
    %cst_87 = arith.constant dense<0.000000e+00> : vector<8xf32>
    %197 = vector.multi_reduction <add>, %196, %cst_87 [1] : vector<8x8xf32> to vector<8xf32>
    %198 = vector.shape_cast %197 : vector<8xf32> to vector<8x1xf32>
    %199 = tpu.reciprocal %198 {approx = true} : vector<8x1xf32> -> vector<8x1xf32>
    %200 = vector.broadcast %199 : vector<8x1xf32> to vector<8x8xf32>
    %201 = arith.mulf %196, %200 : vector<8x8xf32>
    %cst_88 = arith.constant dense<0.000000e+00> : vector<8x8xf32>
    %202 = tpu.matmul %201, %190, %cst_88 {dimension_numbers = #tpu.dot_dimension_numbers<[1], [0], [0], [1], [0, 0, 1, 1], [], []>} : vector<8x8xf32>, vector<8x8xf32>, vector<8x8xf32> -> vector<8x8xf32>
    %203 = tpu.concatenate %151, %168, %185, %202 in 1 : vector<8x8xf32>, vector<8x8xf32>, vector<8x8xf32>, vector<8x8xf32> -> vector<8x32xf32>
    %cst_89 = arith.constant dense<0.000000e+00> : vector<8x32xf32>
    %204 = tpu.matmul %203, %132, %cst_89 {dimension_numbers = #tpu.dot_dimension_numbers<[1], [0], [0], [1], [0, 0, 1, 1], [], []>} : vector<8x32xf32>, vector<32x32xf32>, vector<8x32xf32> -> vector<8x32xf32>
    %205 = vector.broadcast %134 : vector<1x32xf32> to vector<8x32xf32>
    %206 = arith.addf %204, %205 : vector<8x32xf32>
    %207 = arith.addf %114, %206 : vector<8x32xf32>
    %cst_90 = arith.constant dense<0.000000e+00> : vector<8xf32>
    %208 = vector.multi_reduction <add>, %207, %cst_90 [1] : vector<8x32xf32> to vector<8xf32>
    %209 = vector.shape_cast %208 : vector<8xf32> to vector<8x1xf32>
    %cst_91 = arith.constant 3.200000e+01 : f32
    %210 = vector.broadcast %cst_91 : f32 to vector<8x1xf32>
    %211 = arith.divf %209, %210 : vector<8x1xf32>
    %212 = vector.broadcast %211 : vector<8x1xf32> to vector<8x32xf32>
    %213 = arith.subf %207, %212 : vector<8x32xf32>
    %214 = arith.mulf %213, %213 : vector<8x32xf32>
    %cst_92 = arith.constant dense<0.000000e+00> : vector<8xf32>
    %215 = vector.multi_reduction <add>, %214, %cst_92 [1] : vector<8x32xf32> to vector<8xf32>
    %216 = vector.shape_cast %215 : vector<8xf32> to vector<8x1xf32>
    %cst_93 = arith.constant 3.200000e+01 : f32
    %217 = vector.broadcast %cst_93 : f32 to vector<8x1xf32>
    %218 = arith.divf %216, %217 : vector<8x1xf32>
    %cst_94 = arith.constant 9.99999974E-6 : f32
    %219 = vector.broadcast %cst_94 : f32 to vector<8x1xf32>
    %220 = arith.addf %218, %219 : vector<8x1xf32>
    %221 = math.rsqrt %220 : vector<8x1xf32>
    %222 = vector.broadcast %221 : vector<8x1xf32> to vector<8x32xf32>
    %223 = arith.mulf %213, %222 : vector<8x32xf32>
    %224 = vector.broadcast %5 : vector<1x32xf32> to vector<8x32xf32>
    %225 = arith.mulf %223, %224 : vector<8x32xf32>
    %226 = vector.broadcast %7 : vector<1x32xf32> to vector<8x32xf32>
    %227 = arith.addf %225, %226 : vector<8x32xf32>
    %c0_95 = arith.constant 0 : index
    %c0_96 = arith.constant 0 : index
    %c0_97 = arith.constant 0 : index
    %228 = vector.load %arg13[%c0_95, %c0_96, %c0_97] : memref<2x32x2048xf32, #tpu.memory_space<vmem>>, vector<1x32x2048xf32>
    %229 = vector.shape_cast %228 : vector<1x32x2048xf32> to vector<32x2048xf32>
    %cst_98 = arith.constant dense<0.000000e+00> : vector<8x2048xf32>
    %230 = tpu.matmul %227, %229, %cst_98 {dimension_numbers = #tpu.dot_dimension_numbers<[1], [0], [0], [1], [0, 0, 1, 1], [], []>} : vector<8x32xf32>, vector<32x2048xf32>, vector<8x2048xf32> -> vector<8x2048xf32>
    %c0_99 = arith.constant 0 : index
    %c0_100 = arith.constant 0 : index
    %c0_101 = arith.constant 0 : index
    %231 = vector.load %arg14[%c0_99, %c0_100, %c0_101] : memref<2x1x2048xf32, #tpu.memory_space<vmem>>, vector<1x1x2048xf32>
    %232 = vector.shape_cast %231 : vector<1x1x2048xf32> to vector<1x2048xf32>
    %233 = vector.broadcast %232 : vector<1x2048xf32> to vector<8x2048xf32>
    %234 = arith.addf %230, %233 : vector<8x2048xf32>
    %cst_102 = arith.constant 0.000000e+00 : f32
    %235 = vector.broadcast %cst_102 : f32 to vector<8x2048xf32>
    %236 = arith.maximumf %234, %235 : vector<8x2048xf32>
    %c0_103 = arith.constant 0 : index
    %c0_104 = arith.constant 0 : index
    %c0_105 = arith.constant 0 : index
    %237 = vector.load %arg15[%c0_103, %c0_104, %c0_105] : memref<2x2048x32xf32, #tpu.memory_space<vmem>>, vector<1x2048x32xf32>
    %238 = vector.shape_cast %237 : vector<1x2048x32xf32> to vector<2048x32xf32>
    %cst_106 = arith.constant dense<0.000000e+00> : vector<8x32xf32>
    %239 = tpu.matmul %236, %238, %cst_106 {dimension_numbers = #tpu.dot_dimension_numbers<[1], [0], [0], [1], [0, 0, 1, 1], [], []>} : vector<8x2048xf32>, vector<2048x32xf32>, vector<8x32xf32> -> vector<8x32xf32>
    %c0_107 = arith.constant 0 : index
    %c0_108 = arith.constant 0 : index
    %c0_109 = arith.constant 0 : index
    %240 = vector.load %arg16[%c0_107, %c0_108, %c0_109] : memref<2x1x32xf32, #tpu.memory_space<vmem>>, vector<1x1x32xf32>
    %241 = vector.shape_cast %240 : vector<1x1x32xf32> to vector<1x32xf32>
    %242 = vector.broadcast %241 : vector<1x32xf32> to vector<8x32xf32>
    %243 = arith.addf %239, %242 : vector<8x32xf32>
    %244 = arith.addf %227, %243 : vector<8x32xf32>
    %cst_110 = arith.constant dense<0.000000e+00> : vector<8xf32>
    %245 = vector.multi_reduction <add>, %244, %cst_110 [1] : vector<8x32xf32> to vector<8xf32>
    %246 = vector.shape_cast %245 : vector<8xf32> to vector<8x1xf32>
    %cst_111 = arith.constant 3.200000e+01 : f32
    %247 = vector.broadcast %cst_111 : f32 to vector<8x1xf32>
    %248 = arith.divf %246, %247 : vector<8x1xf32>
    %249 = vector.broadcast %248 : vector<8x1xf32> to vector<8x32xf32>
    %250 = arith.subf %244, %249 : vector<8x32xf32>
    %251 = arith.mulf %250, %250 : vector<8x32xf32>
    %cst_112 = arith.constant dense<0.000000e+00> : vector<8xf32>
    %252 = vector.multi_reduction <add>, %251, %cst_112 [1] : vector<8x32xf32> to vector<8xf32>
    %253 = vector.shape_cast %252 : vector<8xf32> to vector<8x1xf32>
    %cst_113 = arith.constant 3.200000e+01 : f32
    %254 = vector.broadcast %cst_113 : f32 to vector<8x1xf32>
    %255 = arith.divf %253, %254 : vector<8x1xf32>
    %cst_114 = arith.constant 9.99999974E-6 : f32
    %256 = vector.broadcast %cst_114 : f32 to vector<8x1xf32>
    %257 = arith.addf %255, %256 : vector<8x1xf32>
    %258 = math.rsqrt %257 : vector<8x1xf32>
    %259 = vector.broadcast %258 : vector<8x1xf32> to vector<8x32xf32>
    %260 = arith.mulf %250, %259 : vector<8x32xf32>
    %261 = vector.broadcast %5 : vector<1x32xf32> to vector<8x32xf32>
    %262 = arith.mulf %260, %261 : vector<8x32xf32>
    %263 = vector.broadcast %7 : vector<1x32xf32> to vector<8x32xf32>
    %264 = arith.addf %262, %263 : vector<8x32xf32>
    %c1 = arith.constant 1 : index
    %c0_115 = arith.constant 0 : index
    %c0_116 = arith.constant 0 : index
    %265 = vector.load %arg17[%c1, %c0_115, %c0_116] : memref<2x1x32xf32, #tpu.memory_space<vmem>>, vector<1x1x32xf32>
    %266 = vector.shape_cast %265 : vector<1x1x32xf32> to vector<1x32xf32>
    %c1_117 = arith.constant 1 : index
    %c0_118 = arith.constant 0 : index
    %c0_119 = arith.constant 0 : index
    %267 = vector.load %arg18[%c1_117, %c0_118, %c0_119] : memref<2x1x32xf32, #tpu.memory_space<vmem>>, vector<1x1x32xf32>
    %268 = vector.shape_cast %267 : vector<1x1x32xf32> to vector<1x32xf32>
    %c1_120 = arith.constant 1 : index
    %c0_121 = arith.constant 0 : index
    %c0_122 = arith.constant 0 : index
    %269 = vector.load %arg3[%c1_120, %c0_121, %c0_122] : memref<2x32x96xf32, #tpu.memory_space<vmem>>, vector<1x32x96xf32>
    %270 = vector.shape_cast %269 : vector<1x32x96xf32> to vector<32x96xf32>
    %cst_123 = arith.constant dense<0.000000e+00> : vector<8x96xf32>
    %271 = tpu.matmul %264, %270, %cst_123 {dimension_numbers = #tpu.dot_dimension_numbers<[1], [0], [0], [1], [0, 0, 1, 1], [], []>} : vector<8x32xf32>, vector<32x96xf32>, vector<8x96xf32> -> vector<8x96xf32>
    %c1_124 = arith.constant 1 : index
    %c0_125 = arith.constant 0 : index
    %c0_126 = arith.constant 0 : index
    %272 = vector.load %arg4[%c1_124, %c0_125, %c0_126] : memref<2x1x96xf32, #tpu.memory_space<vmem>>, vector<1x1x96xf32>
    %273 = vector.shape_cast %272 : vector<1x1x96xf32> to vector<1x96xf32>
    %274 = vector.broadcast %273 : vector<1x96xf32> to vector<8x96xf32>
    %275 = arith.addf %271, %274 : vector<8x96xf32>
    %276 = vector.extract_strided_slice %275 {offsets = [0, 0], sizes = [8, 32], strides = [1, 1]} : vector<8x96xf32> to vector<8x32xf32>
    %277 = vector.extract_strided_slice %275 {offsets = [0, 32], sizes = [8, 32], strides = [1, 1]} : vector<8x96xf32> to vector<8x32xf32>
    %278 = vector.extract_strided_slice %275 {offsets = [0, 64], sizes = [8, 32], strides = [1, 1]} : vector<8x96xf32> to vector<8x32xf32>
    %c1_127 = arith.constant 1 : index
    %c0_128 = arith.constant 0 : index
    %c0_129 = arith.constant 0 : index
    %279 = vector.load %arg5[%c1_127, %c0_128, %c0_129] : memref<2x32x32xf32, #tpu.memory_space<vmem>>, vector<1x32x32xf32>
    %280 = vector.shape_cast %279 : vector<1x32x32xf32> to vector<32x32xf32>
    %c1_130 = arith.constant 1 : index
    %c0_131 = arith.constant 0 : index
    %c0_132 = arith.constant 0 : index
    %281 = vector.load %arg6[%c1_130, %c0_131, %c0_132] : memref<2x1x32xf32, #tpu.memory_space<vmem>>, vector<1x1x32xf32>
    %282 = vector.shape_cast %281 : vector<1x1x32xf32> to vector<1x32xf32>
    %283 = vector.extract_strided_slice %276 {offsets = [0, 0], sizes = [8, 8], strides = [1, 1]} : vector<8x32xf32> to vector<8x8xf32>
    %cst_133 = arith.constant 0.353553385 : f32
    %284 = vector.broadcast %cst_133 : f32 to vector<8x8xf32>
    %285 = arith.mulf %283, %284 : vector<8x8xf32>
    %286 = vector.extract_strided_slice %277 {offsets = [0, 0], sizes = [8, 8], strides = [1, 1]} : vector<8x32xf32> to vector<8x8xf32>
    %287 = vector.extract_strided_slice %278 {offsets = [0, 0], sizes = [8, 8], strides = [1, 1]} : vector<8x32xf32> to vector<8x8xf32>
    %cst_134 = arith.constant dense<0.000000e+00> : vector<8x8xf32>
    %288 = tpu.matmul %285, %286, %cst_134 {dimension_numbers = #tpu.dot_dimension_numbers<[1], [1], [0], [0], [0, 0, 1, 0], [], []>} : vector<8x8xf32>, vector<8x8xf32>, vector<8x8xf32> -> vector<8x8xf32>
    %cst_135 = arith.constant dense<0xFF800000> : vector<8xf32>
    %289 = vector.multi_reduction <maximumf>, %288, %cst_135 [1] : vector<8x8xf32> to vector<8xf32>
    %290 = vector.shape_cast %289 : vector<8xf32> to vector<8x1xf32>
    %291 = vector.broadcast %290 : vector<8x1xf32> to vector<8x8xf32>
    %292 = arith.subf %288, %291 : vector<8x8xf32>
    %293 = math.exp %292 : vector<8x8xf32>
    %cst_136 = arith.constant dense<0.000000e+00> : vector<8xf32>
    %294 = vector.multi_reduction <add>, %293, %cst_136 [1] : vector<8x8xf32> to vector<8xf32>
    %295 = vector.shape_cast %294 : vector<8xf32> to vector<8x1xf32>
    %296 = tpu.reciprocal %295 {approx = true} : vector<8x1xf32> -> vector<8x1xf32>
    %297 = vector.broadcast %296 : vector<8x1xf32> to vector<8x8xf32>
    %298 = arith.mulf %293, %297 : vector<8x8xf32>
    %cst_137 = arith.constant dense<0.000000e+00> : vector<8x8xf32>
    %299 = tpu.matmul %298, %287, %cst_137 {dimension_numbers = #tpu.dot_dimension_numbers<[1], [0], [0], [1], [0, 0, 1, 1], [], []>} : vector<8x8xf32>, vector<8x8xf32>, vector<8x8xf32> -> vector<8x8xf32>
    %300 = vector.extract_strided_slice %276 {offsets = [0, 8], sizes = [8, 8], strides = [1, 1]} : vector<8x32xf32> to vector<8x8xf32>
    %cst_138 = arith.constant 0.353553385 : f32
    %301 = vector.broadcast %cst_138 : f32 to vector<8x8xf32>
    %302 = arith.mulf %300, %301 : vector<8x8xf32>
    %303 = vector.extract_strided_slice %277 {offsets = [0, 8], sizes = [8, 8], strides = [1, 1]} : vector<8x32xf32> to vector<8x8xf32>
    %304 = vector.extract_strided_slice %278 {offsets = [0, 8], sizes = [8, 8], strides = [1, 1]} : vector<8x32xf32> to vector<8x8xf32>
    %cst_139 = arith.constant dense<0.000000e+00> : vector<8x8xf32>
    %305 = tpu.matmul %302, %303, %cst_139 {dimension_numbers = #tpu.dot_dimension_numbers<[1], [1], [0], [0], [0, 0, 1, 0], [], []>} : vector<8x8xf32>, vector<8x8xf32>, vector<8x8xf32> -> vector<8x8xf32>
    %cst_140 = arith.constant dense<0xFF800000> : vector<8xf32>
    %306 = vector.multi_reduction <maximumf>, %305, %cst_140 [1] : vector<8x8xf32> to vector<8xf32>
    %307 = vector.shape_cast %306 : vector<8xf32> to vector<8x1xf32>
    %308 = vector.broadcast %307 : vector<8x1xf32> to vector<8x8xf32>
    %309 = arith.subf %305, %308 : vector<8x8xf32>
    %310 = math.exp %309 : vector<8x8xf32>
    %cst_141 = arith.constant dense<0.000000e+00> : vector<8xf32>
    %311 = vector.multi_reduction <add>, %310, %cst_141 [1] : vector<8x8xf32> to vector<8xf32>
    %312 = vector.shape_cast %311 : vector<8xf32> to vector<8x1xf32>
    %313 = tpu.reciprocal %312 {approx = true} : vector<8x1xf32> -> vector<8x1xf32>
    %314 = vector.broadcast %313 : vector<8x1xf32> to vector<8x8xf32>
    %315 = arith.mulf %310, %314 : vector<8x8xf32>
    %cst_142 = arith.constant dense<0.000000e+00> : vector<8x8xf32>
    %316 = tpu.matmul %315, %304, %cst_142 {dimension_numbers = #tpu.dot_dimension_numbers<[1], [0], [0], [1], [0, 0, 1, 1], [], []>} : vector<8x8xf32>, vector<8x8xf32>, vector<8x8xf32> -> vector<8x8xf32>
    %317 = vector.extract_strided_slice %276 {offsets = [0, 16], sizes = [8, 8], strides = [1, 1]} : vector<8x32xf32> to vector<8x8xf32>
    %cst_143 = arith.constant 0.353553385 : f32
    %318 = vector.broadcast %cst_143 : f32 to vector<8x8xf32>
    %319 = arith.mulf %317, %318 : vector<8x8xf32>
    %320 = vector.extract_strided_slice %277 {offsets = [0, 16], sizes = [8, 8], strides = [1, 1]} : vector<8x32xf32> to vector<8x8xf32>
    %321 = vector.extract_strided_slice %278 {offsets = [0, 16], sizes = [8, 8], strides = [1, 1]} : vector<8x32xf32> to vector<8x8xf32>
    %cst_144 = arith.constant dense<0.000000e+00> : vector<8x8xf32>
    %322 = tpu.matmul %319, %320, %cst_144 {dimension_numbers = #tpu.dot_dimension_numbers<[1], [1], [0], [0], [0, 0, 1, 0], [], []>} : vector<8x8xf32>, vector<8x8xf32>, vector<8x8xf32> -> vector<8x8xf32>
    %cst_145 = arith.constant dense<0xFF800000> : vector<8xf32>
    %323 = vector.multi_reduction <maximumf>, %322, %cst_145 [1] : vector<8x8xf32> to vector<8xf32>
    %324 = vector.shape_cast %323 : vector<8xf32> to vector<8x1xf32>
    %325 = vector.broadcast %324 : vector<8x1xf32> to vector<8x8xf32>
    %326 = arith.subf %322, %325 : vector<8x8xf32>
    %327 = math.exp %326 : vector<8x8xf32>
    %cst_146 = arith.constant dense<0.000000e+00> : vector<8xf32>
    %328 = vector.multi_reduction <add>, %327, %cst_146 [1] : vector<8x8xf32> to vector<8xf32>
    %329 = vector.shape_cast %328 : vector<8xf32> to vector<8x1xf32>
    %330 = tpu.reciprocal %329 {approx = true} : vector<8x1xf32> -> vector<8x1xf32>
    %331 = vector.broadcast %330 : vector<8x1xf32> to vector<8x8xf32>
    %332 = arith.mulf %327, %331 : vector<8x8xf32>
    %cst_147 = arith.constant dense<0.000000e+00> : vector<8x8xf32>
    %333 = tpu.matmul %332, %321, %cst_147 {dimension_numbers = #tpu.dot_dimension_numbers<[1], [0], [0], [1], [0, 0, 1, 1], [], []>} : vector<8x8xf32>, vector<8x8xf32>, vector<8x8xf32> -> vector<8x8xf32>
    %334 = vector.extract_strided_slice %276 {offsets = [0, 24], sizes = [8, 8], strides = [1, 1]} : vector<8x32xf32> to vector<8x8xf32>
    %cst_148 = arith.constant 0.353553385 : f32
    %335 = vector.broadcast %cst_148 : f32 to vector<8x8xf32>
    %336 = arith.mulf %334, %335 : vector<8x8xf32>
    %337 = vector.extract_strided_slice %277 {offsets = [0, 24], sizes = [8, 8], strides = [1, 1]} : vector<8x32xf32> to vector<8x8xf32>
    %338 = vector.extract_strided_slice %278 {offsets = [0, 24], sizes = [8, 8], strides = [1, 1]} : vector<8x32xf32> to vector<8x8xf32>
    %cst_149 = arith.constant dense<0.000000e+00> : vector<8x8xf32>
    %339 = tpu.matmul %336, %337, %cst_149 {dimension_numbers = #tpu.dot_dimension_numbers<[1], [1], [0], [0], [0, 0, 1, 0], [], []>} : vector<8x8xf32>, vector<8x8xf32>, vector<8x8xf32> -> vector<8x8xf32>
    %cst_150 = arith.constant dense<0xFF800000> : vector<8xf32>
    %340 = vector.multi_reduction <maximumf>, %339, %cst_150 [1] : vector<8x8xf32> to vector<8xf32>
    %341 = vector.shape_cast %340 : vector<8xf32> to vector<8x1xf32>
    %342 = vector.broadcast %341 : vector<8x1xf32> to vector<8x8xf32>
    %343 = arith.subf %339, %342 : vector<8x8xf32>
    %344 = math.exp %343 : vector<8x8xf32>
    %cst_151 = arith.constant dense<0.000000e+00> : vector<8xf32>
    %345 = vector.multi_reduction <add>, %344, %cst_151 [1] : vector<8x8xf32> to vector<8xf32>
    %346 = vector.shape_cast %345 : vector<8xf32> to vector<8x1xf32>
    %347 = tpu.reciprocal %346 {approx = true} : vector<8x1xf32> -> vector<8x1xf32>
    %348 = vector.broadcast %347 : vector<8x1xf32> to vector<8x8xf32>
    %349 = arith.mulf %344, %348 : vector<8x8xf32>
    %cst_152 = arith.constant dense<0.000000e+00> : vector<8x8xf32>
    %350 = tpu.matmul %349, %338, %cst_152 {dimension_numbers = #tpu.dot_dimension_numbers<[1], [0], [0], [1], [0, 0, 1, 1], [], []>} : vector<8x8xf32>, vector<8x8xf32>, vector<8x8xf32> -> vector<8x8xf32>
    %351 = tpu.concatenate %299, %316, %333, %350 in 1 : vector<8x8xf32>, vector<8x8xf32>, vector<8x8xf32>, vector<8x8xf32> -> vector<8x32xf32>
    %cst_153 = arith.constant dense<0.000000e+00> : vector<8x32xf32>
    %352 = tpu.matmul %351, %280, %cst_153 {dimension_numbers = #tpu.dot_dimension_numbers<[1], [0], [0], [1], [0, 0, 1, 1], [], []>} : vector<8x32xf32>, vector<32x32xf32>, vector<8x32xf32> -> vector<8x32xf32>
    %353 = vector.broadcast %282 : vector<1x32xf32> to vector<8x32xf32>
    %354 = arith.addf %352, %353 : vector<8x32xf32>
    %355 = arith.addf %264, %354 : vector<8x32xf32>
    %cst_154 = arith.constant dense<0.000000e+00> : vector<8xf32>
    %356 = vector.multi_reduction <add>, %355, %cst_154 [1] : vector<8x32xf32> to vector<8xf32>
    %357 = vector.shape_cast %356 : vector<8xf32> to vector<8x1xf32>
    %cst_155 = arith.constant 3.200000e+01 : f32
    %358 = vector.broadcast %cst_155 : f32 to vector<8x1xf32>
    %359 = arith.divf %357, %358 : vector<8x1xf32>
    %360 = vector.broadcast %359 : vector<8x1xf32> to vector<8x32xf32>
    %361 = arith.subf %355, %360 : vector<8x32xf32>
    %362 = arith.mulf %361, %361 : vector<8x32xf32>
    %cst_156 = arith.constant dense<0.000000e+00> : vector<8xf32>
    %363 = vector.multi_reduction <add>, %362, %cst_156 [1] : vector<8x32xf32> to vector<8xf32>
    %364 = vector.shape_cast %363 : vector<8xf32> to vector<8x1xf32>
    %cst_157 = arith.constant 3.200000e+01 : f32
    %365 = vector.broadcast %cst_157 : f32 to vector<8x1xf32>
    %366 = arith.divf %364, %365 : vector<8x1xf32>
    %cst_158 = arith.constant 9.99999974E-6 : f32
    %367 = vector.broadcast %cst_158 : f32 to vector<8x1xf32>
    %368 = arith.addf %366, %367 : vector<8x1xf32>
    %369 = math.rsqrt %368 : vector<8x1xf32>
    %370 = vector.broadcast %369 : vector<8x1xf32> to vector<8x32xf32>
    %371 = arith.mulf %361, %370 : vector<8x32xf32>
    %372 = vector.broadcast %266 : vector<1x32xf32> to vector<8x32xf32>
    %373 = arith.mulf %371, %372 : vector<8x32xf32>
    %374 = vector.broadcast %268 : vector<1x32xf32> to vector<8x32xf32>
    %375 = arith.addf %373, %374 : vector<8x32xf32>
    %c1_159 = arith.constant 1 : index
    %c0_160 = arith.constant 0 : index
    %c0_161 = arith.constant 0 : index
    %376 = vector.load %arg7[%c1_159, %c0_160, %c0_161] : memref<2x32x32xf32, #tpu.memory_space<vmem>>, vector<1x32x32xf32>
    %377 = vector.shape_cast %376 : vector<1x32x32xf32> to vector<32x32xf32>
    %cst_162 = arith.constant dense<0.000000e+00> : vector<8x32xf32>
    %378 = tpu.matmul %375, %377, %cst_162 {dimension_numbers = #tpu.dot_dimension_numbers<[1], [0], [0], [1], [0, 0, 1, 1], [], []>} : vector<8x32xf32>, vector<32x32xf32>, vector<8x32xf32> -> vector<8x32xf32>
    %c1_163 = arith.constant 1 : index
    %c0_164 = arith.constant 0 : index
    %c0_165 = arith.constant 0 : index
    %379 = vector.load %arg8[%c1_163, %c0_164, %c0_165] : memref<2x1x32xf32, #tpu.memory_space<vmem>>, vector<1x1x32xf32>
    %380 = vector.shape_cast %379 : vector<1x1x32xf32> to vector<1x32xf32>
    %381 = vector.broadcast %380 : vector<1x32xf32> to vector<8x32xf32>
    %382 = arith.addf %378, %381 : vector<8x32xf32>
    %c1_166 = arith.constant 1 : index
    %c0_167 = arith.constant 0 : index
    %c0_168 = arith.constant 0 : index
    %383 = vector.load %arg9[%c1_166, %c0_167, %c0_168] : memref<2x32x64xf32, #tpu.memory_space<vmem>>, vector<1x32x64xf32>
    %384 = vector.shape_cast %383 : vector<1x32x64xf32> to vector<32x64xf32>
    %cst_169 = arith.constant dense<0.000000e+00> : vector<8x64xf32>
    %385 = tpu.matmul %3, %384, %cst_169 {dimension_numbers = #tpu.dot_dimension_numbers<[1], [0], [0], [1], [0, 0, 1, 1], [], []>} : vector<8x32xf32>, vector<32x64xf32>, vector<8x64xf32> -> vector<8x64xf32>
    %c1_170 = arith.constant 1 : index
    %c0_171 = arith.constant 0 : index
    %c0_172 = arith.constant 0 : index
    %386 = vector.load %arg10[%c1_170, %c0_171, %c0_172] : memref<2x1x64xf32, #tpu.memory_space<vmem>>, vector<1x1x64xf32>
    %387 = vector.shape_cast %386 : vector<1x1x64xf32> to vector<1x64xf32>
    %388 = vector.broadcast %387 : vector<1x64xf32> to vector<8x64xf32>
    %389 = arith.addf %385, %388 : vector<8x64xf32>
    %390 = vector.extract_strided_slice %389 {offsets = [0, 0], sizes = [8, 32], strides = [1, 1]} : vector<8x64xf32> to vector<8x32xf32>
    %391 = vector.extract_strided_slice %389 {offsets = [0, 32], sizes = [8, 32], strides = [1, 1]} : vector<8x64xf32> to vector<8x32xf32>
    %c1_173 = arith.constant 1 : index
    %c0_174 = arith.constant 0 : index
    %c0_175 = arith.constant 0 : index
    %392 = vector.load %arg11[%c1_173, %c0_174, %c0_175] : memref<2x32x32xf32, #tpu.memory_space<vmem>>, vector<1x32x32xf32>
    %393 = vector.shape_cast %392 : vector<1x32x32xf32> to vector<32x32xf32>
    %c1_176 = arith.constant 1 : index
    %c0_177 = arith.constant 0 : index
    %c0_178 = arith.constant 0 : index
    %394 = vector.load %arg12[%c1_176, %c0_177, %c0_178] : memref<2x1x32xf32, #tpu.memory_space<vmem>>, vector<1x1x32xf32>
    %395 = vector.shape_cast %394 : vector<1x1x32xf32> to vector<1x32xf32>
    %396 = vector.extract_strided_slice %382 {offsets = [0, 0], sizes = [8, 8], strides = [1, 1]} : vector<8x32xf32> to vector<8x8xf32>
    %cst_179 = arith.constant 0.353553385 : f32
    %397 = vector.broadcast %cst_179 : f32 to vector<8x8xf32>
    %398 = arith.mulf %396, %397 : vector<8x8xf32>
    %399 = vector.extract_strided_slice %390 {offsets = [0, 0], sizes = [8, 8], strides = [1, 1]} : vector<8x32xf32> to vector<8x8xf32>
    %400 = vector.extract_strided_slice %391 {offsets = [0, 0], sizes = [8, 8], strides = [1, 1]} : vector<8x32xf32> to vector<8x8xf32>
    %cst_180 = arith.constant dense<0.000000e+00> : vector<8x8xf32>
    %401 = tpu.matmul %398, %399, %cst_180 {dimension_numbers = #tpu.dot_dimension_numbers<[1], [1], [0], [0], [0, 0, 1, 0], [], []>} : vector<8x8xf32>, vector<8x8xf32>, vector<8x8xf32> -> vector<8x8xf32>
    %cst_181 = arith.constant dense<0xFF800000> : vector<8xf32>
    %402 = vector.multi_reduction <maximumf>, %401, %cst_181 [1] : vector<8x8xf32> to vector<8xf32>
    %403 = vector.shape_cast %402 : vector<8xf32> to vector<8x1xf32>
    %404 = vector.broadcast %403 : vector<8x1xf32> to vector<8x8xf32>
    %405 = arith.subf %401, %404 : vector<8x8xf32>
    %406 = math.exp %405 : vector<8x8xf32>
    %cst_182 = arith.constant dense<0.000000e+00> : vector<8xf32>
    %407 = vector.multi_reduction <add>, %406, %cst_182 [1] : vector<8x8xf32> to vector<8xf32>
    %408 = vector.shape_cast %407 : vector<8xf32> to vector<8x1xf32>
    %409 = tpu.reciprocal %408 {approx = true} : vector<8x1xf32> -> vector<8x1xf32>
    %410 = vector.broadcast %409 : vector<8x1xf32> to vector<8x8xf32>
    %411 = arith.mulf %406, %410 : vector<8x8xf32>
    %cst_183 = arith.constant dense<0.000000e+00> : vector<8x8xf32>
    %412 = tpu.matmul %411, %400, %cst_183 {dimension_numbers = #tpu.dot_dimension_numbers<[1], [0], [0], [1], [0, 0, 1, 1], [], []>} : vector<8x8xf32>, vector<8x8xf32>, vector<8x8xf32> -> vector<8x8xf32>
    %413 = vector.extract_strided_slice %382 {offsets = [0, 8], sizes = [8, 8], strides = [1, 1]} : vector<8x32xf32> to vector<8x8xf32>
    %cst_184 = arith.constant 0.353553385 : f32
    %414 = vector.broadcast %cst_184 : f32 to vector<8x8xf32>
    %415 = arith.mulf %413, %414 : vector<8x8xf32>
    %416 = vector.extract_strided_slice %390 {offsets = [0, 8], sizes = [8, 8], strides = [1, 1]} : vector<8x32xf32> to vector<8x8xf32>
    %417 = vector.extract_strided_slice %391 {offsets = [0, 8], sizes = [8, 8], strides = [1, 1]} : vector<8x32xf32> to vector<8x8xf32>
    %cst_185 = arith.constant dense<0.000000e+00> : vector<8x8xf32>
    %418 = tpu.matmul %415, %416, %cst_185 {dimension_numbers = #tpu.dot_dimension_numbers<[1], [1], [0], [0], [0, 0, 1, 0], [], []>} : vector<8x8xf32>, vector<8x8xf32>, vector<8x8xf32> -> vector<8x8xf32>
    %cst_186 = arith.constant dense<0xFF800000> : vector<8xf32>
    %419 = vector.multi_reduction <maximumf>, %418, %cst_186 [1] : vector<8x8xf32> to vector<8xf32>
    %420 = vector.shape_cast %419 : vector<8xf32> to vector<8x1xf32>
    %421 = vector.broadcast %420 : vector<8x1xf32> to vector<8x8xf32>
    %422 = arith.subf %418, %421 : vector<8x8xf32>
    %423 = math.exp %422 : vector<8x8xf32>
    %cst_187 = arith.constant dense<0.000000e+00> : vector<8xf32>
    %424 = vector.multi_reduction <add>, %423, %cst_187 [1] : vector<8x8xf32> to vector<8xf32>
    %425 = vector.shape_cast %424 : vector<8xf32> to vector<8x1xf32>
    %426 = tpu.reciprocal %425 {approx = true} : vector<8x1xf32> -> vector<8x1xf32>
    %427 = vector.broadcast %426 : vector<8x1xf32> to vector<8x8xf32>
    %428 = arith.mulf %423, %427 : vector<8x8xf32>
    %cst_188 = arith.constant dense<0.000000e+00> : vector<8x8xf32>
    %429 = tpu.matmul %428, %417, %cst_188 {dimension_numbers = #tpu.dot_dimension_numbers<[1], [0], [0], [1], [0, 0, 1, 1], [], []>} : vector<8x8xf32>, vector<8x8xf32>, vector<8x8xf32> -> vector<8x8xf32>
    %430 = vector.extract_strided_slice %382 {offsets = [0, 16], sizes = [8, 8], strides = [1, 1]} : vector<8x32xf32> to vector<8x8xf32>
    %cst_189 = arith.constant 0.353553385 : f32
    %431 = vector.broadcast %cst_189 : f32 to vector<8x8xf32>
    %432 = arith.mulf %430, %431 : vector<8x8xf32>
    %433 = vector.extract_strided_slice %390 {offsets = [0, 16], sizes = [8, 8], strides = [1, 1]} : vector<8x32xf32> to vector<8x8xf32>
    %434 = vector.extract_strided_slice %391 {offsets = [0, 16], sizes = [8, 8], strides = [1, 1]} : vector<8x32xf32> to vector<8x8xf32>
    %cst_190 = arith.constant dense<0.000000e+00> : vector<8x8xf32>
    %435 = tpu.matmul %432, %433, %cst_190 {dimension_numbers = #tpu.dot_dimension_numbers<[1], [1], [0], [0], [0, 0, 1, 0], [], []>} : vector<8x8xf32>, vector<8x8xf32>, vector<8x8xf32> -> vector<8x8xf32>
    %cst_191 = arith.constant dense<0xFF800000> : vector<8xf32>
    %436 = vector.multi_reduction <maximumf>, %435, %cst_191 [1] : vector<8x8xf32> to vector<8xf32>
    %437 = vector.shape_cast %436 : vector<8xf32> to vector<8x1xf32>
    %438 = vector.broadcast %437 : vector<8x1xf32> to vector<8x8xf32>
    %439 = arith.subf %435, %438 : vector<8x8xf32>
    %440 = math.exp %439 : vector<8x8xf32>
    %cst_192 = arith.constant dense<0.000000e+00> : vector<8xf32>
    %441 = vector.multi_reduction <add>, %440, %cst_192 [1] : vector<8x8xf32> to vector<8xf32>
    %442 = vector.shape_cast %441 : vector<8xf32> to vector<8x1xf32>
    %443 = tpu.reciprocal %442 {approx = true} : vector<8x1xf32> -> vector<8x1xf32>
    %444 = vector.broadcast %443 : vector<8x1xf32> to vector<8x8xf32>
    %445 = arith.mulf %440, %444 : vector<8x8xf32>
    %cst_193 = arith.constant dense<0.000000e+00> : vector<8x8xf32>
    %446 = tpu.matmul %445, %434, %cst_193 {dimension_numbers = #tpu.dot_dimension_numbers<[1], [0], [0], [1], [0, 0, 1, 1], [], []>} : vector<8x8xf32>, vector<8x8xf32>, vector<8x8xf32> -> vector<8x8xf32>
    %447 = vector.extract_strided_slice %382 {offsets = [0, 24], sizes = [8, 8], strides = [1, 1]} : vector<8x32xf32> to vector<8x8xf32>
    %cst_194 = arith.constant 0.353553385 : f32
    %448 = vector.broadcast %cst_194 : f32 to vector<8x8xf32>
    %449 = arith.mulf %447, %448 : vector<8x8xf32>
    %450 = vector.extract_strided_slice %390 {offsets = [0, 24], sizes = [8, 8], strides = [1, 1]} : vector<8x32xf32> to vector<8x8xf32>
    %451 = vector.extract_strided_slice %391 {offsets = [0, 24], sizes = [8, 8], strides = [1, 1]} : vector<8x32xf32> to vector<8x8xf32>
    %cst_195 = arith.constant dense<0.000000e+00> : vector<8x8xf32>
    %452 = tpu.matmul %449, %450, %cst_195 {dimension_numbers = #tpu.dot_dimension_numbers<[1], [1], [0], [0], [0, 0, 1, 0], [], []>} : vector<8x8xf32>, vector<8x8xf32>, vector<8x8xf32> -> vector<8x8xf32>
    %cst_196 = arith.constant dense<0xFF800000> : vector<8xf32>
    %453 = vector.multi_reduction <maximumf>, %452, %cst_196 [1] : vector<8x8xf32> to vector<8xf32>
    %454 = vector.shape_cast %453 : vector<8xf32> to vector<8x1xf32>
    %455 = vector.broadcast %454 : vector<8x1xf32> to vector<8x8xf32>
    %456 = arith.subf %452, %455 : vector<8x8xf32>
    %457 = math.exp %456 : vector<8x8xf32>
    %cst_197 = arith.constant dense<0.000000e+00> : vector<8xf32>
    %458 = vector.multi_reduction <add>, %457, %cst_197 [1] : vector<8x8xf32> to vector<8xf32>
    %459 = vector.shape_cast %458 : vector<8xf32> to vector<8x1xf32>
    %460 = tpu.reciprocal %459 {approx = true} : vector<8x1xf32> -> vector<8x1xf32>
    %461 = vector.broadcast %460 : vector<8x1xf32> to vector<8x8xf32>
    %462 = arith.mulf %457, %461 : vector<8x8xf32>
    %cst_198 = arith.constant dense<0.000000e+00> : vector<8x8xf32>
    %463 = tpu.matmul %462, %451, %cst_198 {dimension_numbers = #tpu.dot_dimension_numbers<[1], [0], [0], [1], [0, 0, 1, 1], [], []>} : vector<8x8xf32>, vector<8x8xf32>, vector<8x8xf32> -> vector<8x8xf32>
    %464 = tpu.concatenate %412, %429, %446, %463 in 1 : vector<8x8xf32>, vector<8x8xf32>, vector<8x8xf32>, vector<8x8xf32> -> vector<8x32xf32>
    %cst_199 = arith.constant dense<0.000000e+00> : vector<8x32xf32>
    %465 = tpu.matmul %464, %393, %cst_199 {dimension_numbers = #tpu.dot_dimension_numbers<[1], [0], [0], [1], [0, 0, 1, 1], [], []>} : vector<8x32xf32>, vector<32x32xf32>, vector<8x32xf32> -> vector<8x32xf32>
    %466 = vector.broadcast %395 : vector<1x32xf32> to vector<8x32xf32>
    %467 = arith.addf %465, %466 : vector<8x32xf32>
    %468 = arith.addf %375, %467 : vector<8x32xf32>
    %cst_200 = arith.constant dense<0.000000e+00> : vector<8xf32>
    %469 = vector.multi_reduction <add>, %468, %cst_200 [1] : vector<8x32xf32> to vector<8xf32>
    %470 = vector.shape_cast %469 : vector<8xf32> to vector<8x1xf32>
    %cst_201 = arith.constant 3.200000e+01 : f32
    %471 = vector.broadcast %cst_201 : f32 to vector<8x1xf32>
    %472 = arith.divf %470, %471 : vector<8x1xf32>
    %473 = vector.broadcast %472 : vector<8x1xf32> to vector<8x32xf32>
    %474 = arith.subf %468, %473 : vector<8x32xf32>
    %475 = arith.mulf %474, %474 : vector<8x32xf32>
    %cst_202 = arith.constant dense<0.000000e+00> : vector<8xf32>
    %476 = vector.multi_reduction <add>, %475, %cst_202 [1] : vector<8x32xf32> to vector<8xf32>
    %477 = vector.shape_cast %476 : vector<8xf32> to vector<8x1xf32>
    %cst_203 = arith.constant 3.200000e+01 : f32
    %478 = vector.broadcast %cst_203 : f32 to vector<8x1xf32>
    %479 = arith.divf %477, %478 : vector<8x1xf32>
    %cst_204 = arith.constant 9.99999974E-6 : f32
    %480 = vector.broadcast %cst_204 : f32 to vector<8x1xf32>
    %481 = arith.addf %479, %480 : vector<8x1xf32>
    %482 = math.rsqrt %481 : vector<8x1xf32>
    %483 = vector.broadcast %482 : vector<8x1xf32> to vector<8x32xf32>
    %484 = arith.mulf %474, %483 : vector<8x32xf32>
    %485 = vector.broadcast %266 : vector<1x32xf32> to vector<8x32xf32>
    %486 = arith.mulf %484, %485 : vector<8x32xf32>
    %487 = vector.broadcast %268 : vector<1x32xf32> to vector<8x32xf32>
    %488 = arith.addf %486, %487 : vector<8x32xf32>
    %c1_205 = arith.constant 1 : index
    %c0_206 = arith.constant 0 : index
    %c0_207 = arith.constant 0 : index
    %489 = vector.load %arg13[%c1_205, %c0_206, %c0_207] : memref<2x32x2048xf32, #tpu.memory_space<vmem>>, vector<1x32x2048xf32>
    %490 = vector.shape_cast %489 : vector<1x32x2048xf32> to vector<32x2048xf32>
    %cst_208 = arith.constant dense<0.000000e+00> : vector<8x2048xf32>
    %491 = tpu.matmul %488, %490, %cst_208 {dimension_numbers = #tpu.dot_dimension_numbers<[1], [0], [0], [1], [0, 0, 1, 1], [], []>} : vector<8x32xf32>, vector<32x2048xf32>, vector<8x2048xf32> -> vector<8x2048xf32>
    %c1_209 = arith.constant 1 : index
    %c0_210 = arith.constant 0 : index
    %c0_211 = arith.constant 0 : index
    %492 = vector.load %arg14[%c1_209, %c0_210, %c0_211] : memref<2x1x2048xf32, #tpu.memory_space<vmem>>, vector<1x1x2048xf32>
    %493 = vector.shape_cast %492 : vector<1x1x2048xf32> to vector<1x2048xf32>
    %494 = vector.broadcast %493 : vector<1x2048xf32> to vector<8x2048xf32>
    %495 = arith.addf %491, %494 : vector<8x2048xf32>
    %cst_212 = arith.constant 0.000000e+00 : f32
    %496 = vector.broadcast %cst_212 : f32 to vector<8x2048xf32>
    %497 = arith.maximumf %495, %496 : vector<8x2048xf32>
    %c1_213 = arith.constant 1 : index
    %c0_214 = arith.constant 0 : index
    %c0_215 = arith.constant 0 : index
    %498 = vector.load %arg15[%c1_213, %c0_214, %c0_215] : memref<2x2048x32xf32, #tpu.memory_space<vmem>>, vector<1x2048x32xf32>
    %499 = vector.shape_cast %498 : vector<1x2048x32xf32> to vector<2048x32xf32>
    %cst_216 = arith.constant dense<0.000000e+00> : vector<8x32xf32>
    %500 = tpu.matmul %497, %499, %cst_216 {dimension_numbers = #tpu.dot_dimension_numbers<[1], [0], [0], [1], [0, 0, 1, 1], [], []>} : vector<8x2048xf32>, vector<2048x32xf32>, vector<8x32xf32> -> vector<8x32xf32>
    %c1_217 = arith.constant 1 : index
    %c0_218 = arith.constant 0 : index
    %c0_219 = arith.constant 0 : index
    %501 = vector.load %arg16[%c1_217, %c0_218, %c0_219] : memref<2x1x32xf32, #tpu.memory_space<vmem>>, vector<1x1x32xf32>
    %502 = vector.shape_cast %501 : vector<1x1x32xf32> to vector<1x32xf32>
    %503 = vector.broadcast %502 : vector<1x32xf32> to vector<8x32xf32>
    %504 = arith.addf %500, %503 : vector<8x32xf32>
    %505 = arith.addf %488, %504 : vector<8x32xf32>
    %cst_220 = arith.constant dense<0.000000e+00> : vector<8xf32>
    %506 = vector.multi_reduction <add>, %505, %cst_220 [1] : vector<8x32xf32> to vector<8xf32>
    %507 = vector.shape_cast %506 : vector<8xf32> to vector<8x1xf32>
    %cst_221 = arith.constant 3.200000e+01 : f32
    %508 = vector.broadcast %cst_221 : f32 to vector<8x1xf32>
    %509 = arith.divf %507, %508 : vector<8x1xf32>
    %510 = vector.broadcast %509 : vector<8x1xf32> to vector<8x32xf32>
    %511 = arith.subf %505, %510 : vector<8x32xf32>
    %512 = arith.mulf %511, %511 : vector<8x32xf32>
    %cst_222 = arith.constant dense<0.000000e+00> : vector<8xf32>
    %513 = vector.multi_reduction <add>, %512, %cst_222 [1] : vector<8x32xf32> to vector<8xf32>
    %514 = vector.shape_cast %513 : vector<8xf32> to vector<8x1xf32>
    %cst_223 = arith.constant 3.200000e+01 : f32
    %515 = vector.broadcast %cst_223 : f32 to vector<8x1xf32>
    %516 = arith.divf %514, %515 : vector<8x1xf32>
    %cst_224 = arith.constant 9.99999974E-6 : f32
    %517 = vector.broadcast %cst_224 : f32 to vector<8x1xf32>
    %518 = arith.addf %516, %517 : vector<8x1xf32>
    %519 = math.rsqrt %518 : vector<8x1xf32>
    %520 = vector.broadcast %519 : vector<8x1xf32> to vector<8x32xf32>
    %521 = arith.mulf %511, %520 : vector<8x32xf32>
    %522 = vector.broadcast %266 : vector<1x32xf32> to vector<8x32xf32>
    %523 = arith.mulf %521, %522 : vector<8x32xf32>
    %524 = vector.broadcast %268 : vector<1x32xf32> to vector<8x32xf32>
    %525 = arith.addf %523, %524 : vector<8x32xf32>
    %c0_225 = arith.constant 0 : index
    %c0_226 = arith.constant 0 : index
    %526 = vector.load %arg19[%c0_225, %c0_226] : memref<32x64xf32, #tpu.memory_space<vmem>>, vector<32x64xf32>
    %cst_227 = arith.constant dense<0.000000e+00> : vector<8x64xf32>
    %527 = tpu.matmul %525, %526, %cst_227 {dimension_numbers = #tpu.dot_dimension_numbers<[1], [0], [0], [1], [0, 0, 1, 1], [], []>} : vector<8x32xf32>, vector<32x64xf32>, vector<8x64xf32> -> vector<8x64xf32>
    %c0_228 = arith.constant 0 : index
    %c0_229 = arith.constant 0 : index
    %528 = vector.load %arg20[%c0_228, %c0_229] : memref<1x64xf32, #tpu.memory_space<vmem>>, vector<1x64xf32>
    %529 = vector.broadcast %528 : vector<1x64xf32> to vector<8x64xf32>
    %530 = arith.addf %527, %529 : vector<8x64xf32>
    %c0_230 = arith.constant 0 : index
    %c0_231 = arith.constant 0 : index
    %c0_232 = arith.constant 0 : index
    %531 = vector.load %arg21[%c0_230, %c0_231, %c0_232] : memref<1x8x64xf32, #tpu.memory_space<vmem>>, vector<1x8x64xf32>
    %532 = vector.shape_cast %531 : vector<1x8x64xf32> to vector<8x64xf32>
    %533 = vector.shape_cast %530 : vector<8x64xf32> to vector<1x8x64xf32>
    tpu.vector_store %arg21[%c0_230, %c0_231, %c0_232], %533 {strides = array<i32>} : memref<1x8x64xf32, #tpu.memory_space<vmem>>, vector<1x8x64xf32>,
    return
  }
  func.func @transform_0(%arg0: i32) -> (i32, i32, i32) {
    %c0_i32 = arith.constant 0 : i32
    %c0_i32_0 = arith.constant 0 : i32
    %c0_i32_1 = arith.constant 0 : i32
    return %arg0, %c0_i32, %c0_i32_0 : i32, i32, i32
  }
  func.func @transform_1(%arg0: i32) -> (i32, i32, i32) {
    %c0_i32 = arith.constant 0 : i32
    %c0_i32_0 = arith.constant 0 : i32
    %c0_i32_1 = arith.constant 0 : i32
    return %arg0, %c0_i32, %c0_i32_0 : i32, i32, i32
  }
  func.func @transform_2(%arg0: i32) -> (i32, i32, i32) {
    %c0_i32 = arith.constant 0 : i32
    %c0_i32_0 = arith.constant 0 : i32
    %c0_i32_1 = arith.constant 0 : i32
    %c0_i32_2 = arith.constant 0 : i32
    return %c0_i32, %c0_i32_0, %c0_i32_1 : i32, i32, i32
  }
  func.func @transform_3(%arg0: i32) -> (i32, i32, i32) {
    %c0_i32 = arith.constant 0 : i32
    %c0_i32_0 = arith.constant 0 : i32
    %c0_i32_1 = arith.constant 0 : i32
    %c0_i32_2 = arith.constant 0 : i32
    return %c0_i32, %c0_i32_0, %c0_i32_1 : i32, i32, i32
  }
  func.func @transform_4(%arg0: i32) -> (i32, i32, i32) {
    %c0_i32 = arith.constant 0 : i32
    %c0_i32_0 = arith.constant 0 : i32
    %c0_i32_1 = arith.constant 0 : i32
    %c0_i32_2 = arith.constant 0 : i32
    return %c0_i32, %c0_i32_0, %c0_i32_1 : i32, i32, i32
  }
  func.func @transform_5(%arg0: i32) -> (i32, i32, i32) {
    %c0_i32 = arith.constant 0 : i32
    %c0_i32_0 = arith.constant 0 : i32
    %c0_i32_1 = arith.constant 0 : i32
    %c0_i32_2 = arith.constant 0 : i32
    return %c0_i32, %c0_i32_0, %c0_i32_1 : i32, i32, i32
  }
  func.func @transform_6(%arg0: i32) -> (i32, i32, i32) {
    %c0_i32 = arith.constant 0 : i32
    %c0_i32_0 = arith.constant 0 : i32
    %c0_i32_1 = arith.constant 0 : i32
    %c0_i32_2 = arith.constant 0 : i32
    return %c0_i32, %c0_i32_0, %c0_i32_1 : i32, i32, i32
  }
  func.func @transform_7(%arg0: i32) -> (i32, i32, i32) {
    %c0_i32 = arith.constant 0 : i32
    %c0_i32_0 = arith.constant 0 : i32
    %c0_i32_1 = arith.constant 0 : i32
    %c0_i32_2 = arith.constant 0 : i32
    return %c0_i32, %c0_i32_0, %c0_i32_1 : i32, i32, i32
  }
  func.func @transform_8(%arg0: i32) -> (i32, i32, i32) {
    %c0_i32 = arith.constant 0 : i32
    %c0_i32_0 = arith.constant 0 : i32
    %c0_i32_1 = arith.constant 0 : i32
    %c0_i32_2 = arith.constant 0 : i32
    return %c0_i32, %c0_i32_0, %c0_i32_1 : i32, i32, i32
  }
  func.func @transform_9(%arg0: i32) -> (i32, i32, i32) {
    %c0_i32 = arith.constant 0 : i32
    %c0_i32_0 = arith.constant 0 : i32
    %c0_i32_1 = arith.constant 0 : i32
    %c0_i32_2 = arith.constant 0 : i32
    return %c0_i32, %c0_i32_0, %c0_i32_1 : i32, i32, i32
  }
  func.func @transform_10(%arg0: i32) -> (i32, i32, i32) {
    %c0_i32 = arith.constant 0 : i32
    %c0_i32_0 = arith.constant 0 : i32
    %c0_i32_1 = arith.constant 0 : i32
    %c0_i32_2 = arith.constant 0 : i32
    return %c0_i32, %c0_i32_0, %c0_i32_1 : i32, i32, i32
  }
  func.func @transform_11(%arg0: i32) -> (i32, i32, i32) {
    %c0_i32 = arith.constant 0 : i32
    %c0_i32_0 = arith.constant 0 : i32
    %c0_i32_1 = arith.constant 0 : i32
    %c0_i32_2 = arith.constant 0 : i32
    return %c0_i32, %c0_i32_0, %c0_i32_1 : i32, i32, i32
  }
  func.func @transform_12(%arg0: i32) -> (i32, i32, i32) {
    %c0_i32 = arith.constant 0 : i32
    %c0_i32_0 = arith.constant 0 : i32
    %c0_i32_1 = arith.constant 0 : i32
    %c0_i32_2 = arith.constant 0 : i32
    return %c0_i32, %c0_i32_0, %c0_i32_1 : i32, i32, i32
  }
  func.func @transform_13(%arg0: i32) -> (i32, i32, i32) {
    %c0_i32 = arith.constant 0 : i32
    %c0_i32_0 = arith.constant 0 : i32
    %c0_i32_1 = arith.constant 0 : i32
    %c0_i32_2 = arith.constant 0 : i32
    return %c0_i32, %c0_i32_0, %c0_i32_1 : i32, i32, i32
  }
  func.func @transform_14(%arg0: i32) -> (i32, i32, i32) {
    %c0_i32 = arith.constant 0 : i32
    %c0_i32_0 = arith.constant 0 : i32
    %c0_i32_1 = arith.constant 0 : i32
    %c0_i32_2 = arith.constant 0 : i32
    return %c0_i32, %c0_i32_0, %c0_i32_1 : i32, i32, i32
  }
  func.func @transform_15(%arg0: i32) -> (i32, i32, i32) {
    %c0_i32 = arith.constant 0 : i32
    %c0_i32_0 = arith.constant 0 : i32
    %c0_i32_1 = arith.constant 0 : i32
    %c0_i32_2 = arith.constant 0 : i32
    return %c0_i32, %c0_i32_0, %c0_i32_1 : i32, i32, i32
  }
  func.func @transform_16(%arg0: i32) -> (i32, i32, i32) {
    %c0_i32 = arith.constant 0 : i32
    %c0_i32_0 = arith.constant 0 : i32
    %c0_i32_1 = arith.constant 0 : i32
    %c0_i32_2 = arith.constant 0 : i32
    return %c0_i32, %c0_i32_0, %c0_i32_1 : i32, i32, i32
  }
  func.func @transform_17(%arg0: i32) -> (i32, i32, i32) {
    %c0_i32 = arith.constant 0 : i32
    %c0_i32_0 = arith.constant 0 : i32
    %c0_i32_1 = arith.constant 0 : i32
    %c0_i32_2 = arith.constant 0 : i32
    return %c0_i32, %c0_i32_0, %c0_i32_1 : i32, i32, i32
  }
  func.func @transform_18(%arg0: i32) -> (i32, i32) {
    %c0_i32 = arith.constant 0 : i32
    %c0_i32_0 = arith.constant 0 : i32
    %c0_i32_1 = arith.constant 0 : i32
    return %c0_i32, %c0_i32_0 : i32, i32
  }
  func.func @transform_19(%arg0: i32) -> (i32, i32) {
    %c0_i32 = arith.constant 0 : i32
    %c0_i32_0 = arith.constant 0 : i32
    %c0_i32_1 = arith.constant 0 : i32
    return %c0_i32, %c0_i32_0 : i32, i32
  }
  func.func @transform_20(%arg0: i32) -> (i32, i32, i32) {
    %c0_i32 = arith.constant 0 : i32
    %c0_i32_0 = arith.constant 0 : i32
    %c0_i32_1 = arith.constant 0 : i32
    return %arg0, %c0_i32, %c0_i32_0 : i32, i32, i32
  }
}

</mosaic_0001>

<bundles_post_ra>
// kernel: decoder_forward.1
= control target key start
LH: loop header
LB: loop body
LE: loop exit
PB: predicated region body
PF: predicated region fallthrough
CT: control target
= control target key end

     0   :  { %s12345_s0 = inlined_call_operand.hbm [shape: f32[2,8,32], index: 0, kind: input, shape index: {}]   ;;  %s12346_s1 = inlined_call_operand.hbm [shape: f32[2,8,32], index: 1, kind: input, shape index: {}]   ;;  %s12347_s2 = inlined_call_operand.hbm [shape: f32[2,32,96], index: 2, kind: input, shape index: {}]   ;;  %s12348_s3 = inlined_call_operand.hbm [shape: f32[2,1,96], index: 3, kind: input, shape index: {}]   ;;  %s12349_s4 = inlined_call_operand.hbm [shape: f32[2,32,32], index: 4, kind: input, shape index: {}]   ;;  %s12350_s5 = inlined_call_operand.hbm [shape: f32[2,1,32], index: 5, kind: input, shape index: {}]   ;;  %s12351_s6 = inlined_call_operand.hbm [shape: f32[2,32,32], index: 6, kind: input, shape index: {}]   ;;  %s12352_s7 = inlined_call_operand.hbm [shape: f32[2,1,32], index: 7, kind: input, shape index: {}]   ;;  %s12353_s8 = inlined_call_operand.hbm [shape: f32[2,32,64], index: 8, kind: input, shape index: {}]   ;;  %s12354_s9 = inlined_call_operand.hbm [shape: f32[2,1,64], index: 9, kind: input, shape index: {}]   ;;  %s12355_s10 = inlined_call_operand.hbm [shape: f32[2,32,32], index: 10, kind: input, shape index: {}]   ;;  %s12356_s11 = inlined_call_operand.hbm [shape: f32[2,1,32], index: 11, kind: input, shape index: {}]   ;;  %s12357_s12 = inlined_call_operand.hbm [shape: f32[2,32,2048], index: 12, kind: input, shape index: {}]   ;;  %s12358_s13 = inlined_call_operand.hbm [shape: f32[2,1,2048], index: 13, kind: input, shape index: {}]   ;;  %s12359_s14 = inlined_call_operand.hbm [shape: f32[2,2048,32], index: 14, kind: input, shape index: {}]   ;;  %s12360_s15 = inlined_call_operand.hbm [shape: f32[2,1,32], index: 15, kind: input, shape index: {}]   ;;  %s12361_s16 = inlined_call_operand.hbm [shape: f32[2,1,32], index: 16, kind: input, shape index: {}]   ;;  %s12362_s17 = inlined_call_operand.hbm [shape: f32[2,1,32], index: 17, kind: input, shape index: {}]   ;;  %s12363_s18 = inlined_call_operand.hbm [shape: f32[32,64], index: 18, kind: input, shape index: {}]   ;;  %s12364_s19 = inlined_call_operand.hbm [shape: f32[1,64], index: 19, kind: input, shape index: {}]   ;;  %s12365_s20 = inlined_call_operand.hbm [shape: f32[2,8,64], index: 20, kind: output, shape index: {}]  }
   0x1   :  { %12395 = sst [smem:[#allocation54_spill]] %s12345_s0 }
   0x2   :  { %12396 = sst [smem:[#allocation55_spill]] %s12346_s1 }
   0x3   :  { %12397 = sst [smem:[#allocation56_spill]] %s12347_s2 }
   0x4   :  { %12398 = sst [smem:[#allocation57_spill]] %s12348_s3 }
   0x5   :  { %12399 = sst [smem:[#allocation58_spill]] %s12349_s4 }
   0x6   :  { %12400 = sst [smem:[#allocation59_spill]] %s12350_s5 }
   0x7   :  { %12401 = sst [smem:[#allocation60_spill]] %s12351_s6 }
   0x8   :  { %12402 = sst [smem:[#allocation61_spill]] %s12352_s7 }
   0x9   :  { %12403 = sst [smem:[#allocation62_spill]] %s12353_s8 }
   0xa   :  { %12404 = sst [smem:[#allocation63_spill]] %s12354_s9 }
   0xb   :  { %12405 = sst [smem:[#allocation64_spill]] %s12355_s10 }
   0xc   :  { %12406 = sst [smem:[#allocation65_spill]] %s12356_s11 }
   0xd   :  { %12407 = sst [smem:[#allocation66_spill]] %s12357_s12 }
   0xe   :  { %12408 = sst [smem:[#allocation67_spill]] %s12358_s13 }
   0xf   :  { %12409 = sst [smem:[#allocation68_spill]] %s12361_s16 }
  0x10   :  { %12410 = sst [smem:[#allocation69_spill]] %s12363_s18 }
  0x11   :  { %12411 = sst [smem:[#allocation70_spill]] %s12364_s19 }
  0x12   :  { %12412 = sst [smem:[#allocation71_spill]] %s12365_s20 }
  0x13   :  { %25 = vsyncpa [#allocation3], 0 }
  0x14   :  { %27 = vsyncpa [#allocation3 + $0x1], 0 }
  0x15   :  { %28 = vsyncpa [#allocation6], 0 }
  0x16   :  { %30 = vsyncpa [#allocation6 + $0x1], 0 }
  0x17   :  { %31 = vsyncpa [#allocation9], 0 }
  0x18   :  { %32 = vsyncpa [#allocation12], 0 }
  0x19   :  { %33 = vsyncpa [#allocation15], 0 }
  0x1a   :  { %34 = vsyncpa [#allocation18], 0 }
  0x1b   :  { %35 = vsyncpa [#allocation21], 0 }
  0x1c   :  { %36 = vsyncpa [#allocation24], 0 }
  0x1d   :  { %37 = vsyncpa [#allocation27], 0 }
  0x1e   :  { %38 = vsyncpa [#allocation30], 0 }
  0x1f   :  { %39 = vsyncpa [#allocation33], 0 }
  0x20   :  { %40 = vsyncpa [#allocation4], 0 }
  0x21   :  { %42 = vsyncpa [#allocation4 + $0x1], 0  ;;  %s11075_s1 = smov 0   ;;  %s11077_s22 = smov 0  }
  0x22   :  { %s11079_s23 = smov 0   ;;  %s11081_s24 = smov 0  }
  0x23 LB: > { %12413 = sst [smem:[#allocation48_spill]] %s10912_s1  ;;  %s10926_s2 = smov [#allocation7]   ;;  %s10924_s24 = sphi %s11081_s24, %s12491_s24   ;;  %s10920_s23 = sphi %s11079_s23, %s11542_s23   ;;  %s10916_s22 = sphi %s11077_s22, %s12490_s22   ;;  %s10912_s1 = sphi %s11075_s1, %s12489_s1  }
  0x24   : > { %12414 = sst [smem:[#allocation49_spill]] %s10916_s22  ;;  %s521_s25 = sshll.u32 %s10926_s2, 4  ;;  %s11101_s25 = int_to_ptr.vmem [resolvable:$true] %s521_s25 }
  0x25   : > { %12415 = sst [smem:[#allocation50_spill]] %s10920_s23  ;;  %s11096_s3 = sadd.s32 4294967295, %s10924_s24  }
  0x26   : > { %12416 = sst [smem:[#allocation51_spill]] %s10924_s24  ;;  %p8106_p0 = scmp.ge.s32.totalorder %s10924_s24, 1 }
  0x27   : > { %12417 = sst [smem:[#allocation52_spill]] %s11096_s3  ;;  %p12383_p1 = scmp.eq.s32.totalorder %s11096_s3, 0 }
  0x28   : > { %p509_p2 = scmp.lt.s32.totalorder %s10924_s24, 3  ;;  %s10927_s27 = smov [#allocation8]  }
  0x29   : > { %s534_s28 = sshll.u32 %s10927_s27, 4  ;;  %s10928_s29 = smov [#allocation11]   ;;  %s11116_s28 = int_to_ptr.vmem [resolvable:$true] %s534_s28 }
  0x2a   : > { %p11103_p3 = pnand %p8106_p0, %p509_p2  ;;  %s11118_s30 = sshll.u32 %s10928_s29, 4  ;;  %s561_s30 = int_to_ptr.vmem [resolvable:$true] %s11118_s30 }
  0x2b   : > { %s12421_s2 = sld [smem:[#allocation56_spill]] }
  0x2c   : > { %s12418_s26 = scalar_select %p11103_p3, 1, 0 }
  0x2d   : > { %p9992_p5 = pneg %p11103_p3 }
  0x2e   : > { %12419 = sst [smem:[#allocation53_spill]] %s12418_s26 }
  0x2f   : > { %p11112_p6 = pnand %p9992_p5, %p12383_p1 }
  0x31   : > { %s10250_s20 = scalar_lea.hbm %s12421_s2, 1024  ;;  %p11128_p8 = pneg %p11112_p6 }
  0x32   : > { %p10251_p7 = scmp.ne.s32.totalorder %s12421_s2, %s10250_s20  ;;  %p10257_p11 = scmp.lt.u32.totalorder %s10250_s20, %s12421_s2 }
  0x34   : > { %p10253_p9 = pnand %p11128_p8, %p10251_p7 }
  0x36   : > { %p10254_p10 = pneg %p10253_p9 }
  0x38   : > { %p10259_p12 = pnand %p10257_p11, %p10254_p10 }
  0x3a   : > { %10262 = shalt.err (!%p10259_p12)
}
  0x3b   : > { %s10263_s1 = scalar_lea.vmem %s11101_s25, 1024  ;;  %p10271_p5 = scmp.lt.s32.totalorder %s11101_s25, %s11101_s25 }
  0x3c   : > { %p10264_p13 = scmp.ne.s32.totalorder %s11101_s25, %s10263_s1  ;;  %p10272_p4 = scmp.lt.s32.totalorder %s10263_s1, %s10263_s1 }
  0x3e   : > { %p10266_p0 = pnand %p10264_p13, %p11128_p8  ;;  %p10273_p7 = por %p10272_p4, %p10271_p5 }
  0x40   : > { %p10267_p2 = pneg %p10266_p0 }
  0x42   : > { %p10274_p9 = pnand %p10273_p7, %p10267_p2 }
  0x44   : > { %10277 = shalt.err (!%p10274_p9)
}
  0x45   : > { %s12385_s26 = smov 128   ;;  %s12387_s20 = smov 8  }
  0x46   : > { %9995 = dma.hbm_to_vmem [thread:$0]  (!%p11112_p6), %s12421_s2, 1024, %s11101_s25, [#allocation6], %s12385_s26, %s12385_s26, %s12387_s20  }
  0x47   : > { %s12423_s22 = sld [smem:[#allocation57_spill]] }
  0x4d   : > { %s12424_s19 = smov %s12423_s22  ;;  %s10278_s1 = scalar_lea.hbm %s12423_s22, 32 }
  0x4e   : > { %p10279_p4 = scmp.ne.s32.totalorder %s12424_s19, %s10278_s1  ;;  %p10285_p12 = scmp.lt.u32.totalorder %s10278_s1, %s12424_s19 }
  0x50   : > { %p10281_p10 = pnand %p10279_p4, %p11128_p8 }
  0x52   : > { %p10282_p11 = pneg %p10281_p10 }
  0x54   : > { %p10287_p13 = pnand %p10285_p12, %p10282_p11 }
  0x56   : > { %10290 = shalt.err (!%p10287_p13)
}
  0x57   : > { %s10291_s25 = scalar_lea.vmem %s11116_s28, 32  ;;  %p10299_p7 = scmp.lt.s32.totalorder %s11116_s28, %s11116_s28 }
  0x58   : > { %p10292_p0 = scmp.ne.s32.totalorder %s11116_s28, %s10291_s25  ;;  %p10300_p9 = scmp.lt.s32.totalorder %s10291_s25, %s10291_s25 }
  0x5a   : > { %p10294_p2 = pnand %p10292_p0, %p11128_p8  ;;  %p10301_p4 = por %p10300_p9, %p10299_p7 }
  0x5c   : > { %p10295_p5 = pneg %p10294_p2 }
  0x5e   : > { %p10302_p10 = pnand %p10301_p4, %p10295_p5 }
  0x60   : > { %10305 = shalt.err (!%p10302_p10)
}
  0x61   : > { %s12389_s22 = smov 16   ;;  %s12390_s16 = smov 1  }
  0x62   : > { %9998 = dma.hbm_to_vmem [thread:$0]  (!%p11112_p6), %s12424_s19, 32, %s11116_s28, [#allocation9], %s12389_s22, %s12389_s22, %s12390_s16  }
  0x63   : > { %s12425_s5 = sld [smem:[#allocation59_spill]] }
  0x69   : > { %s10306_s0 = scalar_lea.hbm %s12425_s5, 32 }
  0x6a   : > { %p10307_p11 = scmp.ne.s32.totalorder %s12425_s5, %s10306_s0  ;;  %p10313_p0 = scmp.lt.u32.totalorder %s10306_s0, %s12425_s5 }
  0x6c   : > { %p10309_p12 = pnand %p10307_p11, %p11128_p8 }
  0x6e   : > { %p10310_p13 = pneg %p10309_p12 }
  0x70   : > { %p10315_p2 = pnand %p10313_p0, %p10310_p13 }
  0x72   : > { %10318 = shalt.err (!%p10315_p2)
}
  0x73   : > { %s10319_s18 = scalar_lea.vmem %s561_s30, 32  ;;  %p10327_p4 = scmp.lt.s32.totalorder %s561_s30, %s561_s30 }
  0x74   : > { %p10320_p5 = scmp.ne.s32.totalorder %s561_s30, %s10319_s18  ;;  %p10328_p10 = scmp.lt.s32.totalorder %s10319_s18, %s10319_s18 }
  0x76   : > { %p10322_p7 = pnand %p10320_p5, %p11128_p8  ;;  %p10329_p1 = por %p10328_p10, %p10327_p4 }
  0x78   : > { %p10323_p9 = pneg %p10322_p7 }
  0x7a   : > { %p10330_p3 = pnand %p10329_p1, %p10323_p9 }
  0x7c   : > { %10333 = shalt.err (!%p10330_p3)
}
  0x7d   : > { %10004 = dma.hbm_to_vmem [thread:$0]  (!%p11112_p6), %s12425_s5, 32, %s561_s30, [#allocation12], %s12389_s22, %s12389_s22, %s12390_s16  }
  0x7e   : > { %s10933_s24 = smov [#allocation14]   ;;  %s10934_s0 = smov [#allocation17]  }
  0x7f   : > { %s586_s3 = sshll.u32 %s10933_s24, 4  ;;  %s612_s21 = sshll.u32 %s10934_s0, 4  ;;  %s587_s3 = int_to_ptr.vmem [resolvable:$true] %s586_s3  ;;  %s613_s21 = int_to_ptr.vmem [resolvable:$true] %s612_s21 }
  0x80   : > { %s12426_s7 = sld [smem:[#allocation61_spill]] }
  0x86   : > { %s10334_s25 = scalar_lea.hbm %s12426_s7, 32 }
  0x87   : > { %p10335_p1 = scmp.ne.s32.totalorder %s12426_s7, %s10334_s25  ;;  %p10341_p12 = scmp.lt.u32.totalorder %s10334_s25, %s12426_s7 }
  0x89   : > { %p10337_p3 = pnand %p10335_p1, %p11128_p8 }
  0x8b   : > { %p10338_p11 = pneg %p10337_p3 }
  0x8d   : > { %p10343_p13 = pnand %p10341_p12, %p10338_p11 }
  0x8f   : > { %10346 = shalt.err (!%p10343_p13)
}
  0x90   : > { %s10347_s30 = scalar_lea.vmem %s587_s3, 32  ;;  %p10355_p7 = scmp.lt.s32.totalorder %s587_s3, %s587_s3 }
  0x91   : > { %p10348_p0 = scmp.ne.s32.totalorder %s587_s3, %s10347_s30  ;;  %p10356_p9 = scmp.lt.s32.totalorder %s10347_s30, %s10347_s30 }
  0x93   : > { %p10350_p2 = pnand %p10348_p0, %p11128_p8  ;;  %p10357_p4 = por %p10356_p9, %p10355_p7 }
  0x95   : > { %p10351_p5 = pneg %p10350_p2 }
  0x97   : > { %p10358_p10 = pnand %p10357_p4, %p10351_p5 }
  0x99   : > { %10361 = shalt.err (!%p10358_p10)
}
  0x9a   : > { %10010 = dma.hbm_to_vmem [thread:$0]  (!%p11112_p6), %s12426_s7, 32, %s587_s3, [#allocation15], %s12389_s22, %s12389_s22, %s12390_s16  }
  0x9b   : > { %s12427_s9 = sld [smem:[#allocation63_spill]] }
  0xa1   : > { %s10362_s0 = scalar_lea.hbm %s12427_s9, 32 }
  0xa2   : > { %p10363_p1 = scmp.ne.s32.totalorder %s12427_s9, %s10362_s0  ;;  %p10369_p12 = scmp.lt.u32.totalorder %s10362_s0, %s12427_s9 }
  0xa4   : > { %p10365_p3 = pnand %p10363_p1, %p11128_p8 }
  0xa6   : > { %p10366_p11 = pneg %p10365_p3 }
  0xa8   : > { %p10371_p13 = pnand %p10369_p12, %p10366_p11 }
  0xaa   : > { %10374 = shalt.err (!%p10371_p13)
}
  0xab   : > { %s10375_s28 = scalar_lea.vmem %s613_s21, 32  ;;  %p10383_p7 = scmp.lt.s32.totalorder %s613_s21, %s613_s21 }
  0xac   : > { %p10376_p0 = scmp.ne.s32.totalorder %s613_s21, %s10375_s28  ;;  %p10384_p9 = scmp.lt.s32.totalorder %s10375_s28, %s10375_s28 }
  0xae   : > { %p10378_p2 = pnand %p10376_p0, %p11128_p8  ;;  %p10385_p4 = por %p10384_p9, %p10383_p7 }
  0xb0   : > { %p10379_p5 = pneg %p10378_p2 }
  0xb2   : > { %p10386_p10 = pnand %p10385_p4, %p10379_p5 }
  0xb4   : > { %10389 = shalt.err (!%p10386_p10)
}
  0xb5   : > { %10016 = dma.hbm_to_vmem [thread:$0]  (!%p11112_p6), %s12427_s9, 32, %s613_s21, [#allocation18], %s12389_s22, %s12389_s22, %s12390_s16  }
  0xb6   : > { %s10935_s26 = smov [#allocation20]   ;;  %s10936_s23 = smov [#allocation23]  }
  0xb7   : > { %s638_s20 = sshll.u32 %s10935_s26, 4  ;;  %s664_s24 = sshll.u32 %s10936_s23, 4  ;;  %s639_s20 = int_to_ptr.vmem [resolvable:$true] %s638_s20  ;;  %s665_s24 = int_to_ptr.vmem [resolvable:$true] %s664_s24 }
  0xb8   : > { %s12428_s11 = sld [smem:[#allocation65_spill]] }
  0xbe   : > { %s10390_s1 = scalar_lea.hbm %s12428_s11, 32 }
  0xbf   : > { %p10391_p1 = scmp.ne.s32.totalorder %s12428_s11, %s10390_s1  ;;  %p10397_p12 = scmp.lt.u32.totalorder %s10390_s1, %s12428_s11 }
  0xc1   : > { %p10393_p3 = pnand %p10391_p1, %p11128_p8 }
  0xc3   : > { %p10394_p11 = pneg %p10393_p3 }
  0xc5   : > { %p10399_p13 = pnand %p10397_p12, %p10394_p11 }
  0xc7   : > { %10402 = shalt.err (!%p10399_p13)
}
  0xc8   : > { %s10403_s21 = scalar_lea.vmem %s639_s20, 32  ;;  %p10411_p7 = scmp.lt.s32.totalorder %s639_s20, %s639_s20 }
  0xc9   : > { %p10404_p0 = scmp.ne.s32.totalorder %s639_s20, %s10403_s21  ;;  %p10412_p9 = scmp.lt.s32.totalorder %s10403_s21, %s10403_s21 }
  0xcb   : > { %p10406_p2 = pnand %p10404_p0, %p11128_p8  ;;  %p10413_p4 = por %p10412_p9, %p10411_p7 }
  0xcd   : > { %p10407_p5 = pneg %p10406_p2 }
  0xcf   : > { %p10414_p10 = pnand %p10413_p4, %p10407_p5 }
  0xd1   : > { %10417 = shalt.err (!%p10414_p10)
}
  0xd2   : > { %10022 = dma.hbm_to_vmem [thread:$0]  (!%p11112_p6), %s12428_s11, 32, %s639_s20, [#allocation21], %s12389_s22, %s12389_s22, %s12390_s16  }
  0xd3   : > { %s12429_s13 = sld [smem:[#allocation67_spill]] }
  0xd9   : > { %s10418_s29 = scalar_lea.hbm %s12429_s13, 512 }
  0xda   : > { %p10419_p1 = scmp.ne.s32.totalorder %s12429_s13, %s10418_s29  ;;  %p10425_p12 = scmp.lt.u32.totalorder %s10418_s29, %s12429_s13 }
  0xdc   : > { %p10421_p3 = pnand %p10419_p1, %p11128_p8 }
  0xde   : > { %p10422_p11 = pneg %p10421_p3 }
  0xe0   : > { %p10427_p13 = pnand %p10425_p12, %p10422_p11 }
  0xe2   : > { %10430 = shalt.err (!%p10427_p13)
}
  0xe3   : > { %s10431_s3 = scalar_lea.vmem %s665_s24, 512  ;;  %p10439_p7 = scmp.lt.s32.totalorder %s665_s24, %s665_s24 }
  0xe4   : > { %p10432_p0 = scmp.ne.s32.totalorder %s665_s24, %s10431_s3  ;;  %p10440_p9 = scmp.lt.s32.totalorder %s10431_s3, %s10431_s3 }
  0xe6   : > { %p10434_p2 = pnand %p10432_p0, %p11128_p8  ;;  %p10441_p4 = por %p10440_p9, %p10439_p7 }
  0xe8   : > { %p10435_p5 = pneg %p10434_p2 }
  0xea   : > { %p10442_p10 = pnand %p10441_p4, %p10435_p5 }
  0xec   : > { %10445 = shalt.err (!%p10442_p10)
}
  0xed   : > { %s10937_s20 = smov 256   ;;  %s10938_s26 = smov [#allocation26]  }
  0xee   : > { %10028 = dma.hbm_to_vmem [thread:$0]  (!%p11112_p6), %s12429_s13, 512, %s665_s24, [#allocation24], %s10937_s20, %s10937_s20, %s12389_s22  }
  0xef   : > { %s690_s23 = sshll.u32 %s10938_s26, 4  ;;  %s10939_s0 = smov [#allocation29]   ;;  %s691_s23 = int_to_ptr.vmem [resolvable:$true] %s690_s23 }
  0xf0   : > { %s716_s29 = sshll.u32 %s10939_s0, 4  ;;  %s10446_s18 = scalar_lea.hbm %s12360_s15, 32  ;;  %s11282_s29 = int_to_ptr.vmem [resolvable:$true] %s716_s29 }
  0xf1   : > { %p10447_p1 = scmp.ne.s32.totalorder %s12360_s15, %s10446_s18  ;;  %p10453_p12 = scmp.lt.u32.totalorder %s10446_s18, %s12360_s15 }
  0xf3   : > { %p10449_p3 = pnand %p10447_p1, %p11128_p8 }
  0xf5   : > { %p10450_p11 = pneg %p10449_p3 }
  0xf7   : > { %p10455_p13 = pnand %p10453_p12, %p10450_p11 }
  0xf9   : > { %10458 = shalt.err (!%p10455_p13)
}
  0xfa   : > { %s10459_s20 = scalar_lea.vmem %s691_s23, 32  ;;  %p10467_p7 = scmp.lt.s32.totalorder %s691_s23, %s691_s23 }
  0xfb   : > { %p10460_p0 = scmp.ne.s32.totalorder %s691_s23, %s10459_s20  ;;  %p10468_p9 = scmp.lt.s32.totalorder %s10459_s20, %s10459_s20 }
  0xfd   : > { %p10462_p2 = pnand %p10460_p0, %p11128_p8  ;;  %p10469_p4 = por %p10468_p9, %p10467_p7 }
  0xff   : > { %p10463_p5 = pneg %p10462_p2 }
 0x101   : > { %p10470_p10 = pnand %p10469_p4, %p10463_p5 }
 0x103   : > { %10473 = shalt.err (!%p10470_p10)
}
 0x104   : > { %10034 = dma.hbm_to_vmem [thread:$0]  (!%p11112_p6), %s12360_s15, 32, %s691_s23, [#allocation27], %s12389_s22, %s12389_s22, %s12390_s16  }
 0x105   : > { %s10474_s25 = scalar_lea.hbm %s12362_s17, 32 }
 0x106   : > { %p10475_p1 = scmp.ne.s32.totalorder %s12362_s17, %s10474_s25  ;;  %p10481_p12 = scmp.lt.u32.totalorder %s10474_s25, %s12362_s17 }
 0x108   : > { %p10477_p3 = pnand %p10475_p1, %p11128_p8 }
 0x10a   : > { %p10478_p11 = pneg %p10477_p3 }
 0x10c   : > { %p10483_p13 = pnand %p10481_p12, %p10478_p11 }
 0x10e   : > { %10486 = shalt.err (!%p10483_p13)
}
 0x10f   : > { %s10487_s23 = scalar_lea.vmem %s11282_s29, 32  ;;  %p10495_p7 = scmp.lt.s32.totalorder %s11282_s29, %s11282_s29 }
 0x110   : > { %p10488_p0 = scmp.ne.s32.totalorder %s11282_s29, %s10487_s23  ;;  %p10496_p9 = scmp.lt.s32.totalorder %s10487_s23, %s10487_s23 }
 0x112   : > { %p10490_p2 = pnand %p10488_p0, %p11128_p8  ;;  %p10497_p4 = por %p10496_p9, %p10495_p7 }
 0x114   : > { %p10491_p5 = pneg %p10490_p2 }
 0x116   : > { %p10498_p10 = pnand %p10497_p4, %p10491_p5 }
 0x118   : > { %10501 = shalt.err (!%p10498_p10)
}
 0x119   : > { %10040 = dma.hbm_to_vmem [thread:$0]  (!%p11112_p6), %s12362_s17, 32, %s11282_s29, [#allocation30], %s12389_s22, %s12389_s22, %s12390_s16  }
 0x11a   : > { %s10940_s30 = smov [#allocation10]   ;;  %s10941_s0 = smov [#allocation13]  }
 0x11b   : > { %s547_s26 = sshll.u32 %s10940_s30, 4  ;;  %s573_s1 = sshll.u32 %s10941_s0, 4  ;;  %s548_s26 = int_to_ptr.vmem [resolvable:$true] %s547_s26  ;;  %s11331_s1 = int_to_ptr.vmem [resolvable:$true] %s573_s1 }
 0x11c   : > { %s12430_s28 = sld [smem:[#allocation58_spill]] }
 0x122   : > { %s10502_s3 = scalar_lea.hbm %s12430_s28, 1024 }
 0x123   : > { %p10503_p1 = scmp.ne.s32.totalorder %s12430_s28, %s10502_s3  ;;  %p10509_p12 = scmp.lt.u32.totalorder %s10502_s3, %s12430_s28 }
 0x125   : > { %p10505_p3 = pnand %p10503_p1, %p11128_p8 }
 0x127   : > { %p10506_p11 = pneg %p10505_p3 }
 0x129   : > { %p10511_p13 = pnand %p10509_p12, %p10506_p11 }
 0x12b   : > { %10514 = shalt.err (!%p10511_p13)
}
 0x12c   : > { %s10515_s20 = scalar_lea.vmem %s548_s26, 1024  ;;  %p10523_p7 = scmp.lt.s32.totalorder %s548_s26, %s548_s26 }
 0x12d   : > { %p10516_p0 = scmp.ne.s32.totalorder %s548_s26, %s10515_s20  ;;  %p10524_p9 = scmp.lt.s32.totalorder %s10515_s20, %s10515_s20 }
 0x12f   : > { %p10518_p2 = pnand %p10516_p0, %p11128_p8  ;;  %p10525_p4 = por %p10524_p9, %p10523_p7 }
 0x131   : > { %p10519_p5 = pneg %p10518_p2 }
 0x133   : > { %p10526_p10 = pnand %p10525_p4, %p10519_p5 }
 0x135   : > { %10529 = shalt.err (!%p10526_p10)
}
 0x136   : > { %s12431_s30 = smov 8   ;;  %s12432_s0 = smov 128  }
 0x137   : > { %10001 = dma.hbm_to_vmem [thread:$0]  (!%p11112_p6), %s12430_s28, 1024, %s548_s26, [#allocation9], %s12432_s0, %s12432_s0, %s12431_s30  }
 0x138   : > { %s12433_s6 = sld [smem:[#allocation60_spill]] }
 0x13e   : > { %s10530_s23 = scalar_lea.hbm %s12433_s6, 1024 }
 0x13f   : > { %p10531_p1 = scmp.ne.s32.totalorder %s12433_s6, %s10530_s23  ;;  %p10537_p12 = scmp.lt.u32.totalorder %s10530_s23, %s12433_s6 }
 0x141   : > { %p10533_p3 = pnand %p10531_p1, %p11128_p8 }
 0x143   : > { %p10534_p11 = pneg %p10533_p3 }
 0x145   : > { %p10539_p13 = pnand %p10537_p12, %p10534_p11 }
 0x147   : > { %10542 = shalt.err (!%p10539_p13)
}
 0x148   : > { %s10543_s26 = scalar_lea.vmem %s11331_s1, 1024  ;;  %p10551_p7 = scmp.lt.s32.totalorder %s11331_s1, %s11331_s1 }
 0x149   : > { %p10544_p0 = scmp.ne.s32.totalorder %s11331_s1, %s10543_s26  ;;  %p10552_p9 = scmp.lt.s32.totalorder %s10543_s26, %s10543_s26 }
 0x14b   : > { %p10546_p2 = pnand %p10544_p0, %p11128_p8  ;;  %p10553_p4 = por %p10552_p9, %p10551_p7 }
 0x14d   : > { %p10547_p5 = pneg %p10546_p2 }
 0x14f   : > { %p10554_p10 = pnand %p10553_p4, %p10547_p5 }
 0x151   : > { %10557 = shalt.err (!%p10554_p10)
}
 0x152   : > { %10007 = dma.hbm_to_vmem [thread:$0]  (!%p11112_p6), %s12433_s6, 1024, %s11331_s1, [#allocation12], %s12432_s0, %s12432_s0, %s12431_s30  }
 0x153   : > { %s10942_s18 = smov [#allocation16]   ;;  %s10943_s21 = smov [#allocation19]  }
 0x154   : > { %s599_s3 = sshll.u32 %s10942_s18, 4  ;;  %s625_s23 = sshll.u32 %s10943_s21, 4  ;;  %s600_s3 = int_to_ptr.vmem [resolvable:$true] %s599_s3  ;;  %s11380_s23 = int_to_ptr.vmem [resolvable:$true] %s625_s23 }
 0x155   : > { %s12434_s8 = sld [smem:[#allocation62_spill]] }
 0x15b   : > { %s10558_s20 = scalar_lea.hbm %s12434_s8, 1024 }
 0x15c   : > { %p10559_p1 = scmp.ne.s32.totalorder %s12434_s8, %s10558_s20  ;;  %p10565_p12 = scmp.lt.u32.totalorder %s10558_s20, %s12434_s8 }
 0x15e   : > { %p10561_p3 = pnand %p10559_p1, %p11128_p8 }
 0x160   : > { %p10562_p11 = pneg %p10561_p3 }
 0x162   : > { %p10567_p13 = pnand %p10565_p12, %p10562_p11 }
 0x164   : > { %10570 = shalt.err (!%p10567_p13)
}
 0x165   : > { %s10571_s25 = scalar_lea.vmem %s600_s3, 1024  ;;  %p10579_p7 = scmp.lt.s32.totalorder %s600_s3, %s600_s3 }
 0x166   : > { %p10572_p0 = scmp.ne.s32.totalorder %s600_s3, %s10571_s25  ;;  %p10580_p9 = scmp.lt.s32.totalorder %s10571_s25, %s10571_s25 }
 0x168   : > { %p10574_p2 = pnand %p10572_p0, %p11128_p8  ;;  %p10581_p4 = por %p10580_p9, %p10579_p7 }
 0x16a   : > { %p10575_p5 = pneg %p10574_p2 }
 0x16c   : > { %p10582_p10 = pnand %p10581_p4, %p10575_p5 }
 0x16e   : > { %10585 = shalt.err (!%p10582_p10)
}
 0x16f   : > { %10013 = dma.hbm_to_vmem [thread:$0]  (!%p11112_p6), %s12434_s8, 1024, %s600_s3, [#allocation15], %s12432_s0, %s12432_s0, %s12431_s30  }
 0x170   : > { %s12435_s10 = sld [smem:[#allocation64_spill]] }
 0x176   : > { %s10586_s29 = scalar_lea.hbm %s12435_s10, 1024 }
 0x177   : > { %p10587_p1 = scmp.ne.s32.totalorder %s12435_s10, %s10586_s29  ;;  %p10593_p12 = scmp.lt.u32.totalorder %s10586_s29, %s12435_s10 }
 0x179   : > { %p10589_p3 = pnand %p10587_p1, %p11128_p8 }
 0x17b   : > { %p10590_p11 = pneg %p10589_p3 }
 0x17d   : > { %p10595_p13 = pnand %p10593_p12, %p10590_p11 }
 0x17f   : > { %10598 = shalt.err (!%p10595_p13)
}
 0x180   : > { %s10599_s3 = scalar_lea.vmem %s11380_s23, 1024  ;;  %p10607_p7 = scmp.lt.s32.totalorder %s11380_s23, %s11380_s23 }
 0x181   : > { %p10600_p0 = scmp.ne.s32.totalorder %s11380_s23, %s10599_s3  ;;  %p10608_p9 = scmp.lt.s32.totalorder %s10599_s3, %s10599_s3 }
 0x183   : > { %p10602_p2 = pnand %p10600_p0, %p11128_p8  ;;  %p10609_p4 = por %p10608_p9, %p10607_p7 }
 0x185   : > { %p10603_p5 = pneg %p10602_p2 }
 0x187   : > { %p10610_p10 = pnand %p10609_p4, %p10603_p5 }
 0x189   : > { %10613 = shalt.err (!%p10610_p10)
}
 0x18a   : > { %10019 = dma.hbm_to_vmem [thread:$0]  (!%p11112_p6), %s12435_s10, 1024, %s11380_s23, [#allocation18], %s12432_s0, %s12432_s0, %s12431_s30  }
 0x18b   : > { %s10944_s18 = smov [#allocation22]   ;;  %s10945_s24 = smov [#allocation25]  }
 0x18c   : > { %s651_s21 = sshll.u32 %s10944_s18, 4  ;;  %s677_s29 = sshll.u32 %s10945_s24, 4  ;;  %s652_s21 = int_to_ptr.vmem [resolvable:$true] %s651_s21  ;;  %s678_s29 = int_to_ptr.vmem [resolvable:$true] %s677_s29 }
 0x18d   : > { %s12436_s12 = sld [smem:[#allocation66_spill]] }
 0x193   : > { %s10614_s22 = scalar_lea.hbm %s12436_s12, 16384 }
 0x194   : > { %p10615_p1 = scmp.ne.s32.totalorder %s12436_s12, %s10614_s22  ;;  %p10621_p12 = scmp.lt.u32.totalorder %s10614_s22, %s12436_s12 }
 0x196   : > { %p10617_p3 = pnand %p10615_p1, %p11128_p8 }
 0x198   : > { %p10618_p11 = pneg %p10617_p3 }
 0x19a   : > { %p10623_p13 = pnand %p10621_p12, %p10618_p11 }
 0x19c   : > { %10626 = shalt.err (!%p10623_p13)
}
 0x19d   : > { %s10627_s23 = scalar_lea.vmem %s652_s21, 16384  ;;  %p10635_p7 = scmp.lt.s32.totalorder %s652_s21, %s652_s21 }
 0x19e   : > { %p10628_p0 = scmp.ne.s32.totalorder %s652_s21, %s10627_s23  ;;  %p10636_p9 = scmp.lt.s32.totalorder %s10627_s23, %s10627_s23 }
 0x1a0   : > { %p10630_p2 = pnand %p10628_p0, %p11128_p8  ;;  %p10637_p4 = por %p10636_p9, %p10635_p7 }
 0x1a2   : > { %p10631_p5 = pneg %p10630_p2 }
 0x1a4   : > { %p10638_p10 = pnand %p10637_p4, %p10631_p5 }
 0x1a6   : > { %10641 = shalt.err (!%p10638_p10)
}
 0x1a7   : > { %s10946_s16 = smov 2048   ;;  %s10642_s26 = scalar_lea.hbm %s12359_s14, 65536 }
 0x1a8   : > { %10025 = dma.hbm_to_vmem [thread:$0]  (!%p11112_p6), %s12436_s12, 16384, %s652_s21, [#allocation21], %s10946_s16, %s10946_s16, %s12432_s0  }
 0x1a9   : > { %p10643_p1 = scmp.ne.s32.totalorder %s12359_s14, %s10642_s26  ;;  %p10649_p12 = scmp.lt.u32.totalorder %s10642_s26, %s12359_s14 }
 0x1ab   : > { %p10645_p3 = pnand %p10643_p1, %p11128_p8 }
 0x1ad   : > { %p10646_p11 = pneg %p10645_p3 }
 0x1af   : > { %p10651_p13 = pnand %p10649_p12, %p10646_p11 }
 0x1b1   : > { %10654 = shalt.err (!%p10651_p13)
}
 0x1b2   : > { %s10655_s23 = scalar_lea.vmem %s678_s29, 65536  ;;  %p10663_p7 = scmp.lt.s32.totalorder %s678_s29, %s678_s29 }
 0x1b3   : > { %p10656_p0 = scmp.ne.s32.totalorder %s678_s29, %s10655_s23  ;;  %p10664_p9 = scmp.lt.s32.totalorder %s10655_s23, %s10655_s23 }
 0x1b5   : > { %p10658_p2 = pnand %p10656_p0, %p11128_p8  ;;  %p10665_p4 = por %p10664_p9, %p10663_p7 }
 0x1b7   : > { %p10659_p5 = pneg %p10658_p2 }
 0x1b9   : > { %p10666_p10 = pnand %p10665_p4, %p10659_p5 }
 0x1bb   : > { %10669 = shalt.err (!%p10666_p10)
}
 0x1bc   : > { %10031 = dma.hbm_to_vmem [thread:$0]  (!%p11112_p6), %s12359_s14, 65536, %s678_s29, [#allocation24], %s12432_s0, %s12432_s0, %s12431_s30  }
 0x1bd   : > { %s10947_s18 = smov [#allocation28]   ;;  %s10948_s24 = smov [#allocation31]  }
 0x1be   : > { %s703_s2 = sshll.u32 %s10947_s18, 4  ;;  %s729_s20 = sshll.u32 %s10948_s24, 4  ;;  %s704_s2 = int_to_ptr.vmem [resolvable:$true] %s703_s2  ;;  %s730_s20 = int_to_ptr.vmem [resolvable:$true] %s729_s20 }
 0x1bf   : > { %s12437_s1 = sld [smem:[#allocation68_spill]] }
 0x1c5   : > { %s12438_s3 = smov %s12437_s1  ;;  %s10670_s25 = scalar_lea.hbm %s12437_s1, 32 }
 0x1c6   : > { %p10671_p1 = scmp.ne.s32.totalorder %s12438_s3, %s10670_s25  ;;  %p10677_p12 = scmp.lt.u32.totalorder %s10670_s25, %s12438_s3 }
 0x1c8   : > { %p10673_p3 = pnand %p10671_p1, %p11128_p8 }
 0x1ca   : > { %p10674_p11 = pneg %p10673_p3 }
 0x1cc   : > { %p10679_p13 = pnand %p10677_p12, %p10674_p11 }
 0x1ce   : > { %10682 = shalt.err (!%p10679_p13)
}
 0x1cf   : > { %s10683_s29 = scalar_lea.vmem %s704_s2, 32  ;;  %p10691_p7 = scmp.lt.s32.totalorder %s704_s2, %s704_s2 }
 0x1d0   : > { %p10684_p0 = scmp.ne.s32.totalorder %s704_s2, %s10683_s29  ;;  %p10692_p9 = scmp.lt.s32.totalorder %s10683_s29, %s10683_s29 }
 0x1d2   : > { %p10686_p2 = pnand %p10684_p0, %p11128_p8  ;;  %p10693_p4 = por %p10692_p9, %p10691_p7 }
 0x1d4   : > { %p10687_p5 = pneg %p10686_p2 }
 0x1d6   : > { %p10694_p10 = pnand %p10693_p4, %p10687_p5 }
 0x1d8   : > { %10697 = shalt.err (!%p10694_p10)
}
 0x1d9   : > { %s12439_s5 = smov 1   ;;  %s12440_s16 = smov 16  }
 0x1da   : > { %10037 = dma.hbm_to_vmem [thread:$0]  (!%p11112_p6), %s12438_s3, 32, %s704_s2, [#allocation27], %s12440_s16, %s12440_s16, %s12439_s5  }
 0x1db   : > { %s12441_s22 = sld [smem:[#allocation69_spill]] }
 0x1e1   : > { %s12442_s25 = smov %s12441_s22  ;;  %s10698_s1 = scalar_lea.hbm %s12441_s22, 512 }
 0x1e2   : > { %p10699_p1 = scmp.ne.s32.totalorder %s12442_s25, %s10698_s1  ;;  %p10705_p12 = scmp.lt.u32.totalorder %s10698_s1, %s12442_s25 }
 0x1e4   : > { %p10701_p3 = pnand %p10699_p1, %p11128_p8 }
 0x1e6   : > { %p10702_p11 = pneg %p10701_p3 }
 0x1e8   : > { %p10707_p13 = pnand %p10705_p12, %p10702_p11 }
 0x1ea   : > { %10710 = shalt.err (!%p10707_p13)
}
 0x1eb   : > { %s10711_s6 = scalar_lea.vmem %s730_s20, 512  ;;  %p10719_p7 = scmp.lt.s32.totalorder %s730_s20, %s730_s20 }
 0x1ec   : > { %p10712_p0 = scmp.ne.s32.totalorder %s730_s20, %s10711_s6  ;;  %p10720_p9 = scmp.lt.s32.totalorder %s10711_s6, %s10711_s6 }
 0x1ee   : > { %p10714_p2 = pnand %p10712_p0, %p11128_p8  ;;  %p10721_p4 = por %p10720_p9, %p10719_p7 }
 0x1f0   : > { %p10715_p5 = pneg %p10714_p2 }
 0x1f2   : > { %p10722_p10 = pnand %p10721_p4, %p10715_p5 }
 0x1f4   : > { %10725 = shalt.err (!%p10722_p10)
}
 0x1f5   : > { %10043 = dma.hbm_to_vmem [thread:$0]  (!%p11112_p6), %s12442_s25, 512, %s730_s20, [#allocation30], %s12432_s0, %s12432_s0, %s12431_s30  }
 0x1f6   : > { %s10949_s5 = smov [#allocation32]   ;;  %s12443_s26 = sld [smem:[#allocation70_spill]] }
 0x1f7   : > { %s743_s16 = sshll.u32 %s10949_s5, 4  ;;  %s744_s16 = int_to_ptr.vmem [resolvable:$true] %s743_s16 }
 0x1fc   : > { %s10726_s22 = scalar_lea.hbm %s12443_s26, 16 }
 0x1fd   : > { %p10727_p1 = scmp.ne.s32.totalorder %s12443_s26, %s10726_s22  ;;  %p10733_p12 = scmp.lt.u32.totalorder %s10726_s22, %s12443_s26 }
 0x1ff   : > { %p10729_p3 = pnand %p10727_p1, %p11128_p8 }
 0x201   : > { %p10730_p11 = pneg %p10729_p3 }
 0x203   : > { %p10735_p13 = pnand %p10733_p12, %p10730_p11 }
 0x205   : > { %10738 = shalt.err (!%p10735_p13)
}
 0x206   : > { %s10739_s30 = scalar_lea.vmem %s744_s16, 16  ;;  %s10746_s0 = scalar_lea.vmem %s744_s16, 32 }
 0x207   : > { %p10740_p0 = scmp.ne.s32.totalorder %s744_s16, %s10739_s30  ;;  %p10747_p7 = scmp.lt.s32.totalorder %s744_s16, %s744_s16 }
 0x208   : > { %p10748_p9 = scmp.lt.s32.totalorder %s10746_s0, %s10739_s30 }
 0x209   : > { %p10742_p2 = pnand %p10740_p0, %p11128_p8 }
 0x20a   : > { %p10749_p4 = por %p10748_p9, %p10747_p7 }
 0x20b   : > { %p10743_p5 = pneg %p10742_p2 }
 0x20d   : > { %p10750_p10 = pnand %p10749_p4, %p10743_p5 }
 0x20f   : > { %10753 = shalt.err (!%p10750_p10)
}
 0x210   : > { %s12444_s7 = sld [smem:[#allocation51_spill]]  ;;  %s12445_s2 = sld [smem:[#allocation50_spill]] }
 0x211   : > { %s12446_s5 = sld [smem:[#allocation49_spill]]  ;;  %s12447_s27 = sld [smem:[#allocation48_spill]] }
 0x212   : > { %s12448_s18 = sld [smem:[#allocation52_spill]]  ;;  %s12457_s10 = sld [smem:[#allocation55_spill]] }
 0x213   : > { %10046 = dma.hbm_to_vmem [thread:$0]  (!%p11112_p6), %s12443_s26, 16, %s744_s16, [#allocation33]  }
 0x216   : > { %s8105_s24 = sadd.s32 4294967294, %s12444_s7   ;;  %s11531_s4 = sadd.s32 1, %s12444_s7  }
 0x217   : > { %s52_s22 = ssub.s32 %s12444_s7, %s11531_s4  ;;  %s55_s1 = sadd.s32 1, %s12445_s2 }
 0x218   : > { %p53_p8 = scmp.eq.s32.totalorder %s52_s22, 0  ;;  %p62_p1 = scmp.ne.s32.totalorder %s12445_s2, %s12446_s5 }
 0x219   : > { %p63_p3 = scmp.eq.s32.totalorder %s12444_s7, 0  ;;  %p68_p11 = scmp.ne.s32.totalorder %s12446_s5, %s12447_s27 }
 0x21a   : > { %s11542_s23 = scalar_select %p53_p8, %s12445_s2, %s55_s1  }
 0x21b   : > { %p11544_p12 = por %p63_p3, %p62_p1  ;;  %p12450_p13 = scmp.eq.s32.totalorder %s12448_s18, 0 }
 0x21c   : > { %p496_p0 = scmp.eq.s32.totalorder %s12448_s18, 1  ;;  %p502_p2 = scmp.eq.s32.totalorder %s8105_s24, 1 }
 0x21d   : > { %p11550_p6 = por %p12450_p13, %p68_p11  ;;  %p10076_p5 = scmp.lt.s32.totalorder %s12444_s7, 2 }
 0x21e   : > { %s754_s29 = sand.u32 1, %s12445_s2   ;;  %p11557_p7 = por %p496_p0, %p62_p1 }
 0x21f   : > { %s12451_s16 = scalar_select %p11550_p6, 1, 0 }
 0x220   : > { %s12452_s30 = scalar_select %p11557_p7, 1, 0 }
 0x221   : > { %p11561_p9 = por %p502_p2, %p68_p11  ;;  %s11565_s20 = sshll.u32 %s754_s29, 3 }
 0x222   : > { %s8127_s6 = sshll.u32 %s12444_s7, 7  ;;  %s12454_s22 = sld [smem:[#allocation54_spill]] }
 0x223   : > { %s12453_s0 = scalar_select %p11561_p9, 1, 0 }
 0x224   : > { %s758_s2 = scalar_lea.vmem [#allocation2], %s11565_s20  ;;  %p11578_p4 = pnand %p10076_p5, %p11544_p12 }
 0x225   : > { %s765_s18 = sshll.u32 %s758_s2, 4  ;;  %s11585_s5 = scalar_lea.hbm %s12457_s10, %s8127_s6  ;;  %s11574_s18 = int_to_ptr.vmem [resolvable:$true] %s765_s18 }
 0x226   : > { %s772_s27 = sand.u32 1, %s12444_s7   ;;  %p10756_p8 = pneg %p11578_p4 }
 0x228   : > { %s12455_s3 = smov %s12454_s22  ;;  %s11571_s1 = scalar_lea.hbm %s12454_s22, %s8127_s6 }
 0x229   : > { %s755_s22 = scalar_lea.sflag [#allocation3], %s754_s29  ;;  %s10754_s11 = scalar_lea.hbm %s11571_s1, 128 }
 0x22a   : > { %p10755_p10 = scmp.ne.s32.totalorder %s11571_s1, %s10754_s11  ;;  %s10759_s12 = scalar_lea.hbm %s12455_s3, 256 }
 0x22b   : > { %p10760_p11 = scmp.lt.u32.totalorder %s11571_s1, %s12455_s3  ;;  %p10761_p12 = scmp.lt.u32.totalorder %s10759_s12, %s10754_s11 }
 0x22c   : > { %p10757_p1 = pnand %p10756_p8, %p10755_p10  ;;  %p10763_p0 = scmp.lt.u32.totalorder %s10754_s11, %s11571_s1 }
 0x22d   : > { %p10762_p13 = por %p10761_p12, %p10760_p11 }
 0x22e   : > { %p10758_p3 = pneg %p10757_p1 }
 0x22f   : > { %p10764_p2 = por %p10763_p0, %p10762_p13 }
 0x231   : > { %p10765_p5 = pnand %p10764_p2, %p10758_p3 }
 0x233   : > { %10768 = shalt.err (!%p10765_p5)
}
 0x234   : > { %s10769_s9 = scalar_lea.vmem %s11574_s18, 128  ;;  %s10950_s29 = smov [#allocation2]  }
 0x235   : > { %p10770_p10 = scmp.ne.s32.totalorder %s11574_s18, %s10769_s9  ;;  %s10774_s6 = sshll.u32 %s10950_s29, 4  ;;  %s10775_s6 = int_to_ptr.vmem [resolvable:$false] %s10774_s6 }
 0x236   : > { %s10776_s13 = scalar_lea.vmem %s10775_s6, 256  ;;  %p10777_p7 = scmp.lt.s32.totalorder %s11574_s18, %s10775_s6 }
 0x237   : > { %p10772_p1 = pnand %p10770_p10, %p10756_p8  ;;  %p10778_p11 = scmp.lt.s32.totalorder %s10776_s13, %s10769_s9 }
 0x239   : > { %p10773_p9 = pneg %p10772_p1  ;;  %p10779_p12 = por %p10778_p11, %p10777_p7 }
 0x23b   : > { %p10780_p13 = pnand %p10779_p12, %p10773_p9 }
 0x23d   : > { %10783 = shalt.err (!%p10780_p13)
}
 0x23e   : > { %10050 = dma.hbm_to_vmem [thread:$0]  (!%p11578_p4), %s11571_s1, 128, %s11574_s18, %s755_s22  }
 0x23f   : > { %s776_s11 = scalar_lea.vmem [#allocation5], %s11565_s20  ;;  %s773_s21 = scalar_lea.sflag [#allocation6], %s772_s27 }
 0x240   : > { %s783_s12 = sshll.u32 %s776_s11, 4  ;;  %s10784_s2 = scalar_lea.hbm %s11585_s5, 128  ;;  %s784_s12 = int_to_ptr.vmem [resolvable:$true] %s783_s12 }
 0x241   : > { %p10785_p7 = scmp.ne.s32.totalorder %s11585_s5, %s10784_s2  ;;  %s10789_s29 = scalar_lea.hbm %s12457_s10, 256 }
 0x242   : > { %p10790_p0 = scmp.lt.u32.totalorder %s11585_s5, %s12457_s10  ;;  %p10791_p2 = scmp.lt.u32.totalorder %s10789_s29, %s10784_s2 }
 0x243   : > { %p10787_p9 = pnand %p10785_p7, %p10756_p8  ;;  %p10793_p10 = scmp.lt.u32.totalorder %s10784_s2, %s11585_s5 }
 0x244   : > { %p10792_p5 = por %p10791_p2, %p10790_p0 }
 0x245   : > { %p10788_p3 = pneg %p10787_p9 }
 0x246   : > { %p10794_p1 = por %p10793_p10, %p10792_p5 }
 0x248   : > { %p10795_p11 = pnand %p10794_p1, %p10788_p3 }
 0x24a   : > { %10798 = shalt.err (!%p10795_p11)
}
 0x24b   : > { %s10799_s7 = scalar_lea.vmem %s784_s12, 128  ;;  %s10951_s20 = smov [#allocation5]  }
 0x24c   : > { %p10800_p12 = scmp.ne.s32.totalorder %s784_s12, %s10799_s7  ;;  %s10804_s1 = sshll.u32 %s10951_s20, 4  ;;  %s10805_s1 = int_to_ptr.vmem [resolvable:$false] %s10804_s1 }
 0x24d   : > { %s10806_s18 = scalar_lea.vmem %s10805_s1, 256  ;;  %p10807_p9 = scmp.lt.s32.totalorder %s784_s12, %s10805_s1 }
 0x24e   : > { %p10802_p13 = pnand %p10800_p12, %p10756_p8  ;;  %p10808_p6 = scmp.lt.s32.totalorder %s10806_s18, %s10799_s7 }
 0x250   : > { %p10803_p7 = pneg %p10802_p13  ;;  %p10809_p0 = por %p10808_p6, %p10807_p9 }
 0x252   : > { %p10810_p2 = pnand %p10809_p0, %p10803_p7 }
 0x254   : > { %10813 = shalt.err (!%p10810_p2)
}
 0x255   : > { %10053 = dma.hbm_to_vmem [thread:$0]  (!%p11578_p4), %s11585_s5, 128, %s784_s12, %s773_s21  }
 0x256   : > { %s12458_s27 = sld [smem:[#allocation53_spill]] }
 0x25c   : > { %p12459_p3 = scmp.ne.s32.totalorder %s12458_s27, 0 }
 0x25d   : > { %s12460_s22 = sld [smem:[#allocation49_spill]] (!%p12459_p3)  ;;  %p12461_p6 = scmp.ne.s32.totalorder (!%p12459_p3), %s12451_s16, 0 }
 0x25e   : > { %792 = sbr.rel (%p12459_p3) target bundleno = 9534 (0x253e), region = 100 }
 0x263   : > { %s11638_s11 = sand.u32 (!%p12459_p3), 1, %s12460_s22  }
 0x264   : > { %s11641_s2 = sshll.u32 (!%p12459_p3), %s11638_s11, 3  ;;  %s795_s8 = scalar_lea.sflag (!%p12459_p3), [#allocation3], %s11638_s11 }
 0x265   : > { %s798_s9 = scalar_lea.vmem [#allocation2], %s11641_s2 }
 0x266   : > { %10859 = dma.done.wait (%p12461_p6), %s795_s8, 128  }
 0x267   : > { %10861 = vsyncadd (%p12461_p6), %s795_s8, 4294967168  ;;  %s12462_s24 = sld [smem:[#allocation52_spill]]  ;;  %s807_s21 = scalar_lea.vmem [#allocation5], %s11641_s2 }
 0x26d   : > { %s803_s5 = sand.u32 1, %s12462_s24  }
 0x26e   : > { %s804_s12 = scalar_lea.sflag [#allocation6], %s803_s5 }
 0x26f   : > { %10863 = dma.done.wait (%p12461_p6), %s804_s12, 128  }
 0x270   : > { %10865 = vsyncadd (%p12461_p6), %s804_s12, 4294967168  ;;  %p12463_p4 = scmp.eq.s32.totalorder %s12462_s24, 0 }
 0x272   : > { %10867 = dma.done.wait (%p12463_p4), [#allocation6], 1024   ;;  %p12464_p8 = pmov %p12463_p4 }
 0x273   : > { %p12465_p5 = pmov %p12463_p4 }
 0x274   : > { %10869 = vsyncadd (%p12464_p8), [#allocation6], 4294966272 }
 0x275   : > { %10871 = dma.done.wait (%p12465_p5), [#allocation9], 1056   ;;  %p12466_p10 = pmov %p12463_p4 }
 0x276   : > { %p12467_p1 = pmov %p12463_p4 }
 0x277   : > { %10873 = vsyncadd (%p12466_p10), [#allocation9], 4294966240 }
 0x278   : > { %10875 = dma.done.wait (%p12467_p1), [#allocation12], 1056   ;;  %p12468_p11 = pmov %p12467_p1 }
 0x279   : > { %p12469_p12 = pmov %p12467_p1 }
 0x27a   : > { %10877 = vsyncadd (%p12468_p11), [#allocation12], 4294966240 }
 0x27b   : > { %10879 = dma.done.wait (%p12469_p12), [#allocation15], 1056   ;;  %p12470_p13 = pmov %p12467_p1 }
 0x27c   : > { %p12471_p7 = pmov %p12467_p1 }
 0x27d   : > { %10881 = vsyncadd (%p12470_p13), [#allocation15], 4294966240 }
 0x27e   : > { %10883 = dma.done.wait (%p12471_p7), [#allocation18], 1056   ;;  %p12472_p9 = pmov %p12467_p1 }
 0x27f   : > { %p12473_p0 = pmov %p12467_p1 }
 0x280   : > { %10885 = vsyncadd (%p12472_p9), [#allocation18], 4294966240 }
 0x281   : > { %10887 = dma.done.wait (%p12473_p0), [#allocation21], 16416   ;;  %p12474_p2 = pmov %p12473_p0 }
 0x282   : > { %p12475_p3 = pmov %p12473_p0 }
 0x283   : > { %10889 = vsyncadd (%p12474_p2), [#allocation21], 4294950880 }
 0x284   : > { %10891 = dma.done.wait (%p12475_p3), [#allocation24], 66048   ;;  %p12476_p6 = pmov %p12473_p0 }
 0x285   : > { %p12477_p4 = pmov %p12473_p0 }
 0x286   : > { %10893 = vsyncadd (%p12476_p6), [#allocation24], 4294901248 }
 0x287   : > { %10895 = dma.done.wait (%p12477_p4), [#allocation27], 64   ;;  %p12478_p8 = pmov %p12473_p0 }
 0x288   : > { %p12479_p5 = pmov %p12473_p0 }
 0x289   : > { %10897 = vsyncadd (%p12478_p8), [#allocation27], 4294967232 }
 0x28a   : > { %10899 = dma.done.wait (%p12479_p5), [#allocation30], 544   ;;  %p12480_p10 = pmov %p12473_p0 }
 0x28b   : > { %p12481_p1 = pmov %p12473_p0 }
 0x28c   : > { %10901 = vsyncadd (%p12480_p10), [#allocation30], 4294966752 }
 0x28d   : > { %10903 = dma.done.wait (%p12481_p1), [#allocation33], 16   ;;  %p12482_p11 = pmov %p12473_p0 }
 0x28e   : > { %v10952_v0 = vmov 0.0|0.0   ;;  %vm10953_vm0 = vmmov 0   ;;  %v10954_v1 = vmov 0.0   ;;  %v945_v2 = vld [vmem:[#allocation7] sm:$0xff]  ;;  %v946_v3 = vld [vmem:[#allocation7 + $0x8] sm:$0xff]  ;;  %v947_v4 = vld [vmem:[#allocation7 + $0x10] sm:$0xff] }
 0x28f   : > { %10905 = vsyncadd (%p12482_p11), [#allocation33], 4294967280  ;;  %9208 = vmatprep.subr.bf16.mxu0 %v10952_v0  ;;  %8935 = vmatprep.mubr.msk.f32.mxu0 %vm10953_vm0, %v10954_v1  ;;  %v9209_v5 = vpack.c.bf16 %v946_v3, %v945_v2  ;;  %v948_v6 = vld [vmem:[#allocation7 + $0x18] sm:$0xff]  ;;  %v11704_v8 = vld [vmem:[%s798_s9] sm:$0xff]  ;;  %vm956_vm1 = vcmask 261120   ;;  %s10955_s16 = smov 96  }
 0x290   : > { %8938 = vmatprep.subr.mxu1 %v10954_v1  ;;  %8940 = vmatprep.mubr.msk.f32.mxu1 %vm10953_vm0, %v10954_v1  ;;  %v9212_v7 = vpack.c.bf16 %v948_v6, %v947_v4  ;;  %v8152_v9 = vld [vmem:[#allocation8] ss:$0 sm:$0xff]  ;;  %s10956_s29 = smov 120   ;;  %s10957_s6 = smov 88   ;;  %vm1039_vm2 = vcmask 64512   ;;  %vm1710_vm3 = vcmask 130048  }
 0x291   : > { %9210 = vmatpush3.bf16.msra.mxu0 %v9209_v5  ;;  %s10958_s13 = smov 80   ;;  %s10959_s7 = smov 112   ;;  %vm1712_vm4 = vcmask 195584   ;;  %vm7825_vm5 = vcmask 523264  }
 0x292   : > { %9211 = vmatprep.subr.bf16.mxu0 %v10952_v0  ;;  %s10960_s20 = smov 72   ;;  %s10961_s1 = smov 104  }
 0x293   : > { %s10962_s18 = smov 56   ;;  %s10963_s27 = smov 64  }
 0x294   : > { %s10964_s22 = smov 48   ;;  %s10965_s8 = smov 40  }
 0x295   : > { %9213 = vmatpush3.bf16.msra.mxu0 %v9212_v7  ;;  %v1030_v7 = vld [vmem:[#allocation10] sm:$0xff]  ;;  %s10966_s9 = smov 8   ;;  %s10967_s5 = smov 16  }
 0x296   : > { %8948 = vmatprep.subr.mxu0 %v10954_v1  ;;  %s10968_s12 = smov 24   ;;  %p12484_p13 = scmp.ne.s32.totalorder %s12452_s30, 0 }
 0x298   : > { %8936 = vmatmul.mubr.msk.f32.vlgmr.msra.gmra.mrb[0].mxu0 %vm956_vm1, %v11704_v8 }
 0x299   : > { %8950 = vmatprep.mubr.msk.f32.mxu0 %vm10953_vm0, %v10954_v1 }
 0x36b   : > { %v1026_v10 = vpop.f32.mrb[0].mxu0 }
 0x36c   : > { %v11711_v11 = vadd.f32 %v8152_v9, %v1026_v10  ;;  %v8937_v12 = vpop.f32.mrb[1].mxu0  ;;  %v1031_v9 = vld [vmem:[#allocation10 + $0x8] sm:$0xff] }
 0x36d   : > { %v9215_v10 = vpack.c.bf16 %v1031_v9, %v1030_v7 }
 0x36e   : > { %1037 = vrot.lane.b32.xlu0 %v11711_v11, %s10955_s16  ;;  %v1035_v13 = vmul.f32 0.35355338, %v11711_v11 }
 0x370   : > { %1202 = vrot.lane.b32.xlu1 %v1035_v13, %s10956_s29 }
 0x372   : > { %1204 = vrot.lane.b32.xlu0 %v11711_v11, %s10957_s6 }
 0x374   : > { %1369 = vrot.lane.b32.xlu1 %v11711_v11, %s10958_s13 }
 0x376   : > { %1367 = vrot.lane.b32.xlu0 %v1035_v13, %s10959_s7 }
 0x378   : > { %1534 = vrot.lane.b32.xlu1 %v11711_v11, %s10960_s20 }
 0x37a   : > { %1532 = vrot.lane.b32.xlu0 %v1035_v13, %s10961_s1 }
 0x3e0   : > { %v1038_v14 = vpop.permute.xlu0 %1037 }
 0x3e1   : > { %8939 = vmatpush3.xpose.msk.msra.mxu1 %vm1039_vm2, %v1038_v14 }
 0x3e2   : > { %v1203_v15 = vpop.permute.xlu1 %1202  ;;  %8943 = vmatprep.subr.mxu1 %v10954_v1 }
 0x3e4   : > { %v1205_v16 = vpop.permute.xlu0 %1204  ;;  %8941 = vmatmul.mubr.msk.f32.vlgmr.msra.gmra.mrb[0].mxu1 %vm1039_vm2, %v1035_v13 }
 0x3e5   : > { %8949 = vmatpush3.xpose.msk.msra.mxu0 %vm1039_vm2, %v1205_v16  ;;  %8945 = vmatprep.mubr.msk.f32.mxu1 %vm10953_vm0, %v10954_v1  ;;  %v1033_v16 = vld [vmem:[#allocation10 + $0x18] sm:$0xff] }
 0x3e6   : > { %v1370_v17 = vpop.permute.xlu1 %1369  ;;  %8958 = vmatprep.subr.mxu0 %v10954_v1 }
 0x3e8   : > { %8951 = vmatmul.mubr.msk.f32.vlgmr.msra.gmra.mrb[2].mxu0 %vm1039_vm2, %v1203_v15  ;;  %v1368_v18 = vpop.permute.xlu0 %1367  ;;  %v1032_v15 = vld [vmem:[#allocation10 + $0x10] sm:$0xff] }
 0x3e9   : > { %8959 = vmatpush3.xpose.msk.msra.mxu0 %vm1039_vm2, %v1370_v17  ;;  %8960 = vmatprep.mubr.msk.f32.mxu0 %vm10953_vm0, %v10954_v1  ;;  %v9218_v17 = vpack.c.bf16 %v1033_v16, %v1032_v15 }
 0x3ea   : > { %8968 = vmatprep.subr.mxu0 %v10954_v1  ;;  %v1535_v19 = vpop.permute.xlu1 %1534 }
 0x3ec   : > { %8961 = vmatmul.mubr.msk.f32.vlgmr.msra.gmra.mrb[4].mxu0 %vm1039_vm2, %v1368_v18  ;;  %v1533_v20 = vpop.permute.xlu0 %1532 }
 0x3ed   : > { %8969 = vmatpush3.xpose.msk.msra.mxu0 %vm1039_vm2, %v1535_v19  ;;  %8970 = vmatprep.mubr.msk.f32.mxu0 %vm10953_vm0, %v10954_v1 }
 0x3ee   : > { %9214 = vmatprep.subr.bf16.mxu0 %v10952_v0 }
 0x3f0   : > { %8971 = vmatmul.mubr.msk.f32.vlgmr.msra.gmra.mrb[6].mxu0 %vm1039_vm2, %v1533_v20 }
 0x3f1   : > { %8986 = vmatprep.mubr.msk.f32.mxu0 %vm10953_vm0, %v10954_v1  ;;  %9216 = vmatpush3.bf16.msra.mxu0 %v9215_v10 }
 0x3f2   : > { %9217 = vmatprep.subr.bf16.mxu0 %v10952_v0 }
 0x3f5   : > { %9219 = vmatpush3.bf16.msra.mxu0 %v9218_v17 }
 0x3f6   : > { %9226 = vmatprep.subr.bf16.mxu0 %v10952_v0 }
 0x4b7   : > { %v1111_v21 = vpop.f32.mrb[0].mxu1 }
 0x4b8   : > { %v8942_v22 = vpop.f32.mrb[1].mxu1  ;;  %v1115_v23 = vsel %vm1039_vm2, %v1111_v21, -inf }
 0x4b9   : > { %1116 = vmax.xlane.f32.xlu1 %v1115_v23 }
 0x4bb   : > { %v1276_v24 = vpop.f32.mrb[2].mxu0 }
 0x4bc   : > { %v8952_v25 = vpop.f32.mrb[3].mxu0  ;;  %v1280_v26 = vsel %vm1039_vm2, %v1276_v24, -inf }
 0x4bd   : > { %1281 = vmax.xlane.f32.xlu0 %v1280_v26 }
 0x4bf   : > { %v1441_v27 = vpop.f32.mrb[4].mxu0 }
 0x4c0   : > { %v8962_v28 = vpop.f32.mrb[5].mxu0  ;;  %v1445_v29 = vsel %vm1039_vm2, %v1441_v27, -inf }
 0x4c1   : > { %1446 = vmax.xlane.f32.xlu0 %v1445_v29  ;;  %v8166_v28 = vld [vmem:[#allocation11] ss:$0 sm:$0xff] }
 0x4c3   : > { %v1606_v30 = vpop.f32.mrb[6].mxu0 }
 0x4c4   : > { %v8972_v31 = vpop.f32.mrb[7].mxu0  ;;  %v1610_v32 = vsel %vm1039_vm2, %v1606_v30, -inf }
 0x4c5   : > { %1611 = vmax.xlane.f32.xlu1 %v1610_v32 }
 0x4d6   : > { %1291 = vrot.lane.b32.xlu1 %v11711_v11, %s10962_s18 }
 0x546   : > { %v1117_v33 = vpop.xlane.xlu1 %1116 }
 0x547   : > { %v1118_v34 = vsub.f32 %v1111_v21, %v1117_v33 }
 0x549   : > { %v1119_v35 = vmul.f32 1.442695, %v1118_v34 }
 0x54a   : > { %v1282_v36 = vpop.xlane.xlu0 %1281 }
 0x54b   : > { %10169 = vpow2.f32 %v1119_v35  ;;  %v1283_v37 = vsub.f32 %v1276_v24, %v1282_v36 }
 0x54d   : > { %v1284_v38 = vmul.f32 1.442695, %v1283_v37 }
 0x54e   : > { %v1447_v48 = vpop.xlane.xlu0 %1446 }
 0x54f   : > { %10171 = vpow2.f32 %v1284_v38  ;;  %v1448_v49 = vsub.f32 %v1441_v27, %v1447_v48  ;;  %v1824_v48 = vld [vmem:[#allocation13 + $0x10] sm:$0xff] }
 0x551   : > { %v1449_v50 = vmul.f32 1.442695, %v1448_v49  ;;  %v1825_v49 = vld [vmem:[#allocation13 + $0x18] sm:$0xff] }
 0x552   : > { %v1612_v39 = vpop.xlane.xlu1 %1611 }
 0x553   : > { %v1613_v40 = vsub.f32 %v1606_v30, %v1612_v39  ;;  %v1906_v39 = vld [vmem:[#allocation16] sm:$0xff] }
 0x555   : > { %v10170_v41 = vpop.eup %10169  ;;  %v1614_v42 = vmul.f32 1.442695, %v1613_v40  ;;  %v1907_v40 = vld [vmem:[#allocation16 + $0x8] sm:$0xff] }
 0x556   : > { %v1121_v43 = vsel %vm1039_vm2, %v10170_v41, 0.0  ;;  %v1292_v53 = vpop.permute.xlu1 %1291 }
 0x557   : > { %10173 = vpow2.f32 %v1614_v42  ;;  %1122 = vadd.xlane.f32.xlu0 %v1121_v43  ;;  %v1908_v42 = vld [vmem:[#allocation16 + $0x10] sm:$0xff]  ;;  %v1909_v43 = vld [vmem:[#allocation16 + $0x18] sm:$0xff] }
 0x558   : > { %10175 = vpow2.f32 %v1449_v50  ;;  %v9224_v50 = vpack.c.bf16 %v1825_v49, %v1824_v48 }
 0x559   : > { %v10172_v44 = vpop.eup %10171 }
 0x55a   : > { %v1286_v45 = vsel %vm1039_vm2, %v10172_v44, 0.0 }
 0x55b   : > { %1287 = vadd.xlane.f32.xlu1 %v1286_v45  ;;  %v1822_v45 = vld [vmem:[#allocation13] sm:$0xff] }
 0x561   : > { %v10174_v46 = vpop.eup %10173 }
 0x562   : > { %v1616_v47 = vsel %vm1039_vm2, %v10174_v46, 0.0  ;;  %v10176_v51 = vpop.eup %10175 }
 0x563   : > { %1617 = vadd.xlane.f32.xlu1 %v1616_v47  ;;  %v1451_v52 = vsel %vm1039_vm2, %v10176_v51, 0.0 }
 0x56d   : > { %1126 = vrot.lane.b32.xlu0 %v11711_v11, %s10963_s27 }
 0x574   : > { %1456 = vrot.lane.b32.xlu1 %v11711_v11, %s10964_s22 }
 0x58c   : > { %1452 = vadd.xlane.f32.xlu0 %v1451_v52 }
 0x5a2   : > { %1621 = vrot.lane.b32.xlu0 %v11711_v11, %s10965_s8 }
 0x5e4   : > { %v1123_v54 = vpop.xlane.xlu0 %1122 }
 0x5e5   : > { %10177 = vrcp.f32 %v1123_v54 }
 0x5e8   : > { %v1127_v55 = vpop.permute.xlu0 %1126  ;;  %v1288_v56 = vpop.xlane.xlu1 %1287 }
 0x5e9   : > { %10179 = vrcp.f32 %v1288_v56  ;;  %8944 = vmatpush3.msra.mxu1 %v1127_v55  ;;  %v11800_v55 = vld [vmem:[#allocation28] ss:$0 sm:$0xff] }
 0x5ea   : > { %8953 = vmatprep.subr.mxu1 %v10954_v1 }
 0x5ef   : > { %v10178_v57 = vpop.eup %10177 }
 0x5f0   : > { %v1125_v58 = vmul.f32 %v10178_v57, %v10170_v41  ;;  %v1618_v59 = vpop.xlane.xlu1 %1617  ;;  %v9227_v41 = vpack.c.bf16 %v1907_v40, %v1906_v39  ;;  %v11802_v57 = vld [vmem:[#allocation29] ss:$0 sm:$0xff] }
 0x5f2   : > { %8946 = vmatmul.mubr.msk.f32.vlgmr.msra.gmra.mrb[2].mxu1 %vm1039_vm2, %v1125_v58 }
 0x5f3   : > { %v10180_v60 = vpop.eup %10179  ;;  %8954 = vmatpush3.msra.mxu1 %v1292_v53  ;;  %8955 = vmatprep.mubr.msk.f32.mxu1 %vm10953_vm0, %v10954_v1 }
 0x5f4   : > { %v1290_v61 = vmul.f32 %v10180_v60, %v10172_v44  ;;  %v1457_v62 = vpop.permute.xlu1 %1456  ;;  %8963 = vmatprep.subr.mxu1 %v10954_v1  ;;  %v942_v44 = vld [vmem:[%s807_s21] sm:$0xff]  ;;  %v8172_v60 = vld [vmem:[#allocation17] ss:$0 sm:$0xff] }
 0x5f6   : > { %8956 = vmatmul.mubr.msk.f32.vlgmr.msra.gmra.mrb[4].mxu1 %vm1039_vm2, %v1290_v61 }
 0x5f7   : > { %8964 = vmatpush3.msra.mxu1 %v1457_v62  ;;  %8965 = vmatprep.mubr.msk.f32.mxu1 %vm10953_vm0, %v10954_v1 }
 0x5f8   : > { %8973 = vmatprep.subr.mxu1 %v10954_v1 }
 0x619   : > { %v1453_v63 = vpop.xlane.xlu0 %1452 }
 0x61a   : > { %10181 = vrcp.f32 %v1453_v63 }
 0x61b   : > { %10183 = vrcp.f32 %v1618_v59 }
 0x61d   : > { %v1622_v5 = vpop.permute.xlu0 %1621 }
 0x624   : > { %v10182_v2 = vpop.eup %10181 }
 0x625   : > { %v1455_v3 = vmul.f32 %v10182_v2, %v10176_v51  ;;  %v10184_v4 = vpop.eup %10183 }
 0x626   : > { %v1620_v6 = vmul.f32 %v10184_v4, %v10174_v46  ;;  %v1823_v46 = vld [vmem:[#allocation13 + $0x8] sm:$0xff] }
 0x627   : > { %8966 = vmatmul.mubr.msk.f32.vlgmr.msra.gmra.mrb[6].mxu1 %vm1039_vm2, %v1455_v3  ;;  %v9221_v47 = vpack.c.bf16 %v1823_v46, %v1822_v45  ;;  %v8170_v3 = vld [vmem:[#allocation14] ss:$0 sm:$0xff] }
 0x628   : > { %8974 = vmatpush3.msra.mxu1 %v1622_v5  ;;  %8975 = vmatprep.mubr.msk.f32.mxu1 %vm10953_vm0, %v10954_v1 }
 0x629   : > { %9220 = vmatprep.subr.bf16.mxu1 %v10952_v0 }
 0x62b   : > { %8976 = vmatmul.mubr.msk.f32.vlgmr.msra.gmra.mrb[8].mxu1 %vm1039_vm2, %v1620_v6 }
 0x62c   : > { %8997 = vmatprep.mubr.msk.f32.mxu1 %vm10953_vm0, %v10954_v1  ;;  %9222 = vmatpush3.bf16.msra.mxu1 %v9221_v47 }
 0x62d   : > { %9223 = vmatprep.subr.bf16.mxu1 %v10952_v0 }
 0x630   : > { %9225 = vmatpush3.bf16.msra.mxu1 %v9224_v50 }
 0x631   : > { %9011 = vmatprep.subr.mxu1 %v10954_v1 }
 0x6c5   : > { %v1198_v11 = vpop.f32.mrb[2].mxu1 }
 0x6c6   : > { %v8947_v12 = vpop.f32.mrb[3].mxu1 }
 0x6c9   : > { %v1363_v13 = vpop.f32.mrb[4].mxu1 }
 0x6ca   : > { %1698 = vrot.lane.b32.xlu1 %v1363_v13, %s10966_s9  ;;  %v8957_v14 = vpop.f32.mrb[5].mxu1 }
 0x6fa   : > { %v1528_v18 = vpop.f32.mrb[6].mxu1 }
 0x6fb   : > { %1702 = vrot.lane.b32.xlu0 %v1528_v18, %s10967_s5  ;;  %v8967_v19 = vpop.f32.mrb[7].mxu1 }
 0x6fe   : > { %v1693_v20 = vpop.f32.mrb[8].mxu1 }
 0x6ff   : > { %1706 = vrot.lane.b32.xlu1 %v1693_v20, %s10968_s12  ;;  %v8977_v21 = vpop.f32.mrb[9].mxu1 }
 0x73c   : > { %v1699_v22 = vpop.permute.xlu1 %1698 }
 0x73d   : > { %v1709_v24 = vsel %vm1039_vm2, %v1198_v11, %v1699_v22 }
 0x76d   : > { %v1703_v23 = vpop.permute.xlu0 %1702 }
 0x76e   : > { %v1711_v25 = vsel %vm1710_vm3, %v1709_v24, %v1703_v23 }
 0x771   : > { %v1707_v26 = vpop.permute.xlu1 %1706 }
 0x772   : > { %v1713_v27 = vsel %vm1712_vm4, %v1711_v25, %v1707_v26 }
 0x773   : > { %8987 = vmatmul.mubr.msk.f32.vlgmr.msra.gmra.mrb[8].mxu0 %vm956_vm1, %v1713_v27 }
 0x774   : > { %9008 = vmatprep.mubr.msk.f32.mxu0 %vm10953_vm0, %v10954_v1  ;;  %9228 = vmatpush3.bf16.msra.mxu0 %v9227_v41 }
 0x775   : > { %9229 = vmatprep.subr.bf16.mxu0 %v10952_v0 }
 0x846   : > { %v1789_v29 = vpop.f32.mrb[8].mxu0 }
 0x847   : > { %v1790_v30 = vadd.f32 %v8166_v28, %v1789_v29  ;;  %v8988_v31 = vpop.f32.mrb[9].mxu0 }
 0x849   : > { %v1793_v32 = vadd.f32 %v1790_v30, %v11704_v8  ;;  %v9230_v8 = vpack.c.bf16 %v1909_v43, %v1908_v42 }
 0x84b   : > { %v1794_v33 = vsel %vm956_vm1, %v1793_v32, 0.0  ;;  %9231 = vmatpush3.bf16.msra.mxu0 %v9230_v8 }
 0x84c   : > { %1795 = vadd.xlane.f32.xlu0 %v1794_v33  ;;  %9021 = vmatprep.subr.mxu0 %v10954_v1 }
 0x84e   : > { %9009 = vmatmul.mubr.msk.f32.vlgmr.msra.gmra.mrb[10].mxu0 %vm956_vm1, %v942_v44 }
 0x84f   : > { %9023 = vmatprep.mubr.msk.f32.mxu0 %vm10953_vm0, %v10954_v1 }
 0x8d9   : > { %v1796_v34 = vpop.xlane.xlu0 %1795 }
 0x8da   : > { %v1798_v35 = vmul.f32 0.03125, %v1796_v34 }
 0x8dc   : > { %v1799_v36 = vsub.f32 %v1793_v32, %v1798_v35 }
 0x8de   : > { %v1800_v37 = vmul.f32 %v1799_v36, %v1799_v36 }
 0x8e0   : > { %v1801_v38 = vsel %vm956_vm1, %v1800_v37, 0.0 }
 0x8e1   : > { %1802 = vadd.xlane.f32.xlu1 %v1801_v38 }
 0x921   : > { %v1986_v61 = vpop.f32.mrb[10].mxu0 }
 0x922   : > { %v11812_v62 = vadd.f32 %v8172_v60, %v1986_v61  ;;  %v9010_v63 = vpop.f32.mrb[11].mxu0 }
 0x924   : > { %2161 = vrot.lane.b32.xlu0 %v11812_v62, %s10956_s29 }
 0x928   : > { %2326 = vrot.lane.b32.xlu0 %v11812_v62, %s10959_s7 }
 0x92c   : > { %2491 = vrot.lane.b32.xlu0 %v11812_v62, %s10961_s1 }
 0x96e   : > { %v1803_v51 = vpop.xlane.xlu1 %1802 }
 0x96f   : > { %v1804_v52 = vmul.f32 0.03125, %v1803_v51 }
 0x971   : > { %v1805_v53 = vadd.f32 1e-05, %v1804_v52 }
 0x973   : > { %10185 = vrsqrt.f32 %v1805_v53 }
 0x97d   : > { %v10186_v54 = vpop.eup %10185 }
 0x97e   : > { %v1807_v56 = vmul.f32 %v10186_v54, %v1799_v36 }
 0x980   : > { %v1814_v58 = vmul.f32 %v11800_v55, %v1807_v56 }
 0x982   : > { %v11806_v59 = vadd.f32 %v11802_v57, %v1814_v58 }
 0x984   : > { %8998 = vmatmul.mubr.msk.f32.vlgmr.msra.gmra.mrb[10].mxu1 %vm956_vm1, %v11806_v59 }
 0x985   : > { %9013 = vmatprep.mubr.msk.f32.mxu1 %vm10953_vm0, %v10954_v1  ;;  %9012 = vmatpush3.xpose.msk.msra.mxu1 %vm1039_vm2, %v11812_v62 }
 0x986   : > { %9016 = vmatprep.subr.mxu1 %v10954_v1 }
 0x996   : > { %v2162_v2 = vpop.permute.xlu0 %2161 }
 0x997   : > { %9022 = vmatpush3.xpose.msk.msra.mxu0 %vm1039_vm2, %v2162_v2 }
 0x998   : > { %9031 = vmatprep.subr.mxu0 %v10954_v1 }
 0x99a   : > { %v2327_v9 = vpop.permute.xlu0 %2326 }
 0x99e   : > { %v2492_v12 = vpop.permute.xlu0 %2491 }
 0xa57   : > { %v1902_v4 = vpop.f32.mrb[10].mxu1 }
 0xa58   : > { %v1903_v5 = vadd.f32 %v8170_v3, %v1902_v4  ;;  %v8999_v6 = vpop.f32.mrb[11].mxu1  ;;  %v1990_v4 = vld [vmem:[#allocation19] sm:$0xff] }
 0xa5a   : > { %v1995_v7 = vmul.f32 0.35355338, %v1903_v5  ;;  %v1991_v5 = vld [vmem:[#allocation19 + $0x8] sm:$0xff] }
 0xa5b   : > { %v9233_v6 = vpack.c.bf16 %v1991_v5, %v1990_v4 }
 0xa5c   : > { %2159 = vrot.lane.b32.xlu1 %v1995_v7, %s10956_s29  ;;  %9014 = vmatmul.mubr.msk.f32.vlgmr.msra.gmra.mrb[12].mxu1 %vm1039_vm2, %v1995_v7 }
 0xa5d   : > { %9018 = vmatprep.mubr.msk.f32.mxu1 %vm10953_vm0, %v10954_v1 }
 0xa60   : > { %2324 = vrot.lane.b32.xlu1 %v1995_v7, %s10959_s7 }
 0xa64   : > { %2489 = vrot.lane.b32.xlu1 %v1995_v7, %s10961_s1  ;;  %v1992_v7 = vld [vmem:[#allocation19 + $0x10] sm:$0xff] }
 0xace   : > { %v2160_v10 = vpop.permute.xlu1 %2159 }
 0xacf   : > { %9024 = vmatmul.mubr.msk.f32.vlgmr.msra.gmra.mrb[12].mxu0 %vm1039_vm2, %v2160_v10 }
 0xad0   : > { %9032 = vmatpush3.xpose.msk.msra.mxu0 %vm1039_vm2, %v2327_v9  ;;  %9033 = vmatprep.mubr.msk.f32.mxu0 %vm10953_vm0, %v10954_v1  ;;  %v1993_v9 = vld [vmem:[#allocation19 + $0x18] sm:$0xff] }
 0xad1   : > { %9041 = vmatprep.subr.mxu0 %v10954_v1  ;;  %v9236_v10 = vpack.c.bf16 %v1993_v9, %v1992_v7  ;;  %v2768_v7 = vld [vmem:[#allocation22 + $0x20] sm:$0xff] }
 0xad2   : > { %v2325_v11 = vpop.permute.xlu1 %2324  ;;  %v2784_v9 = vld [vmem:[#allocation22 + $0xa0] sm:$0xff] }
 0xad3   : > { %9034 = vmatmul.mubr.msk.f32.vlgmr.msra.gmra.mrb[14].mxu0 %vm1039_vm2, %v2325_v11 }
 0xad4   : > { %9042 = vmatpush3.xpose.msk.msra.mxu0 %vm1039_vm2, %v2492_v12  ;;  %9043 = vmatprep.mubr.msk.f32.mxu0 %vm10953_vm0, %v10954_v1 }
 0xad5   : > { %9232 = vmatprep.subr.bf16.mxu0 %v10952_v0 }
 0xad6   : > { %v2490_v13 = vpop.permute.xlu1 %2489 }
 0xad7   : > { %9044 = vmatmul.mubr.msk.f32.vlgmr.msra.gmra.mrb[16].mxu0 %vm1039_vm2, %v2490_v13 }
 0xad8   : > { %9059 = vmatprep.mubr.msk.f32.mxu0 %vm10953_vm0, %v10954_v1  ;;  %9234 = vmatpush3.bf16.msra.mxu0 %v9233_v6 }
 0xad9   : > { %9235 = vmatprep.subr.bf16.mxu0 %v10952_v0 }
 0xadc   : > { %9237 = vmatpush3.bf16.msra.mxu0 %v9236_v10 }
 0xb2f   : > { %v2068_v14 = vpop.f32.mrb[12].mxu1 }
 0xb30   : > { %v9015_v15 = vpop.f32.mrb[13].mxu1  ;;  %v2072_v16 = vsel %vm1039_vm2, %v2068_v14, -inf }
 0xb31   : > { %2073 = vmax.xlane.f32.xlu0 %v2072_v16 }
 0xba2   : > { %v2233_v17 = vpop.f32.mrb[12].mxu0 }
 0xba3   : > { %v9025_v18 = vpop.f32.mrb[13].mxu0  ;;  %v2237_v19 = vsel %vm1039_vm2, %v2233_v17, -inf }
 0xba4   : > { %2238 = vmax.xlane.f32.xlu1 %v2237_v19 }
 0xba6   : > { %v2398_v20 = vpop.f32.mrb[14].mxu0 }
 0xba7   : > { %v9035_v21 = vpop.f32.mrb[15].mxu0  ;;  %v2402_v22 = vsel %vm1039_vm2, %v2398_v20, -inf }
 0xba8   : > { %2403 = vmax.xlane.f32.xlu0 %v2402_v22 }
 0xbaa   : > { %v2563_v23 = vpop.f32.mrb[16].mxu0 }
 0xbab   : > { %v9045_v24 = vpop.f32.mrb[17].mxu0  ;;  %v2567_v25 = vsel %vm1039_vm2, %v2563_v23, -inf }
 0xbac   : > { %2568 = vmax.xlane.f32.xlu0 %v2567_v25 }
 0xbb5   : > { %2083 = vrot.lane.b32.xlu1 %v11812_v62, %s10955_s16 }
 0xbbe   : > { %v2074_v26 = vpop.xlane.xlu0 %2073 }
 0xbbf   : > { %v2075_v27 = vsub.f32 %v2068_v14, %v2074_v26 }
 0xbc1   : > { %v2076_v28 = vmul.f32 1.442695, %v2075_v27 }
 0xbc3   : > { %10187 = vpow2.f32 %v2076_v28 }
 0xbcd   : > { %v10188_v29 = vpop.eup %10187 }
 0xbce   : > { %v2078_v30 = vsel %vm1039_vm2, %v10188_v29, 0.0 }
 0xbd9   : > { %2079 = vadd.xlane.f32.xlu1 %v2078_v30 }
 0xc31   : > { %v2239_v31 = vpop.xlane.xlu1 %2238 }
 0xc32   : > { %v2240_v32 = vsub.f32 %v2233_v17, %v2239_v31 }
 0xc34   : > { %v2241_v33 = vmul.f32 1.442695, %v2240_v32 }
 0xc35   : > { %v2084_v34 = vpop.permute.xlu1 %2083  ;;  %v2404_v35 = vpop.xlane.xlu0 %2403 }
 0xc36   : > { %10189 = vpow2.f32 %v2241_v33  ;;  %v2405_v36 = vsub.f32 %v2398_v20, %v2404_v35  ;;  %9017 = vmatpush3.msra.mxu1 %v2084_v34  ;;  %v2765_v34 = vld [vmem:[#allocation22 + $0x8] sm:$0xff] }
 0xc37   : > { %9026 = vmatprep.subr.mxu1 %v10954_v1  ;;  %v2781_v35 = vld [vmem:[#allocation22 + $0x88] sm:$0xff] }
 0xc38   : > { %v2406_v37 = vmul.f32 1.442695, %v2405_v36  ;;  %v2767_v36 = vld [vmem:[#allocation22 + $0x18] sm:$0xff] }
 0xc39   : > { %v2569_v38 = vpop.xlane.xlu0 %2568 }
 0xc3a   : > { %10191 = vpow2.f32 %v2406_v37  ;;  %v2570_v39 = vsub.f32 %v2563_v23, %v2569_v38  ;;  %v8186_v23 = vld [vmem:[#allocation20] ss:$0 sm:$0xff]  ;;  %v9238_v37 = vpack.c.bf16 %v2781_v35, %v2765_v34  ;;  %v2774_v35 = vld [vmem:[#allocation22 + $0x50] sm:$0xff] }
 0xc3b   : > { %v2783_v38 = vld [vmem:[#allocation22 + $0x98] sm:$0xff] }
 0xc3c   : > { %v2571_v40 = vmul.f32 1.442695, %v2570_v39  ;;  %v2764_v39 = vld [vmem:[#allocation22] sm:$0xff] }
 0xc3e   : > { %10193 = vpow2.f32 %v2571_v40  ;;  %v2780_v40 = vld [vmem:[#allocation22 + $0x80] sm:$0xff] }
 0xc40   : > { %v10190_v41 = vpop.eup %10189 }
 0xc41   : > { %v2243_v42 = vsel %vm1039_vm2, %v10190_v41, 0.0 }
 0xc42   : > { %2244 = vadd.xlane.f32.xlu0 %v2243_v42  ;;  %v9240_v42 = vpack.c.bf16 %v2780_v40, %v2764_v39  ;;  %v2807_v39 = vld [vmem:[#allocation22 + $0x158] sm:$0xff] }
 0xc43   : > { %v2823_v40 = vld [vmem:[#allocation22 + $0x1d8] sm:$0xff] }
 0xc44   : > { %v10192_v43 = vpop.eup %10191 }
 0xc45   : > { %v2408_v8 = vsel %vm1039_vm2, %v10192_v43, 0.0 }
 0xc46   : > { %2409 = vadd.xlane.f32.xlu1 %v2408_v8 }
 0xc48   : > { %v10194_v44 = vpop.eup %10193 }
 0xc49   : > { %v2573_v45 = vsel %vm1039_vm2, %v10194_v44, 0.0 }
 0xc4a   : > { %2574 = vadd.xlane.f32.xlu0 %v2573_v45  ;;  %v2813_v45 = vld [vmem:[#allocation22 + $0x188] sm:$0xff] }
 0xc57   : > { %2413 = vrot.lane.b32.xlu1 %v11812_v62, %s10958_s13 }
 0xc5b   : > { %2578 = vrot.lane.b32.xlu1 %v11812_v62, %s10960_s20 }
 0xc60   : > { %2248 = vrot.lane.b32.xlu0 %v11812_v62, %s10957_s6 }
 0xc66   : > { %v2080_v46 = vpop.xlane.xlu1 %2079 }
 0xc67   : > { %10195 = vrcp.f32 %v2080_v46  ;;  %v2799_v46 = vld [vmem:[#allocation22 + $0x118] sm:$0xff] }
 0xc71   : > { %v10196_v47 = vpop.eup %10195 }
 0xc72   : > { %v2082_v48 = vmul.f32 %v10196_v47, %v10188_v29 }
 0xc74   : > { %9019 = vmatmul.mubr.msk.f32.vlgmr.msra.gmra.mrb[14].mxu1 %vm1039_vm2, %v2082_v48  ;;  %v2815_v48 = vld [vmem:[#allocation22 + $0x198] sm:$0xff] }
 0xc75   : > { %9028 = vmatprep.mubr.msk.f32.mxu1 %vm10953_vm0, %v10954_v1 }
 0xccf   : > { %v2245_v49 = vpop.xlane.xlu0 %2244 }
 0xcd0   : > { %10197 = vrcp.f32 %v2245_v49  ;;  %v2796_v49 = vld [vmem:[#allocation22 + $0x100] sm:$0xff] }
 0xcd3   : > { %v2410_v50 = vpop.xlane.xlu1 %2409 }
 0xcd4   : > { %10199 = vrcp.f32 %v2410_v50  ;;  %v2812_v50 = vld [vmem:[#allocation22 + $0x180] sm:$0xff] }
 0xcd7   : > { %v2575_v51 = vpop.xlane.xlu0 %2574  ;;  %v2414_v54 = vpop.permute.xlu1 %2413 }
 0xcd8   : > { %10201 = vrcp.f32 %v2575_v51  ;;  %v9250_v51 = vpack.c.bf16 %v2815_v48, %v2799_v46  ;;  %v2822_v46 = vld [vmem:[#allocation22 + $0x1d0] sm:$0xff]  ;;  %v2793_v48 = vld [vmem:[#allocation22 + $0xe8] sm:$0xff] }
 0xcda   : > { %v10198_v52 = vpop.eup %10197 }
 0xcdb   : > { %v2247_v53 = vmul.f32 %v10198_v52, %v10190_v41  ;;  %v2249_v56 = vpop.permute.xlu0 %2248  ;;  %v2579_v61 = vpop.permute.xlu1 %2578  ;;  %v9246_v41 = vpack.c.bf16 %v2783_v38, %v2767_v36  ;;  %v9244_v52 = vpack.c.bf16 %v2812_v50, %v2796_v49  ;;  %v2790_v36 = vld [vmem:[#allocation22 + $0xd0] sm:$0xff]  ;;  %v2821_v38 = vld [vmem:[#allocation22 + $0x1c8] sm:$0xff]  ;;  %v2779_v49 = vld [vmem:[#allocation22 + $0x78] sm:$0xff] }
 0xcdc   : > { %9027 = vmatpush3.msra.mxu1 %v2249_v56  ;;  %v2795_v50 = vld [vmem:[#allocation22 + $0xf8] sm:$0xff] }
 0xcdd   : > { %9029 = vmatmul.mubr.msk.f32.vlgmr.msra.gmra.mrb[16].mxu1 %vm1039_vm2, %v2247_v53  ;;  %9036 = vmatprep.subr.mxu1 %v10954_v1  ;;  %v2798_v53 = vld [vmem:[#allocation22 + $0x110] sm:$0xff] }
 0xcde   : > { %v10200_v58 = vpop.eup %10199  ;;  %9037 = vmatpush3.msra.mxu1 %v2414_v54  ;;  %9038 = vmatprep.mubr.msk.f32.mxu1 %vm10953_vm0, %v10954_v1  ;;  %v2814_v54 = vld [vmem:[#allocation22 + $0x190] sm:$0xff] }
 0xcdf   : > { %v2412_v60 = vmul.f32 %v10200_v58, %v10192_v43  ;;  %9046 = vmatprep.subr.mxu1 %v10954_v1  ;;  %v2782_v43 = vld [vmem:[#allocation22 + $0x90] sm:$0xff]  ;;  %9247 = vmatprep.subr.bf16.mxu0 %v9246_v41  ;;  %v9252_v56 = vpack.c.bf16 %v2814_v54, %v2798_v53  ;;  %v2769_v58 = vld [vmem:[#allocation22 + $0x28] sm:$0xff]  ;;  %v2776_v53 = vld [vmem:[#allocation22 + $0x60] sm:$0xff] }
 0xce0   : > { %v2792_v54 = vld [vmem:[#allocation22 + $0xe0] sm:$0xff] }
 0xce1   : > { %9039 = vmatmul.mubr.msk.f32.vlgmr.msra.gmra.mrb[18].mxu1 %vm1039_vm2, %v2412_v60  ;;  %v2785_v60 = vld [vmem:[#allocation22 + $0xa8] sm:$0xff] }
 0xce2   : > { %v10202_v62 = vpop.eup %10201  ;;  %9047 = vmatpush3.msra.mxu1 %v2579_v61  ;;  %9048 = vmatprep.mubr.msk.f32.mxu1 %vm10953_vm0, %v10954_v1  ;;  %v2771_v61 = vld [vmem:[#allocation22 + $0x38] sm:$0xff] }
 0xce3   : > { %v2577_v63 = vmul.f32 %v10202_v62, %v10194_v44  ;;  %9239 = vmatprep.subr.bf16.mxu1 %v9238_v37  ;;  %v2797_v44 = vld [vmem:[#allocation22 + $0x108] sm:$0xff]  ;;  %v9254_v62 = vpack.c.bf16 %v2785_v60, %v2769_v58  ;;  %v9294_v58 = vpack.c.bf16 %v2795_v50, %v2779_v49  ;;  %v2778_v60 = vld [vmem:[#allocation22 + $0x70] sm:$0xff]  ;;  %v3554_v49 = vld [vmem:[#allocation25 + $0x1b8] sm:$0xff] }
 0xce4   : > { %v9242_v47 = vpack.c.bf16 %v2813_v45, %v2797_v44  ;;  %v2805_v37 = vld [vmem:[#allocation22 + $0x148] sm:$0xff]  ;;  %v9282_v44 = vpack.c.bf16 %v2823_v40, %v2807_v39  ;;  %v2806_v45 = vld [vmem:[#allocation22 + $0x150] sm:$0xff] }
 0xce5   : > { %9049 = vmatmul.mubr.msk.f32.vlgmr.msra.gmra.mrb[20].mxu1 %vm1039_vm2, %v2577_v63  ;;  %v2787_v63 = vld [vmem:[#allocation22 + $0xb8] sm:$0xff]  ;;  %v3552_v39 = vld [vmem:[#allocation25 + $0x1a8] sm:$0xff] }
 0xce6   : > { %2979 = vmatprep.mubr.f32.mxu1 %v10954_v1  ;;  %9241 = vmatpush1.bf16.msra.mxu1 %v9240_v42  ;;  %v9280_v42 = vpack.c.bf16 %v2790_v36, %v2774_v35  ;;  %v3534_v35 = vld [vmem:[#allocation25 + $0x118] sm:$0xff]  ;;  %v3519_v36 = vld [vmem:[#allocation25 + $0xa0] sm:$0xff] }
 0xce7   : > { %9243 = vmatprep.subr.bf16.mxu1 %v9242_v47  ;;  %v2777_v47 = vld [vmem:[#allocation22 + $0x68] sm:$0xff] }
 0xcea   : > { %9245 = vmatpush1.bf16.msra.mxu1 %v9244_v52  ;;  %v9284_v52 = vpack.c.bf16 %v2822_v46, %v2806_v45  ;;  %v3536_v45 = vld [vmem:[#allocation25 + $0x128] sm:$0xff]  ;;  %v3521_v46 = vld [vmem:[#allocation25 + $0xb0] sm:$0xff] }
 0xceb   : > { %9255 = vmatprep.subr.bf16.mxu1 %v9254_v62  ;;  %v2809_v62 = vld [vmem:[#allocation22 + $0x168] sm:$0xff] }
 0xd47   : > { %v2155_v2 = vpop.f32.mrb[14].mxu1 }
 0xd48   : > { %v9020_v3 = vpop.f32.mrb[15].mxu1 }
 0xdb0   : > { %v2320_v11 = vpop.f32.mrb[16].mxu1 }
 0xdb1   : > { %2655 = vrot.lane.b32.xlu0 %v2320_v11, %s10966_s9  ;;  %v9030_v12 = vpop.f32.mrb[17].mxu1  ;;  %v2770_v11 = vld [vmem:[#allocation22 + $0x30] sm:$0xff] }
 0xdb2   : > { %v2786_v12 = vld [vmem:[#allocation22 + $0xb0] sm:$0xff] }
 0xdb4   : > { %v2485_v13 = vpop.f32.mrb[18].mxu1 }
 0xdb5   : > { %2659 = vrot.lane.b32.xlu1 %v2485_v13, %s10967_s5  ;;  %v9040_v14 = vpop.f32.mrb[19].mxu1  ;;  %v2801_v13 = vld [vmem:[#allocation22 + $0x128] sm:$0xff] }
 0xdb6   : > { %v2817_v14 = vld [vmem:[#allocation22 + $0x1a8] sm:$0xff] }
 0xdb8   : > { %v2650_v15 = vpop.f32.mrb[20].mxu1 }
 0xdb9   : > { %2663 = vrot.lane.b32.xlu0 %v2650_v15, %s10968_s12  ;;  %v9050_v16 = vpop.f32.mrb[21].mxu1  ;;  %v2803_v15 = vld [vmem:[#allocation22 + $0x138] sm:$0xff] }
 0xdba   : > { %v2819_v16 = vld [vmem:[#allocation22 + $0x1b8] sm:$0xff] }
 0xe23   : > { %v2656_v17 = vpop.permute.xlu0 %2655 }
 0xe24   : > { %v2666_v19 = vsel %vm1039_vm2, %v2155_v2, %v2656_v17  ;;  %v9262_v2 = vpack.c.bf16 %v2787_v63, %v2771_v61  ;;  %v2794_v61 = vld [vmem:[#allocation22 + $0xf0] sm:$0xff]  ;;  %v2825_v63 = vld [vmem:[#allocation22 + $0x1e8] sm:$0xff] }
 0xe27   : > { %v2660_v18 = vpop.permute.xlu1 %2659 }
 0xe28   : > { %v2667_v20 = vsel %vm1710_vm3, %v2666_v19, %v2660_v18  ;;  %v9256_v18 = vpack.c.bf16 %v2784_v9, %v2768_v7  ;;  %v9264_v19 = vpack.c.bf16 %v2786_v12, %v2770_v11  ;;  %v2824_v7 = vld [vmem:[#allocation22 + $0x1e0] sm:$0xff]  ;;  %v9290_v9 = vpack.c.bf16 %v2825_v63, %v2809_v62  ;;  %v2810_v11 = vld [vmem:[#allocation22 + $0x170] sm:$0xff]  ;;  %v3524_v62 = vld [vmem:[#allocation25 + $0xc8] sm:$0xff] }
 0xe29   : > { %v2826_v12 = vld [vmem:[#allocation22 + $0x1f0] sm:$0xff]  ;;  %v3555_v63 = vld [vmem:[#allocation25 + $0x1c0] sm:$0xff] }
 0xe2b   : > { %v2664_v21 = vpop.permute.xlu0 %2663 }
 0xe2c   : > { %v2668_v22 = vsel %vm1712_vm4, %v2667_v20, %v2664_v21  ;;  %v2800_v20 = vld [vmem:[#allocation22 + $0x120] sm:$0xff] }
 0xe2d   : > { %9060 = vmatmul.mubr.msk.f32.vlgmr.msra.gmra.mrb[18].mxu0 %vm956_vm1, %v2668_v22  ;;  %v2816_v21 = vld [vmem:[#allocation22 + $0x1a0] sm:$0xff] }
 0xe2e   : > { %3050 = vmatprep.mubr.f32.mxu0 %v10954_v1 }
 0xf00   : > { %v2744_v24 = vpop.f32.mrb[18].mxu0 }
 0xf01   : > { %v2745_v25 = vadd.f32 %v8186_v23, %v2744_v24  ;;  %v9061_v26 = vpop.f32.mrb[19].mxu0  ;;  %v9258_v23 = vpack.c.bf16 %v2817_v14, %v2801_v13  ;;  %v9266_v24 = vpack.c.bf16 %v2819_v16, %v2803_v15  ;;  %v3515_v13 = vld [vmem:[#allocation25 + $0x80] sm:$0xff]  ;;  %v3516_v14 = vld [vmem:[#allocation25 + $0x88] sm:$0xff] }
 0xf02   : > { %v2818_v26 = vld [vmem:[#allocation22 + $0x1b0] sm:$0xff]  ;;  %v3547_v15 = vld [vmem:[#allocation25 + $0x180] sm:$0xff]  ;;  %v3548_v16 = vld [vmem:[#allocation25 + $0x188] sm:$0xff] }
 0xf03   : > { %v2748_v27 = vadd.f32 %v2745_v25, %v11806_v59  ;;  %v2766_v59 = vld [vmem:[#allocation22 + $0x10] sm:$0xff] }
 0xf04   : > { %v9248_v8 = vpack.c.bf16 %v2782_v43, %v2766_v59  ;;  %v2802_v25 = vld [vmem:[#allocation22 + $0x130] sm:$0xff]  ;;  %v2804_v59 = vld [vmem:[#allocation22 + $0x140] sm:$0xff] }
 0xf05   : > { %v2749_v28 = vsel %vm956_vm1, %v2748_v27, 0.0  ;;  %v2820_v43 = vld [vmem:[#allocation22 + $0x1c0] sm:$0xff] }
 0xf06   : > { %2750 = vadd.xlane.f32.xlu1 %v2749_v28  ;;  %9249 = vmatpush1.bf16.msra.mxu0 %v9248_v8  ;;  %v2789_v28 = vld [vmem:[#allocation22 + $0xc8] sm:$0xff]  ;;  %v9274_v8 = vpack.c.bf16 %v2821_v38, %v2805_v37  ;;  %v3551_v38 = vld [vmem:[#allocation25 + $0x1a0] sm:$0xff] }
 0xf07   : > { %9251 = vmatprep.subr.bf16.mxu0 %v9250_v51  ;;  %v9276_v51 = vpack.c.bf16 %v2820_v43, %v2804_v59  ;;  %v3520_v37 = vld [vmem:[#allocation25 + $0xa8] sm:$0xff] }
 0xf08   : > { %v3504_v59 = vld [vmem:[#allocation25 + $0x28] sm:$0xff]  ;;  %v9310_v43 = vpack.c.bf16 %v3520_v37, %v3519_v36  ;;  %v3529_v37 = vld [vmem:[#allocation25 + $0xf0] sm:$0xff] }
 0xf0a   : > { %9253 = vmatpush1.bf16.msra.mxu0 %v9252_v56  ;;  %v9286_v56 = vpack.c.bf16 %v2793_v48, %v2777_v47  ;;  %v3522_v47 = vld [vmem:[#allocation25 + $0xb8] sm:$0xff]  ;;  %v3553_v48 = vld [vmem:[#allocation25 + $0x1b0] sm:$0xff] }
 0xf0b   : > { %9263 = vmatprep.subr.bf16.mxu0 %v9262_v2  ;;  %v2811_v2 = vld [vmem:[#allocation22 + $0x178] sm:$0xff] }
 0xf93   : > { %v2751_v29 = vpop.xlane.xlu1 %2750 }
 0xf94   : > { %v2752_v30 = vmul.f32 0.03125, %v2751_v29  ;;  %v2775_v29 = vld [vmem:[#allocation22 + $0x58] sm:$0xff] }
 0xf96   : > { %v2753_v31 = vsub.f32 %v2748_v27, %v2752_v30  ;;  %v2773_v27 = vld [vmem:[#allocation22 + $0x48] sm:$0xff]  ;;  %v2791_v30 = vld [vmem:[#allocation22 + $0xd8] sm:$0xff] }
 0xf97   : > { %v9278_v34 = vpack.c.bf16 %v2791_v30, %v2775_v29  ;;  %v3550_v29 = vld [vmem:[#allocation25 + $0x198] sm:$0xff] }
 0xf98   : > { %v2754_v32 = vmul.f32 %v2753_v31, %v2753_v31 }
 0xf9a   : > { %v2755_v33 = vsel %vm956_vm1, %v2754_v32, 0.0  ;;  %v2788_v32 = vld [vmem:[#allocation22 + $0xc0] sm:$0xff] }
 0xf9b   : > { %2756 = vadd.xlane.f32.xlu0 %v2755_v33  ;;  %v9270_v33 = vpack.c.bf16 %v2789_v28, %v2773_v27  ;;  %v3518_v27 = vld [vmem:[#allocation25 + $0x98] sm:$0xff]  ;;  %v3549_v28 = vld [vmem:[#allocation25 + $0x190] sm:$0xff] }
0x1028   : > { %v2757_v3 = vpop.xlane.xlu0 %2756 }
0x1029   : > { %v2758_v4 = vmul.f32 0.03125, %v2757_v3  ;;  %v2827_v3 = vld [vmem:[#allocation22 + $0x1f8] sm:$0xff] }
0x102b   : > { %v2759_v5 = vadd.f32 1e-05, %v2758_v4  ;;  %v9288_v4 = vpack.c.bf16 %v2792_v54, %v2776_v53  ;;  %v3506_v53 = vld [vmem:[#allocation25 + $0x38] sm:$0xff]  ;;  %v9314_v54 = vpack.c.bf16 %v3522_v47, %v3521_v46  ;;  %v3579_v47 = vld [vmem:[#allocation25 + $0x280] sm:$0xff] }
0x102d   : > { %10203 = vrsqrt.f32 %v2759_v5  ;;  %v9296_v5 = vpack.c.bf16 %v2794_v61, %v2778_v60  ;;  %v3538_v60 = vld [vmem:[#allocation25 + $0x138] sm:$0xff]  ;;  %v3523_v61 = vld [vmem:[#allocation25 + $0xc0] sm:$0xff] }
0x1037   : > { %v10204_v6 = vpop.eup %10203 }
0x1038   : > { %v2761_v10 = vmul.f32 %v10204_v6, %v2753_v31  ;;  %v9268_v31 = vpack.c.bf16 %v2818_v26, %v2802_v25  ;;  %v2808_v6 = vld [vmem:[#allocation22 + $0x160] sm:$0xff]  ;;  %v3532_v25 = vld [vmem:[#allocation25 + $0x108] sm:$0xff]  ;;  %v3517_v26 = vld [vmem:[#allocation25 + $0x90] sm:$0xff] }
0x103a   : > { %v2762_v17 = vmul.f32 %v11800_v55, %v2761_v10  ;;  %v9260_v55 = vpack.c.bf16 %v2816_v21, %v2800_v20  ;;  %v9298_v10 = vpack.c.bf16 %v2827_v3, %v2811_v2  ;;  %v3500_v20 = vld [vmem:[#allocation25 + $0x8] sm:$0xff]  ;;  %v9302_v21 = vpack.c.bf16 %v3516_v14, %v3515_v13  ;;  %v3526_v13 = vld [vmem:[#allocation25 + $0xd8] sm:$0xff]  ;;  %v3557_v14 = vld [vmem:[#allocation25 + $0x1d0] sm:$0xff] }
0x103b   : > { %v3556_v2 = vld [vmem:[#allocation25 + $0x1c8] sm:$0xff] }
0x103c   : > { %v11888_v22 = vadd.f32 %v11802_v57, %v2762_v17  ;;  %v2772_v57 = vld [vmem:[#allocation22 + $0x40] sm:$0xff]  ;;  %v9292_v17 = vpack.c.bf16 %v2824_v7, %v2808_v6  ;;  %v3508_v6 = vld [vmem:[#allocation25 + $0x48] sm:$0xff]  ;;  %v9318_v7 = vpack.c.bf16 %v3524_v62, %v3523_v61 }
0x103d   : > { %v9272_v41 = vpack.c.bf16 %v2788_v32, %v2772_v57  ;;  %v3502_v57 = vld [vmem:[#allocation25 + $0x18] sm:$0xff]  ;;  %v9306_v32 = vpack.c.bf16 %v3518_v27, %v3517_v26  ;;  %v3528_v26 = vld [vmem:[#allocation25 + $0xe8] sm:$0xff]  ;;  %v3559_v27 = vld [vmem:[#allocation25 + $0x1e0] sm:$0xff] }
0x103e   : > { %8188 = vmatmul.mubr.msk.f32.vlgmr.msra.gmra.mrb[22].mxu1 %vm956_vm1, %v11888_v22  ;;  %8189 = vmatmul.mubr.msk.f32.vlgmr.msra.gmra.mrb[20].mxu0 %vm956_vm1, %v11888_v22 }
0x103f   : > { %9257 = vmatpush1.bf16.msra.mxu1 %v9256_v18  ;;  %9265 = vmatpush1.bf16.msra.mxu0 %v9264_v19  ;;  %v9300_v18 = vpack.c.bf16 %v2826_v12, %v2810_v11  ;;  %v3499_v19 = vld [vmem:[#allocation25] sm:$0xff]  ;;  %v3540_v11 = vld [vmem:[#allocation25 + $0x148] sm:$0xff]  ;;  %v3525_v12 = vld [vmem:[#allocation25 + $0xd0] sm:$0xff] }
0x1040   : > { %9259 = vmatprep.subr.bf16.mxu1 %v9258_v23  ;;  %9267 = vmatprep.subr.bf16.mxu0 %v9266_v24  ;;  %v9334_v23 = vpack.c.bf16 %v3548_v16, %v3547_v15  ;;  %v3531_v24 = vld [vmem:[#allocation25 + $0x100] sm:$0xff]  ;;  %v9304_v30 = vpack.c.bf16 %v3500_v20, %v3499_v19  ;;  %v3558_v15 = vld [vmem:[#allocation25 + $0x1d8] sm:$0xff]  ;;  %v9322_v20 = vpack.c.bf16 %v3526_v13, %v3525_v12 }
0x1041   : > { %3121 = vmatprep.mubr.f32.mxu1 %v10954_v1  ;;  %3192 = vmatprep.mubr.f32.mxu0 %v10954_v1  ;;  %v3510_v19 = vld [vmem:[#allocation25 + $0x58] sm:$0xff] }
0x1043   : > { %9261 = vmatpush1.bf16.msra.mxu1 %v9260_v55  ;;  %9269 = vmatpush1.bf16.msra.mxu0 %v9268_v31  ;;  %v9336_v55 = vpack.c.bf16 %v3532_v25, %v3531_v24  ;;  %v3501_v31 = vld [vmem:[#allocation25 + $0x10] sm:$0xff]  ;;  %v3542_v24 = vld [vmem:[#allocation25 + $0x158] sm:$0xff]  ;;  %v3527_v25 = vld [vmem:[#allocation25 + $0xe0] sm:$0xff] }
0x1044   : > { %9271 = vmatprep.subr.bf16.mxu1 %v9270_v33  ;;  %9279 = vmatprep.subr.bf16.mxu0 %v9278_v34  ;;  %v9338_v33 = vpack.c.bf16 %v3550_v29, %v3549_v28  ;;  %v3533_v34 = vld [vmem:[#allocation25 + $0x110] sm:$0xff]  ;;  %v9308_v40 = vpack.c.bf16 %v3502_v57, %v3501_v31  ;;  %v3560_v28 = vld [vmem:[#allocation25 + $0x1e8] sm:$0xff]  ;;  %v9326_v31 = vpack.c.bf16 %v3528_v26, %v3527_v25 }
0x1045   : > { %v9358_v57 = vpack.c.bf16 %v3560_v28, %v3559_v27 }
0x1046   : > { %8190 = vmatmul.mubr.msk.f32.vlgmr.msra.gmra.mrb[24].mxu1 %vm956_vm1, %v11888_v22  ;;  %8191 = vmatmul.mubr.msk.f32.vlgmr.msra.gmra.mrb[22].mxu0 %vm956_vm1, %v11888_v22 }
0x1047   : > { %9273 = vmatpush1.bf16.msra.mxu1 %v9272_v41  ;;  %9281 = vmatpush1.bf16.msra.mxu0 %v9280_v42  ;;  %v9340_v41 = vpack.c.bf16 %v3534_v35, %v3533_v34  ;;  %v3503_v42 = vld [vmem:[#allocation25 + $0x20] sm:$0xff]  ;;  %v3544_v34 = vld [vmem:[#allocation25 + $0x168] sm:$0xff] }
0x1048   : > { %9275 = vmatprep.subr.bf16.mxu1 %v9274_v8  ;;  %9283 = vmatprep.subr.bf16.mxu0 %v9282_v44  ;;  %v9342_v8 = vpack.c.bf16 %v3552_v39, %v3551_v38  ;;  %v3535_v44 = vld [vmem:[#allocation25 + $0x120] sm:$0xff]  ;;  %v9312_v50 = vpack.c.bf16 %v3504_v59, %v3503_v42  ;;  %v3530_v38 = vld [vmem:[#allocation25 + $0xf8] sm:$0xff]  ;;  %v3561_v39 = vld [vmem:[#allocation25 + $0x1f0] sm:$0xff] }
0x1049   : > { %3263 = vmatprep.mubr.f32.mxu1 %v10954_v1  ;;  %3334 = vmatprep.mubr.f32.mxu0 %v10954_v1  ;;  %v3513_v42 = vld [vmem:[#allocation25 + $0x70] sm:$0xff]  ;;  %v3514_v59 = vld [vmem:[#allocation25 + $0x78] sm:$0xff] }
0x104b   : > { %9277 = vmatpush1.bf16.msra.mxu1 %v9276_v51  ;;  %9285 = vmatpush1.bf16.msra.mxu0 %v9284_v52  ;;  %v9344_v51 = vpack.c.bf16 %v3536_v45, %v3535_v44  ;;  %v3505_v52 = vld [vmem:[#allocation25 + $0x30] sm:$0xff]  ;;  %v3546_v45 = vld [vmem:[#allocation25 + $0x178] sm:$0xff] }
0x104c   : > { %9287 = vmatprep.subr.bf16.mxu1 %v9286_v56  ;;  %9295 = vmatprep.subr.bf16.mxu0 %v9294_v58  ;;  %v9346_v56 = vpack.c.bf16 %v3554_v49, %v3553_v48  ;;  %v3537_v58 = vld [vmem:[#allocation25 + $0x130] sm:$0xff]  ;;  %v9316_v3 = vpack.c.bf16 %v3506_v53, %v3505_v52  ;;  %v3580_v48 = vld [vmem:[#allocation25 + $0x288] sm:$0xff]  ;;  %v3611_v49 = vld [vmem:[#allocation25 + $0x380] sm:$0xff]  ;;  %v2832_v53 = vlaneseq }
0x104d   : > { %v3545_v44 = vld [vmem:[#allocation25 + $0x170] sm:$0xff] }
0x104e   : > { %8192 = vmatmul.mubr.msk.f32.vlgmr.msra.gmra.mrb[26].mxu1 %vm956_vm1, %v11888_v22  ;;  %8193 = vmatmul.mubr.msk.f32.vlgmr.msra.gmra.mrb[24].mxu0 %vm956_vm1, %v11888_v22  ;;  %v9364_v46 = vpack.c.bf16 %v3546_v45, %v3545_v44  ;;  %v3568_v44 = vld [vmem:[#allocation25 + $0x228] sm:$0xff] }
0x104f   : > { %9289 = vmatpush1.bf16.msra.mxu1 %v9288_v4  ;;  %9297 = vmatpush1.bf16.msra.mxu0 %v9296_v5  ;;  %v9348_v4 = vpack.c.bf16 %v3538_v60, %v3537_v58  ;;  %v3507_v5 = vld [vmem:[#allocation25 + $0x40] sm:$0xff] }
0x1050   : > { %9291 = vmatprep.subr.bf16.mxu1 %v9290_v9  ;;  %9299 = vmatprep.subr.bf16.mxu0 %v9298_v10  ;;  %v9350_v9 = vpack.c.bf16 %v3556_v2, %v3555_v63  ;;  %v3539_v10 = vld [vmem:[#allocation25 + $0x140] sm:$0xff]  ;;  %v9320_v16 = vpack.c.bf16 %v3508_v6, %v3507_v5 }
0x1051   : > { %3405 = vmatprep.mubr.f32.mxu1 %v10954_v1  ;;  %3476 = vmatprep.mubr.f32.mxu0 %v10954_v1  ;;  %v11920_v60 = vld [vmem:[#allocation23] sm:$0xff] }
0x1053   : > { %9293 = vmatpush1.bf16.msra.mxu1 %v9292_v17  ;;  %9301 = vmatpush1.bf16.msra.mxu0 %v9300_v18  ;;  %v9352_v17 = vpack.c.bf16 %v3540_v11, %v3539_v10  ;;  %v3509_v18 = vld [vmem:[#allocation25 + $0x50] sm:$0xff] }
0x1054   : > { %9303 = vmatprep.subr.bf16.mxu1 %v9302_v21  ;;  %9335 = vmatprep.subr.bf16.mxu0 %v9334_v23  ;;  %v9354_v21 = vpack.c.bf16 %v3558_v15, %v3557_v14  ;;  %v3541_v23 = vld [vmem:[#allocation25 + $0x150] sm:$0xff]  ;;  %v9324_v29 = vpack.c.bf16 %v3510_v19, %v3509_v18  ;;  %v3595_v14 = vld [vmem:[#allocation25 + $0x300] sm:$0xff]  ;;  %v3596_v15 = vld [vmem:[#allocation25 + $0x308] sm:$0xff] }
0x1055   : > { %v9400_v28 = vpack.c.bf16 %v3596_v15, %v3595_v14  ;;  %v3602_v14 = vld [vmem:[#allocation25 + $0x338] sm:$0xff]  ;;  %v3587_v15 = vld [vmem:[#allocation25 + $0x2c0] sm:$0xff] }
0x1056   : > { %8194 = vmatmul.mubr.msk.f32.vlgmr.msra.gmra.mrb[28].mxu1 %vm956_vm1, %v11888_v22  ;;  %8195 = vmatmul.mubr.msk.f32.vlgmr.msra.gmra.mrb[26].mxu0 %vm956_vm1, %v11888_v22 }
0x1057   : > { %9305 = vmatpush3.bf16.msra.mxu1 %v9304_v30  ;;  %9337 = vmatpush3.bf16.msra.mxu0 %v9336_v55  ;;  %v9356_v30 = vpack.c.bf16 %v3542_v24, %v3541_v23  ;;  %v3511_v55 = vld [vmem:[#allocation25 + $0x60] sm:$0xff]  ;;  %v3613_v23 = vld [vmem:[#allocation25 + $0x390] sm:$0xff]  ;;  %v3614_v24 = vld [vmem:[#allocation25 + $0x398] sm:$0xff] }
0x1058   : > { %9307 = vmatprep.subr.bf16.mxu1 %v9306_v32  ;;  %9339 = vmatprep.subr.bf16.mxu0 %v9338_v33  ;;  %v3512_v32 = vld [vmem:[#allocation25 + $0x68] sm:$0xff]  ;;  %v3543_v33 = vld [vmem:[#allocation25 + $0x160] sm:$0xff] }
0x1059   : > { %v9328_v35 = vpack.c.bf16 %v3512_v32, %v3511_v55  ;;  %v9360_v36 = vpack.c.bf16 %v3544_v34, %v3543_v33  ;;  %v9402_v32 = vpack.c.bf16 %v3614_v24, %v3613_v23  ;;  %v3597_v33 = vld [vmem:[#allocation25 + $0x310] sm:$0xff]  ;;  %v3598_v34 = vld [vmem:[#allocation25 + $0x318] sm:$0xff] }
0x105b   : > { %9309 = vmatpush3.bf16.msra.mxu1 %v9308_v40  ;;  %9341 = vmatpush3.bf16.msra.mxu0 %v9340_v41  ;;  %v9330_v40 = vpack.c.bf16 %v3530_v38, %v3529_v37  ;;  %v3562_v41 = vld [vmem:[#allocation25 + $0x1f8] sm:$0xff]  ;;  %v3584_v38 = vld [vmem:[#allocation25 + $0x2a8] sm:$0xff] }
0x105c   : > { %9311 = vmatprep.subr.bf16.mxu1 %v9310_v43  ;;  %9343 = vmatprep.subr.bf16.mxu0 %v9342_v8  ;;  %v9362_v43 = vpack.c.bf16 %v3562_v41, %v3561_v39  ;;  %v9332_v8 = vpack.c.bf16 %v3514_v59, %v3513_v42  ;;  %v3615_v39 = vld [vmem:[#allocation25 + $0x3a0] sm:$0xff] }
0x105f   : > { %9313 = vmatpush3.bf16.msra.mxu1 %v9312_v50  ;;  %9345 = vmatpush3.bf16.msra.mxu0 %v9344_v51  ;;  %v9366_v50 = vpack.c.bf16 %v3580_v48, %v3579_v47  ;;  %v3612_v51 = vld [vmem:[#allocation25 + $0x388] sm:$0xff] }
0x1060   : > { %9315 = vmatprep.subr.bf16.mxu1 %v9314_v54  ;;  %9347 = vmatprep.subr.bf16.mxu0 %v9346_v56  ;;  %v9398_v52 = vpack.c.bf16 %v3612_v51, %v3611_v49  ;;  %v11912_v54 = vshrl.u32 %v2832_v53, 7  ;;  %v3599_v49 = vld [vmem:[#allocation25 + $0x320] sm:$0xff]  ;;  %v3585_v51 = vld [vmem:[#allocation25 + $0x2b0] sm:$0xff] }
0x1062   : > { %v11915_v56 = vsub.s32 0, %v11912_v54  ;;  %v11918_v58 = vsub.s32 2, %v11912_v54  ;;  %v11923_v61 = vsub.s32 1, %v11912_v54  ;;  %v11926_v62 = vsub.s32 3, %v11912_v54 }
0x1063   : > { %9317 = vmatpush3.bf16.msra.mxu1 %v9316_v3  ;;  %9349 = vmatpush3.bf16.msra.mxu0 %v9348_v4  ;;  %v11937_v19 = vsub.s32 5, %v11912_v54 }
0x1064   : > { %9319 = vmatprep.subr.bf16.mxu1 %v9318_v7  ;;  %9351 = vmatprep.subr.bf16.mxu0 %v9350_v9  ;;  %v2835_v63 = vrot.slane %v11920_v60, %v11915_v56  ;;  %v2843_v2 = vrot.slane %v11920_v60, %v11918_v58  ;;  %v2839_v3 = vrot.slane %v11920_v60, %v11923_v61  ;;  %v3563_v7 = vld [vmem:[#allocation25 + $0x200] sm:$0xff]  ;;  %v3564_v9 = vld [vmem:[#allocation25 + $0x208] sm:$0xff] }
0x1065   : > { %v2847_v4 = vrot.slane %v11920_v60, %v11926_v62  ;;  %v9368_v27 = vpack.c.bf16 %v3564_v9, %v3563_v7  ;;  %v3569_v9 = vld [vmem:[#allocation25 + $0x230] sm:$0xff] }
0x1067   : > { %9321 = vmatpush3.bf16.msra.mxu1 %v9320_v16  ;;  %9353 = vmatpush3.bf16.msra.mxu0 %v9352_v17  ;;  %v3581_v16 = vld [vmem:[#allocation25 + $0x290] sm:$0xff] }
0x1068   : > { %9323 = vmatprep.subr.bf16.mxu1 %v9322_v20  ;;  %9355 = vmatprep.subr.bf16.mxu0 %v9354_v21  ;;  %v11940_v20 = vsub.s32 7, %v11912_v54  ;;  %v3582_v21 = vld [vmem:[#allocation25 + $0x298] sm:$0xff] }
0x106a   : > { %v2863_v37 = vrot.slane %v11920_v60, %v11940_v20 }
0x106b   : > { %9325 = vmatpush3.bf16.msra.mxu1 %v9324_v29  ;;  %9357 = vmatpush3.bf16.msra.mxu0 %v9356_v30  ;;  %v3565_v29 = vld [vmem:[#allocation25 + $0x210] sm:$0xff]  ;;  %v3566_v30 = vld [vmem:[#allocation25 + $0x218] sm:$0xff] }
0x106c   : > { %9327 = vmatprep.subr.bf16.mxu1 %v9326_v31  ;;  %9359 = vmatprep.subr.bf16.mxu0 %v9358_v57  ;;  %v9370_v57 = vpack.c.bf16 %v3582_v21, %v3581_v16  ;;  %v9372_v59 = vpack.c.bf16 %v3566_v30, %v3565_v29  ;;  %v3588_v16 = vld [vmem:[#allocation25 + $0x2c8] sm:$0xff] }
0x106d   : > { %v9382_v30 = vpack.c.bf16 %v3588_v16, %v3587_v15  ;;  %v3626_v15 = vld [vmem:[#allocation25 + $0x3f8] sm:$0xff] }
0x106f   : > { %9329 = vmatpush3.bf16.msra.mxu1 %v9328_v35  ;;  %9361 = vmatpush3.bf16.msra.mxu0 %v9360_v36  ;;  %v3583_v35 = vld [vmem:[#allocation25 + $0x2a0] sm:$0xff]  ;;  %v2855_v36 = vrot.slane %v11920_v60, %v11937_v19 }
0x1070   : > { %9331 = vmatprep.subr.bf16.mxu1 %v9330_v40  ;;  %9363 = vmatprep.subr.bf16.mxu0 %v9362_v43  ;;  %v3616_v40 = vld [vmem:[#allocation25 + $0x3a8] sm:$0xff]  ;;  %v9404_v43 = vpack.c.bf16 %v3598_v34, %v3597_v33  ;;  %v9374_v47 = vpack.c.bf16 %v3584_v38, %v3583_v35  ;;  %v3590_v33 = vld [vmem:[#allocation25 + $0x2d8] sm:$0xff]  ;;  %v3621_v34 = vld [vmem:[#allocation25 + $0x3d0] sm:$0xff] }
0x1071   : > { %v9406_v48 = vpack.c.bf16 %v3616_v40, %v3615_v39  ;;  %v3622_v35 = vld [vmem:[#allocation25 + $0x3d8] sm:$0xff]  ;;  %v3573_v40 = vld [vmem:[#allocation25 + $0x250] sm:$0xff] }
0x1073   : > { %9333 = vmatpush3.bf16.msra.mxu1 %v9332_v8  ;;  %9365 = vmatpush3.bf16.msra.mxu0 %v9364_v46  ;;  %v3567_v8 = vld [vmem:[#allocation25 + $0x220] sm:$0xff] }
0x1074   : > { %9367 = vmatprep.subr.bf16.mxu1 %v9366_v50  ;;  %9399 = vmatprep.subr.bf16.mxu0 %v9398_v52  ;;  %v3600_v50 = vld [vmem:[#allocation25 + $0x328] sm:$0xff] }
0x1075   : > { %v9408_v7 = vpack.c.bf16 %v3600_v50, %v3599_v49  ;;  %v3623_v49 = vld [vmem:[#allocation25 + $0x3e0] sm:$0xff]  ;;  %v3624_v50 = vld [vmem:[#allocation25 + $0x3e8] sm:$0xff] }
0x1111   : > { %v2981_v5 = vpop.f32.mrb[22].mxu1  ;;  %v3052_v6 = vpop.f32.mrb[20].mxu0 }
0x1112   : > { %v2982_v10 = vadd.f32 %v2981_v5, %v2835_v63  ;;  %v3053_v11 = vadd.f32 %v3052_v6, %v2843_v2  ;;  %v2983_v12 = vpop.f32.mrb[23].mxu1  ;;  %v3054_v13 = vpop.f32.mrb[21].mxu0  ;;  %v3586_v63 = vld [vmem:[#allocation25 + $0x2b8] sm:$0xff]  ;;  %v3617_v2 = vld [vmem:[#allocation25 + $0x3b0] sm:$0xff]  ;;  %v9376_v6 = vpack.c.bf16 %v3568_v44, %v3567_v8  ;;  %v9418_v44 = vpack.c.bf16 %v3622_v35, %v3621_v34  ;;  %v3675_v34 = vld [vmem:[#allocation25 + $0x580] sm:$0xff] }
0x1113   : > { %v2984_v17 = vadd.f32 %v2983_v12, %v2839_v3  ;;  %v3055_v18 = vadd.f32 %v3054_v13, %v2847_v4  ;;  %v3618_v3 = vld [vmem:[#allocation25 + $0x3b8] sm:$0xff]  ;;  %v3601_v13 = vld [vmem:[#allocation25 + $0x330] sm:$0xff]  ;;  %v3676_v35 = vld [vmem:[#allocation25 + $0x588] sm:$0xff] }
0x1114   : > { %v3483_v55 = vmax.f32 %v2982_v10, 0.0  ;;  %v3485_v31 = vmax.f32 %v3053_v11, 0.0  ;;  %v3570_v10 = vld [vmem:[#allocation25 + $0x238] sm:$0xff]  ;;  %v9378_v11 = vpack.c.bf16 %v3586_v63, %v3585_v51  ;;  %v9410_v12 = vpack.c.bf16 %v3618_v3, %v3617_v2  ;;  %v3575_v3 = vld [vmem:[#allocation25 + $0x260] sm:$0xff] }
0x1115   : > { %v3484_v25 = vmax.f32 %v2984_v17, 0.0  ;;  %v3486_v26 = vmax.f32 %v3055_v18, 0.0  ;;  %v3619_v17 = vld [vmem:[#allocation25 + $0x3c0] sm:$0xff]  ;;  %v3620_v18 = vld [vmem:[#allocation25 + $0x3c8] sm:$0xff]  ;;  %v9380_v24 = vpack.c.bf16 %v3570_v10, %v3569_v9  ;;  %v11966_v51 = vsub.s32 4, %v11912_v54 }
0x1116   : > { %v3607_v10 = vld [vmem:[#allocation25 + $0x360] sm:$0xff] }
0x1117   : > { %3826 = vmatprep.mubr.f32.mxu1 %v3484_v25  ;;  %3896 = vmatprep.mubr.f32.mxu0 %v3486_v26  ;;  %v9412_v25 = vpack.c.bf16 %v3602_v14, %v3601_v13  ;;  %v3571_v26 = vld [vmem:[#allocation25 + $0x240] sm:$0xff]  ;;  %v3594_v13 = vld [vmem:[#allocation25 + $0x2f8] sm:$0xff]  ;;  %v3625_v14 = vld [vmem:[#allocation25 + $0x3f0] sm:$0xff]  ;;  %v2851_v16 = vrot.slane %v11920_v60, %v11966_v51 }
0x1118   : > { %3827 = vmatmul.mubr.f32.vlgmr.msra.gmra.mrb[30].mxu1 %v3483_v55  ;;  %3897 = vmatmul.mubr.f32.vlgmr.msra.gmra.mrb[28].mxu0 %v3485_v31  ;;  %v9414_v55 = vpack.c.bf16 %v3620_v18, %v3619_v17  ;;  %v3603_v31 = vld [vmem:[#allocation25 + $0x340] sm:$0xff] }
0x1119   : > { %v11946_v41 = vpop.f32.mrb[24].mxu1  ;;  %v11948_v42 = vpop.f32.mrb[22].mxu0  ;;  %9369 = vmatpush3.bf16.msra.mxu1 %v9368_v27  ;;  %9401 = vmatpush3.bf16.msra.mxu0 %v9400_v28  ;;  %v3572_v27 = vld [vmem:[#allocation25 + $0x248] sm:$0xff] }
0x111a   : > { %v3125_v45 = vpop.f32.mrb[25].mxu1  ;;  %v3196_v46 = vpop.f32.mrb[23].mxu0  ;;  %9371 = vmatprep.subr.bf16.mxu1 %v9370_v57  ;;  %9403 = vmatprep.subr.bf16.mxu0 %v9402_v32  ;;  %v3604_v57 = vld [vmem:[#allocation25 + $0x348] sm:$0xff]  ;;  %v3589_v32 = vld [vmem:[#allocation25 + $0x2d0] sm:$0xff]  ;;  %v9384_v38 = vpack.c.bf16 %v3572_v27, %v3571_v26 }
0x111b   : > { %v3126_v52 = vadd.f32 %v3125_v45, %v2855_v36  ;;  %v3197_v53 = vadd.f32 %v3196_v46, %v2863_v37  ;;  %v11959_v36 = vsub.s32 6, %v11912_v54  ;;  %v11961_v37 = vld [vmem:[#allocation23 + $0x8] sm:$0xff]  ;;  %v9416_v39 = vpack.c.bf16 %v3604_v57, %v3603_v31  ;;  %v3605_v45 = vld [vmem:[#allocation25 + $0x350] sm:$0xff]  ;;  %v3606_v46 = vld [vmem:[#allocation25 + $0x358] sm:$0xff] }
0x111c   : > { %v9386_v8 = vpack.c.bf16 %v3590_v33, %v3589_v32  ;;  %v9420_v2 = vpack.c.bf16 %v3606_v46, %v3605_v45  ;;  %v9422_v54 = vpack.c.bf16 %v3624_v50, %v3623_v49  ;;  %v3609_v26 = vld [vmem:[#allocation25 + $0x370] sm:$0xff]  ;;  %v3610_v31 = vld [vmem:[#allocation25 + $0x378] sm:$0xff]  ;;  %v3643_v57 = vld [vmem:[#allocation25 + $0x480] sm:$0xff]  ;;  %v2871_v33 = vrot.slane %v11961_v37, %v11923_v61 }
0x111d   : > { %v3488_v4 = vmax.f32 %v3126_v52, 0.0  ;;  %v3490_v5 = vmax.f32 %v3197_v53, 0.0  ;;  %9373 = vmatpush3.bf16.msra.mxu1 %v9372_v59  ;;  %9405 = vmatpush3.bf16.msra.mxu0 %v9404_v43  ;;  %v3574_v59 = vld [vmem:[#allocation25 + $0x258] sm:$0xff]  ;;  %v2891_v43 = vrot.slane %v11961_v37, %v11959_v36  ;;  %v2859_v27 = vrot.slane %v11920_v60, %v11959_v36  ;;  %v3644_v32 = vld [vmem:[#allocation25 + $0x488] sm:$0xff]  ;;  %v3645_v49 = vld [vmem:[#allocation25 + $0x490] sm:$0xff] }
0x111e   : > { %9375 = vmatprep.subr.bf16.mxu1 %v9374_v47  ;;  %9407 = vmatprep.subr.bf16.mxu0 %v9406_v48  ;;  %v3591_v47 = vld [vmem:[#allocation25 + $0x2e0] sm:$0xff]  ;;  %v3592_v48 = vld [vmem:[#allocation25 + $0x2e8] sm:$0xff]  ;;  %v9388_v63 = vpack.c.bf16 %v3574_v59, %v3573_v40  ;;  %v9428_v40 = vpack.c.bf16 %v3610_v31, %v3609_v26  ;;  %v9430_v60 = vpack.c.bf16 %v3644_v32, %v3643_v57  ;;  %v3649_v57 = vld [vmem:[#allocation25 + $0x4b0] sm:$0xff] }
0x111f   : > { %3966 = vmatprep.mubr.f32.mxu1 %v3488_v4  ;;  %4036 = vmatprep.mubr.f32.mxu0 %v3490_v5  ;;  %v3576_v4 = vld [vmem:[#allocation25 + $0x268] sm:$0xff]  ;;  %v9390_v9 = vpack.c.bf16 %v3592_v48, %v3591_v47  ;;  %v3124_v59 = vadd.f32 %v11946_v41, %v2851_v16  ;;  %v3659_v47 = vld [vmem:[#allocation25 + $0x500] sm:$0xff]  ;;  %v3650_v32 = vld [vmem:[#allocation25 + $0x4b8] sm:$0xff] }
0x1120   : > { %v9392_v17 = vpack.c.bf16 %v3576_v4, %v3575_v3  ;;  %v3628_v45 = vld [vmem:[#allocation25 + $0x408] sm:$0xff]  ;;  %v3679_v16 = vld [vmem:[#allocation25 + $0x5a0] sm:$0xff] }
0x1121   : > { %v11950_v21 = vpop.f32.mrb[26].mxu1  ;;  %v11952_v23 = vpop.f32.mrb[24].mxu0  ;;  %9377 = vmatpush3.bf16.msra.mxu1 %v9376_v6  ;;  %9409 = vmatpush3.bf16.msra.mxu0 %v9408_v7  ;;  %v3660_v48 = vld [vmem:[#allocation25 + $0x508] sm:$0xff]  ;;  %v3487_v3 = vmax.f32 %v3124_v59, 0.0  ;;  %v3631_v26 = vld [vmem:[#allocation25 + $0x420] sm:$0xff]  ;;  %v3665_v59 = vld [vmem:[#allocation25 + $0x530] sm:$0xff] }
0x1122   : > { %v11954_v28 = vpop.f32.mrb[27].mxu1  ;;  %v11956_v29 = vpop.f32.mrb[25].mxu0  ;;  %9379 = vmatprep.subr.bf16.mxu1 %v9378_v11  ;;  %9411 = vmatprep.subr.bf16.mxu0 %v9410_v12  ;;  %v3608_v11 = vld [vmem:[#allocation25 + $0x368] sm:$0xff]  ;;  %v3593_v12 = vld [vmem:[#allocation25 + $0x2f0] sm:$0xff]  ;;  %v9464_v4 = vpack.c.bf16 %v3660_v48, %v3659_v47 }
0x1123   : > { %v9424_v18 = vpack.c.bf16 %v3608_v11, %v3607_v10  ;;  %v3268_v46 = vadd.f32 %v11954_v28, %v2871_v33  ;;  %v3661_v10 = vld [vmem:[#allocation25 + $0x510] sm:$0xff]  ;;  %v3664_v31 = vld [vmem:[#allocation25 + $0x528] sm:$0xff] }
0x1124   : > { %v3681_v33 = vld [vmem:[#allocation25 + $0x5b0] sm:$0xff]  ;;  %v3684_v47 = vld [vmem:[#allocation25 + $0x5c8] sm:$0xff] }
0x1125   : > { %9381 = vmatpush3.bf16.msra.mxu1 %v9380_v24  ;;  %9413 = vmatpush3.bf16.msra.mxu0 %v9412_v25  ;;  %v3577_v24 = vld [vmem:[#allocation25 + $0x270] sm:$0xff]  ;;  %v3578_v25 = vld [vmem:[#allocation25 + $0x278] sm:$0xff]  ;;  %v3492_v28 = vmax.f32 %v3268_v46, 0.0  ;;  %v3683_v46 = vld [vmem:[#allocation25 + $0x5c0] sm:$0xff] }
0x1126   : > { %9383 = vmatprep.subr.bf16.mxu1 %v9382_v30  ;;  %9415 = vmatprep.subr.bf16.mxu0 %v9414_v55  ;;  %v9394_v30 = vpack.c.bf16 %v3594_v13, %v3593_v12  ;;  %v9426_v55 = vpack.c.bf16 %v3626_v15, %v3625_v14  ;;  %v3662_v13 = vld [vmem:[#allocation25 + $0x518] sm:$0xff]  ;;  %v3647_v14 = vld [vmem:[#allocation25 + $0x4a0] sm:$0xff] }
0x1129   : > { %v11968_v52 = vpop.f32.mrb[28].mxu1  ;;  %v3478_v53 = vpop.f32.mrb[26].mxu0  ;;  %9385 = vmatpush3.bf16.msra.mxu1 %v9384_v38  ;;  %9417 = vmatpush3.bf16.msra.mxu0 %v9416_v39  ;;  %v2879_v38 = vrot.slane %v11961_v37, %v11926_v62  ;;  %v9396_v39 = vpack.c.bf16 %v3578_v25, %v3577_v24  ;;  %v9468_v24 = vpack.c.bf16 %v3662_v13, %v3661_v10  ;;  %v3638_v13 = vld [vmem:[#allocation25 + $0x458] sm:$0xff] }
0x112a   : > { %v11970_v5 = vadd.f32 %v3478_v53, %v2891_v43  ;;  %v11972_v6 = vpop.f32.mrb[29].mxu1  ;;  %v11974_v7 = vpop.f32.mrb[27].mxu0  ;;  %9387 = vmatprep.subr.bf16.mxu1 %v9386_v8  ;;  %9419 = vmatprep.subr.bf16.mxu0 %v9418_v44  ;;  %v3195_v43 = vadd.f32 %v11948_v42, %v2859_v27  ;;  %v9462_v8 = vpack.c.bf16 %v3676_v35, %v3675_v34  ;;  %v3627_v44 = vld [vmem:[#allocation25 + $0x400] sm:$0xff]  ;;  %v3646_v53 = vld [vmem:[#allocation25 + $0x498] sm:$0xff]  ;;  %v3632_v27 = vld [vmem:[#allocation25 + $0x428] sm:$0xff] }
0x112b   : > { %v3339_v50 = vadd.f32 %v11956_v29, %v2879_v38  ;;  %v9432_v41 = vpack.c.bf16 %v3628_v45, %v3627_v44  ;;  %v9434_v11 = vpack.c.bf16 %v3646_v53, %v3645_v49  ;;  %v3648_v29 = vld [vmem:[#allocation25 + $0x4a8] sm:$0xff]  ;;  %v3682_v34 = vld [vmem:[#allocation25 + $0x5b8] sm:$0xff]  ;;  %v9440_v35 = vpack.c.bf16 %v3632_v27, %v3631_v26  ;;  %v3651_v44 = vld [vmem:[#allocation25 + $0x4c0] sm:$0xff] }
0x112c   : > { %v3489_v42 = vmax.f32 %v3195_v43, 0.0  ;;  %v9438_v25 = vpack.c.bf16 %v3648_v29, %v3647_v14  ;;  %v9474_v43 = vpack.c.bf16 %v3682_v34, %v3681_v33  ;;  %v3652_v45 = vld [vmem:[#allocation25 + $0x4c8] sm:$0xff]  ;;  %v3635_v53 = vld [vmem:[#allocation25 + $0x440] sm:$0xff]  ;;  %v3669_v14 = vld [vmem:[#allocation25 + $0x550] sm:$0xff] }
0x112d   : > { %9389 = vmatpush3.bf16.msra.mxu1 %v9388_v63  ;;  %9421 = vmatpush3.bf16.msra.mxu0 %v9420_v2  ;;  %v3677_v63 = vld [vmem:[#allocation25 + $0x590] sm:$0xff]  ;;  %v3678_v2 = vld [vmem:[#allocation25 + $0x598] sm:$0xff]  ;;  %v3494_v15 = vmax.f32 %v3339_v50, 0.0  ;;  %v9446_v50 = vpack.c.bf16 %v3652_v45, %v3651_v44  ;;  %v2875_v45 = vrot.slane %v11961_v37, %v11918_v58 }
0x112e   : > { %9391 = vmatprep.subr.bf16.mxu1 %v9390_v9  ;;  %9423 = vmatprep.subr.bf16.mxu0 %v9422_v54  ;;  %v3629_v9 = vld [vmem:[#allocation25 + $0x410] sm:$0xff]  ;;  %v3630_v54 = vld [vmem:[#allocation25 + $0x418] sm:$0xff]  ;;  %v9466_v12 = vpack.c.bf16 %v3678_v2, %v3677_v63  ;;  %v3636_v63 = vld [vmem:[#allocation25 + $0x448] sm:$0xff] }
0x112f   : > { %v3667_v2 = vld [vmem:[#allocation25 + $0x540] sm:$0xff]  ;;  %v9448_v10 = vpack.c.bf16 %v3636_v63, %v3635_v53  ;;  %v3657_v33 = vld [vmem:[#allocation25 + $0x4f0] sm:$0xff]  ;;  %v3658_v34 = vld [vmem:[#allocation25 + $0x4f8] sm:$0xff] }
0x1130   : > { %v3673_v44 = vld [vmem:[#allocation25 + $0x570] sm:$0xff]  ;;  %v3739_v53 = vld [vmem:[#allocation25 + $0x780] sm:$0xff]  ;;  %v3740_v63 = vld [vmem:[#allocation25 + $0x788] sm:$0xff] }
0x1131   : > { %9393 = vmatpush3.bf16.msra.mxu1 %v9392_v17  ;;  %9425 = vmatpush3.bf16.msra.mxu0 %v9424_v18  ;;  %v3680_v17 = vld [vmem:[#allocation25 + $0x5a8] sm:$0xff]  ;;  %v9436_v18 = vpack.c.bf16 %v3630_v54, %v3629_v9  ;;  %v3685_v9 = vld [vmem:[#allocation25 + $0x5d0] sm:$0xff]  ;;  %v3686_v54 = vld [vmem:[#allocation25 + $0x5d8] sm:$0xff] }
0x1132   : > { %9395 = vmatprep.subr.bf16.mxu1 %v9394_v30  ;;  %9427 = vmatprep.subr.bf16.mxu0 %v9426_v55  ;;  %v3663_v30 = vld [vmem:[#allocation25 + $0x520] sm:$0xff]  ;;  %v9470_v55 = vpack.c.bf16 %v3680_v17, %v3679_v16  ;;  %v9482_v29 = vpack.c.bf16 %v3686_v54, %v3685_v9  ;;  %v3656_v17 = vld [vmem:[#allocation25 + $0x4e8] sm:$0xff] }
0x1133   : > { %v9472_v38 = vpack.c.bf16 %v3664_v31, %v3663_v30  ;;  %v3655_v16 = vld [vmem:[#allocation25 + $0x4e0] sm:$0xff]  ;;  %v3692_v54 = vld [vmem:[#allocation25 + $0x608] sm:$0xff] }
0x1134   : > { %v9454_v27 = vpack.c.bf16 %v3656_v17, %v3655_v16  ;;  %v3639_v30 = vld [vmem:[#allocation25 + $0x460] sm:$0xff]  ;;  %v3741_v16 = vld [vmem:[#allocation25 + $0x790] sm:$0xff]  ;;  %v3742_v17 = vld [vmem:[#allocation25 + $0x798] sm:$0xff] }
0x1135   : > { %9397 = vmatpush3.bf16.msra.mxu1 %v9396_v39  ;;  %9429 = vmatpush3.bf16.msra.mxu0 %v9428_v40  ;;  %v9442_v39 = vpack.c.bf16 %v3650_v32, %v3649_v57  ;;  %v3633_v40 = vld [vmem:[#allocation25 + $0x430] sm:$0xff]  ;;  %v3671_v31 = vld [vmem:[#allocation25 + $0x560] sm:$0xff]  ;;  %v3672_v32 = vld [vmem:[#allocation25 + $0x568] sm:$0xff] }
0x1136   : > { %9431 = vmatprep.subr.bf16.mxu1 %v9430_v60  ;;  %9463 = vmatprep.subr.bf16.mxu0 %v9462_v8  ;;  %v3634_v60 = vld [vmem:[#allocation25 + $0x438] sm:$0xff]  ;;  %v3691_v9 = vld [vmem:[#allocation25 + $0x600] sm:$0xff] }
0x1137   : > { %v3666_v8 = vld [vmem:[#allocation25 + $0x538] sm:$0xff]  ;;  %v9444_v48 = vpack.c.bf16 %v3634_v60, %v3633_v40  ;;  %v2867_v40 = vrot.slane %v11961_v37, %v11915_v56  ;;  %v9488_v60 = vpack.c.bf16 %v3672_v32, %v3671_v31  ;;  %v3712_v31 = vld [vmem:[#allocation25 + $0x6a8] sm:$0xff]  ;;  %v3743_v32 = vld [vmem:[#allocation25 + $0x7a0] sm:$0xff] }
0x1138   : > { %3967 = vmatmul.mubr.f32.vlgmr.msra.gmra.mrb[32].mxu1 %v3487_v3  ;;  %4037 = vmatmul.mubr.f32.vlgmr.msra.gmra.mrb[30].mxu0 %v3489_v42  ;;  %v9476_v49 = vpack.c.bf16 %v3666_v8, %v3665_v59  ;;  %v3668_v3 = vld [vmem:[#allocation25 + $0x548] sm:$0xff]  ;;  %v3653_v42 = vld [vmem:[#allocation25 + $0x4d0] sm:$0xff]  ;;  %v9458_v59 = vpack.c.bf16 %v3658_v34, %v3657_v33  ;;  %v3642_v8 = vld [vmem:[#allocation25 + $0x478] sm:$0xff] }
0x1139   : > { %9433 = vmatpush3.bf16.msra.mxu1 %v9432_v41  ;;  %4106 = vmatprep.mubr.f32.mxu1 %v3492_v28  ;;  %v9478_v41 = vpack.c.bf16 %v3684_v47, %v3683_v46  ;;  %v9480_v28 = vpack.c.bf16 %v3668_v3, %v3667_v2  ;;  %v3674_v47 = vld [vmem:[#allocation25 + $0x578] sm:$0xff]  ;;  %v2895_v2 = vrot.slane %v11961_v37, %v11940_v20  ;;  %v3744_v33 = vld [vmem:[#allocation25 + $0x7a8] sm:$0xff] }
0x113a   : > { %9465 = vmatpush3.bf16.msra.mxu0 %v9464_v4  ;;  %4176 = vmatprep.mubr.f32.mxu0 %v3494_v15  ;;  %v3654_v4 = vld [vmem:[#allocation25 + $0x4d8] sm:$0xff]  ;;  %v3266_v3 = vadd.f32 %v11950_v21, %v2867_v40  ;;  %v9496_v21 = vpack.c.bf16 %v3692_v54, %v3691_v9  ;;  %v3695_v40 = vld [vmem:[#allocation25 + $0x620] sm:$0xff]  ;;  %v3748_v54 = vld [vmem:[#allocation25 + $0x7c8] sm:$0xff] }
0x113b   : > { %9435 = vmatprep.subr.bf16.mxu1 %v9434_v11  ;;  %9467 = vmatprep.subr.bf16.mxu0 %v9466_v12  ;;  %v9450_v11 = vpack.c.bf16 %v3654_v4, %v3653_v42  ;;  %v3637_v12 = vld [vmem:[#allocation25 + $0x450] sm:$0xff]  ;;  %v3670_v15 = vld [vmem:[#allocation25 + $0x558] sm:$0xff]  ;;  %v9492_v42 = vpack.c.bf16 %v3674_v47, %v3673_v44  ;;  %v3747_v9 = vld [vmem:[#allocation25 + $0x7c0] sm:$0xff] }
0x113c   : > { %v9484_v26 = vpack.c.bf16 %v3670_v15, %v3669_v14  ;;  %v3709_v14 = vld [vmem:[#allocation25 + $0x690] sm:$0xff]  ;;  %v3481_v15 = vadd.f32 %v11974_v7, %v2895_v2  ;;  %v9530_v7 = vpack.c.bf16 %v3742_v17, %v3741_v16  ;;  %v3746_v47 = vld [vmem:[#allocation25 + $0x7b8] sm:$0xff] }
0x113d   : > { %9437 = vmatpush3.bf16.msra.mxu1 %v9436_v18  ;;  %v3687_v18 = vld [vmem:[#allocation25 + $0x5e0] sm:$0xff]  ;;  %v3713_v44 = vld [vmem:[#allocation25 + $0x6b0] sm:$0xff]  ;;  %v3718_v16 = vld [vmem:[#allocation25 + $0x6d8] sm:$0xff] }
0x113e   : > { %9469 = vmatpush3.bf16.msra.mxu0 %v9468_v24  ;;  %9439 = vmatprep.subr.bf16.mxu1 %v9438_v25  ;;  %v3688_v24 = vld [vmem:[#allocation25 + $0x5e8] sm:$0xff]  ;;  %v9452_v25 = vpack.c.bf16 %v3638_v13, %v3637_v12  ;;  %v3498_v34 = vmax.f32 %v3481_v15, 0.0  ;;  %v3729_v2 = vld [vmem:[#allocation25 + $0x730] sm:$0xff] }
0x113f   : > { %9471 = vmatprep.subr.bf16.mxu0 %v9470_v55  ;;  %v3640_v55 = vld [vmem:[#allocation25 + $0x468] sm:$0xff]  ;;  %v9486_v57 = vpack.c.bf16 %v3688_v24, %v3687_v18  ;;  %v3491_v18 = vmax.f32 %v3266_v3, 0.0  ;;  %v3730_v3 = vld [vmem:[#allocation25 + $0x738] sm:$0xff]  ;;  %v3749_v17 = vld [vmem:[#allocation25 + $0x7d0] sm:$0xff] }
0x1140   : > { %v3724_v12 = vld [vmem:[#allocation25 + $0x708] sm:$0xff] }
0x1141   : > { %9441 = vmatpush3.bf16.msra.mxu1 %v9440_v35  ;;  %v3689_v35 = vld [vmem:[#allocation25 + $0x5f0] sm:$0xff]  ;;  %v3732_v15 = vld [vmem:[#allocation25 + $0x748] sm:$0xff] }
0x1142   : > { %9473 = vmatpush3.bf16.msra.mxu0 %v9472_v38  ;;  %9443 = vmatprep.subr.bf16.mxu1 %v9442_v39  ;;  %v3690_v38 = vld [vmem:[#allocation25 + $0x5f8] sm:$0xff]  ;;  %v9456_v39 = vpack.c.bf16 %v3640_v55, %v3639_v30 }
0x1143   : > { %9475 = vmatprep.subr.bf16.mxu0 %v9474_v43  ;;  %v3641_v43 = vld [vmem:[#allocation25 + $0x470] sm:$0xff]  ;;  %v9490_v46 = vpack.c.bf16 %v3690_v38, %v3689_v35  ;;  %v3726_v55 = vld [vmem:[#allocation25 + $0x718] sm:$0xff] }
0x1145   : > { %9445 = vmatpush3.bf16.msra.mxu1 %v9444_v48  ;;  %v3707_v48 = vld [vmem:[#allocation25 + $0x680] sm:$0xff] }
0x1146   : > { %9477 = vmatpush3.bf16.msra.mxu0 %v9476_v49  ;;  %9447 = vmatprep.subr.bf16.mxu1 %v9446_v50  ;;  %v3708_v49 = vld [vmem:[#allocation25 + $0x688] sm:$0xff]  ;;  %v2887_v50 = vrot.slane %v11961_v37, %v11937_v19 }
0x1147   : > { %9479 = vmatprep.subr.bf16.mxu0 %v9478_v41  ;;  %v9460_v41 = vpack.c.bf16 %v3642_v8, %v3641_v43  ;;  %v9494_v4 = vpack.c.bf16 %v3708_v49, %v3707_v48  ;;  %v9534_v43 = vpack.c.bf16 %v3744_v33, %v3743_v32  ;;  %v3728_v8 = vld [vmem:[#allocation25 + $0x728] sm:$0xff] }
0x1148   : > { %v3410_v13 = vadd.f32 %v11972_v6, %v2887_v50  ;;  %v3711_v6 = vld [vmem:[#allocation25 + $0x6a0] sm:$0xff]  ;;  %v3752_v32 = vld [vmem:[#allocation25 + $0x7e8] sm:$0xff] }
0x1149   : > { %9449 = vmatpush3.bf16.msra.mxu1 %v9448_v10  ;;  %v3337_v10 = vadd.f32 %v11952_v23, %v2875_v45  ;;  %v3694_v23 = vld [vmem:[#allocation25 + $0x618] sm:$0xff] }
0x114a   : > { %9481 = vmatpush3.bf16.msra.mxu0 %v9480_v28  ;;  %9451 = vmatprep.subr.bf16.mxu1 %v9450_v11  ;;  %v9526_v28 = vpack.c.bf16 %v3740_v63, %v3739_v53  ;;  %v3723_v11 = vld [vmem:[#allocation25 + $0x700] sm:$0xff]  ;;  %v3714_v45 = vld [vmem:[#allocation25 + $0x6b8] sm:$0xff]  ;;  %v3697_v53 = vld [vmem:[#allocation25 + $0x630] sm:$0xff] }
0x114b   : > { %9483 = vmatprep.subr.bf16.mxu0 %v9482_v29  ;;  %v3710_v29 = vld [vmem:[#allocation25 + $0x698] sm:$0xff]  ;;  %v9528_v24 = vpack.c.bf16 %v3724_v12, %v3723_v11  ;;  %v9506_v50 = vpack.c.bf16 %v3714_v45, %v3713_v44  ;;  %v3699_v12 = vld [vmem:[#allocation25 + $0x640] sm:$0xff]  ;;  %v3753_v44 = vld [vmem:[#allocation25 + $0x7f0] sm:$0xff] }
0x114c   : > { %v9498_v30 = vpack.c.bf16 %v3710_v29, %v3709_v14  ;;  %v3698_v63 = vld [vmem:[#allocation25 + $0x638] sm:$0xff]  ;;  %v3731_v14 = vld [vmem:[#allocation25 + $0x740] sm:$0xff]  ;;  %v9542_v29 = vpack.c.bf16 %v3748_v54, %v3747_v9  ;;  %v3497_v9 = vmax.f32 %v11970_v5, 0.0 }
0x114d   : > { %9453 = vmatpush3.bf16.msra.mxu1 %v9452_v25  ;;  %v3693_v25 = vld [vmem:[#allocation25 + $0x610] sm:$0xff]  ;;  %v3754_v45 = vld [vmem:[#allocation25 + $0x7f8] sm:$0xff] }
0x114e   : > { %9485 = vmatpush3.bf16.msra.mxu0 %v9484_v26  ;;  %9455 = vmatprep.subr.bf16.mxu1 %v9454_v27  ;;  %v3725_v26 = vld [vmem:[#allocation25 + $0x710] sm:$0xff]  ;;  %v3493_v27 = vmax.f32 %v3337_v10, 0.0  ;;  %v9500_v35 = vpack.c.bf16 %v3694_v23, %v3693_v25  ;;  %v9508_v10 = vpack.c.bf16 %v3698_v63, %v3697_v53  ;;  %v9544_v25 = vpack.c.bf16 %v3732_v15, %v3731_v14  ;;  %v3706_v53 = vld [vmem:[#allocation25 + $0x678] sm:$0xff] }
0x114f   : > { %9487 = vmatprep.subr.bf16.mxu0 %v9486_v57  ;;  %v3496_v57 = vmax.f32 %v3410_v13, 0.0  ;;  %v9532_v38 = vpack.c.bf16 %v3726_v55, %v3725_v26  ;;  %v3700_v13 = vld [vmem:[#allocation25 + $0x648] sm:$0xff]  ;;  %v3701_v26 = vld [vmem:[#allocation25 + $0x650] sm:$0xff]  ;;  %v9554_v63 = vpack.c.bf16 %v3754_v45, %v3753_v44 }
0x1151   : > { %9457 = vmatpush3.bf16.msra.mxu1 %v9456_v39  ;;  %v9502_v39 = vpack.c.bf16 %v3712_v31, %v3711_v6  ;;  %v3734_v6 = vld [vmem:[#allocation25 + $0x758] sm:$0xff]  ;;  %v3719_v31 = vld [vmem:[#allocation25 + $0x6e0] sm:$0xff] }
0x1152   : > { %9489 = vmatpush3.bf16.msra.mxu0 %v9488_v60  ;;  %9459 = vmatprep.subr.bf16.mxu1 %v9458_v59  ;;  %v3696_v60 = vld [vmem:[#allocation25 + $0x628] sm:$0xff]  ;;  %v3727_v59 = vld [vmem:[#allocation25 + $0x720] sm:$0xff] }
0x1153   : > { %9491 = vmatprep.subr.bf16.mxu0 %v9490_v46  ;;  %v3745_v46 = vld [vmem:[#allocation25 + $0x7b0] sm:$0xff]  ;;  %v9504_v48 = vpack.c.bf16 %v3696_v60, %v3695_v40  ;;  %v9536_v49 = vpack.c.bf16 %v3728_v8, %v3727_v59  ;;  %v3735_v40 = vld [vmem:[#allocation25 + $0x760] sm:$0xff]  ;;  %v3736_v59 = vld [vmem:[#allocation25 + $0x768] sm:$0xff] }
0x1154   : > { %v3722_v8 = vld [vmem:[#allocation25 + $0x6f8] sm:$0xff] }
0x1155   : > { %9461 = vmatpush3.bf16.msra.mxu1 %v9460_v41  ;;  %v9538_v41 = vpack.c.bf16 %v3746_v47, %v3745_v46  ;;  %v2883_v47 = vrot.slane %v11961_v37, %v11966_v51 }
0x1156   : > { %9493 = vmatpush3.bf16.msra.mxu0 %v9492_v42  ;;  %9495 = vmatprep.subr.bf16.mxu1 %v9494_v4  ;;  %v3715_v42 = vld [vmem:[#allocation25 + $0x6c0] sm:$0xff]  ;;  %v3716_v4 = vld [vmem:[#allocation25 + $0x6c8] sm:$0xff] }
0x1157   : > { %9527 = vmatprep.subr.bf16.mxu0 %v9526_v28  ;;  %v9540_v28 = vpack.c.bf16 %v3730_v3, %v3729_v2  ;;  %v9510_v11 = vpack.c.bf16 %v3716_v4, %v3715_v42  ;;  %v3737_v2 = vld [vmem:[#allocation25 + $0x770] sm:$0xff]  ;;  %v3408_v42 = vadd.f32 %v11968_v52, %v2883_v47 }
0x1158   : > { %4107 = vmatmul.mubr.f32.vlgmr.msra.gmra.mrb[34].mxu1 %v3491_v18  ;;  %v3750_v18 = vld [vmem:[#allocation25 + $0x7d8] sm:$0xff] }
0x1159   : > { %4177 = vmatmul.mubr.f32.vlgmr.msra.gmra.mrb[32].mxu0 %v3493_v27  ;;  %9497 = vmatpush3.bf16.msra.mxu1 %v9496_v21  ;;  %v3717_v21 = vld [vmem:[#allocation25 + $0x6d0] sm:$0xff]  ;;  %v3702_v27 = vld [vmem:[#allocation25 + $0x658] sm:$0xff]  ;;  %v9546_v55 = vpack.c.bf16 %v3750_v18, %v3749_v17  ;;  %v3495_v37 = vmax.f32 %v3408_v42, 0.0 }
0x115a   : > { %4246 = vmatprep.mubr.f32.mxu1 %v3496_v57  ;;  %9529 = vmatpush3.bf16.msra.mxu0 %v9528_v24  ;;  %v9512_v24 = vpack.c.bf16 %v3700_v13, %v3699_v12  ;;  %v9514_v23 = vpack.c.bf16 %v3718_v16, %v3717_v21  ;;  %v3720_v57 = vld [vmem:[#allocation25 + $0x6e8] sm:$0xff]  ;;  %v9516_v33 = vpack.c.bf16 %v3702_v27, %v3701_v26  ;;  %v4343_v47 = vld [vmem:[#allocation7 + $0x20] sm:$0xff] }
0x115b   : > { %4316 = vmatprep.mubr.f32.mxu0 %v3498_v34  ;;  %9499 = vmatprep.subr.bf16.mxu1 %v9498_v30  ;;  %v3733_v30 = vld [vmem:[#allocation25 + $0x750] sm:$0xff] }
0x115c   : > { %9531 = vmatprep.subr.bf16.mxu0 %v9530_v7  ;;  %v3751_v7 = vld [vmem:[#allocation25 + $0x7e0] sm:$0xff]  ;;  %v9548_v34 = vpack.c.bf16 %v3734_v6, %v3733_v30 }
0x115d   : > { %9501 = vmatpush3.bf16.msra.mxu1 %v9500_v35  ;;  %v9518_v35 = vpack.c.bf16 %v3720_v57, %v3719_v31  ;;  %v9550_v60 = vpack.c.bf16 %v3752_v32, %v3751_v7 }
0x115e   : > { %9533 = vmatpush3.bf16.msra.mxu0 %v9532_v38  ;;  %9503 = vmatprep.subr.bf16.mxu1 %v9502_v39  ;;  %v3703_v38 = vld [vmem:[#allocation25 + $0x660] sm:$0xff]  ;;  %v3704_v39 = vld [vmem:[#allocation25 + $0x668] sm:$0xff] }
0x115f   : > { %9535 = vmatprep.subr.bf16.mxu0 %v9534_v43  ;;  %v3721_v43 = vld [vmem:[#allocation25 + $0x6f0] sm:$0xff]  ;;  %v9520_v46 = vpack.c.bf16 %v3704_v39, %v3703_v38 }
0x1161   : > { %9505 = vmatpush3.bf16.msra.mxu1 %v9504_v48  ;;  %v9552_v48 = vpack.c.bf16 %v3736_v59, %v3735_v40 }
0x1162   : > { %9537 = vmatpush3.bf16.msra.mxu0 %v9536_v49  ;;  %9507 = vmatprep.subr.bf16.mxu1 %v9506_v50  ;;  %v9522_v49 = vpack.c.bf16 %v3722_v8, %v3721_v43  ;;  %v3705_v50 = vld [vmem:[#allocation25 + $0x670] sm:$0xff] }
0x1163   : > { %9539 = vmatprep.subr.bf16.mxu0 %v9538_v41  ;;  %v3738_v41 = vld [vmem:[#allocation25 + $0x778] sm:$0xff]  ;;  %v9524_v3 = vpack.c.bf16 %v3706_v53, %v3705_v50  ;;  %v4345_v50 = vld [vmem:[#allocation7 + $0x30] sm:$0xff]  ;;  %v4346_v53 = vld [vmem:[#allocation7 + $0x38] sm:$0xff] }
0x1164   : > { %v9556_v4 = vpack.c.bf16 %v3738_v41, %v3737_v2 }
0x1165   : > { %9509 = vmatpush3.bf16.msra.mxu1 %v9508_v10  ;;  %v8196_v10 = vld [vmem:[#allocation26] ss:$0 sm:$0xff] }
0x1166   : > { %9541 = vmatpush3.bf16.msra.mxu0 %v9540_v28  ;;  %9511 = vmatprep.subr.bf16.mxu1 %v9510_v11 }
0x1167   : > { %9543 = vmatprep.subr.bf16.mxu0 %v9542_v29 }
0x1169   : > { %9513 = vmatpush3.bf16.msra.mxu1 %v9512_v24 }
0x116a   : > { %9545 = vmatpush3.bf16.msra.mxu0 %v9544_v25  ;;  %9515 = vmatprep.subr.bf16.mxu1 %v9514_v23 }
0x116b   : > { %9547 = vmatprep.subr.bf16.mxu0 %v9546_v55 }
0x116d   : > { %9517 = vmatpush3.bf16.msra.mxu1 %v9516_v33 }
0x116e   : > { %9549 = vmatpush3.bf16.msra.mxu0 %v9548_v34  ;;  %9519 = vmatprep.subr.bf16.mxu1 %v9518_v35 }
0x116f   : > { %9551 = vmatprep.subr.bf16.mxu0 %v9550_v60 }
0x1171   : > { %9521 = vmatpush3.bf16.msra.mxu1 %v9520_v46 }
0x1172   : > { %9553 = vmatpush3.bf16.msra.mxu0 %v9552_v48  ;;  %9523 = vmatprep.subr.bf16.mxu1 %v9522_v49  ;;  %v4344_v48 = vld [vmem:[#allocation7 + $0x28] sm:$0xff] }
0x1173   : > { %9555 = vmatprep.subr.bf16.mxu0 %v9554_v63  ;;  %v9559_v49 = vpack.c.bf16 %v4344_v48, %v4343_v47  ;;  %v9562_v63 = vpack.c.bf16 %v4346_v53, %v4345_v50 }
0x1175   : > { %9525 = vmatpush3.bf16.msra.mxu1 %v9524_v3 }
0x1176   : > { %9557 = vmatpush3.bf16.msra.mxu0 %v9556_v4  ;;  %9558 = vmatprep.subr.bf16.mxu1 %v10952_v0  ;;  %v10245_v4 = vld [vmem:[#allocation28] ss:$0 sm:$0xff] }
0x1177   : > { %9073 = vmatprep.subr.mxu0 %v10954_v1 }
0x1178   : > { %4247 = vmatmul.mubr.f32.vlgmr.msra.gmra.mrb[36].mxu1 %v3495_v37 }
0x1179   : > { %4317 = vmatmul.mubr.f32.vlgmr.msra.gmra.mrb[34].mxu0 %v3497_v9  ;;  %9070 = vmatprep.mubr.msk.f32.mxu1 %vm10953_vm0, %v10954_v1  ;;  %v10246_v9 = vld [vmem:[#allocation29] ss:$0 sm:$0xff] }
0x117a   : > { %9075 = vmatprep.mubr.msk.f32.mxu0 %vm10953_vm0, %v10954_v1  ;;  %9560 = vmatpush3.bf16.msra.mxu1 %v9559_v49 }
0x117b   : > { %9561 = vmatprep.subr.bf16.mxu1 %v10952_v0 }
0x117e   : > { %9563 = vmatpush3.bf16.msra.mxu1 %v9562_v63 }
0x117f   : > { %9078 = vmatprep.subr.mxu1 %v10954_v1 }
0x11eb   : > { %v8337_v52 = vpop.f32.mrb[30].mxu1  ;;  %v8372_v54 = vpop.f32.mrb[28].mxu0 }
0x11ec   : > { %v8338_v28 = vpop.f32.mrb[31].mxu1  ;;  %v8373_v11 = vpop.f32.mrb[29].mxu0 }
0x11ed   : > { %v8339_v12 = vadd.f32 %v8338_v28, %v8337_v52  ;;  %v8374_v13 = vadd.f32 %v8373_v11, %v8372_v54  ;;  %v8197_v54 = vld [vmem:[#allocation8 + $0x1] ss:$0 sm:$0xff] }
0x11ef   : > { %v3829_v14 = vadd.f32 %v8339_v12, %v8196_v10 }
0x11f1   : > { %v3899_v29 = vadd.f32 %v8374_v13, %v3829_v14 }
0x120b   : > { %v8407_v5 = vpop.f32.mrb[32].mxu1  ;;  %v8442_v15 = vpop.f32.mrb[30].mxu0 }
0x120c   : > { %v8408_v21 = vpop.f32.mrb[33].mxu1  ;;  %v8443_v16 = vpop.f32.mrb[31].mxu0 }
0x120d   : > { %v8409_v17 = vadd.f32 %v8408_v21, %v8407_v5  ;;  %v8444_v18 = vadd.f32 %v8443_v16, %v8442_v15 }
0x120f   : > { %v3969_v24 = vadd.f32 %v8409_v17, %v3899_v29 }
0x1211   : > { %v4039_v25 = vadd.f32 %v8444_v18, %v3969_v24 }
0x122b   : > { %v8477_v23 = vpop.f32.mrb[34].mxu1 }
0x122c   : > { %v8512_v26 = vpop.f32.mrb[32].mxu0  ;;  %v8478_v27 = vpop.f32.mrb[35].mxu1 }
0x122d   : > { %v8479_v30 = vadd.f32 %v8478_v27, %v8477_v23  ;;  %v8513_v55 = vpop.f32.mrb[33].mxu0 }
0x122e   : > { %v8514_v6 = vadd.f32 %v8513_v55, %v8512_v26 }
0x122f   : > { %v4109_v31 = vadd.f32 %v8479_v30, %v4039_v25 }
0x1231   : > { %v4179_v57 = vadd.f32 %v8514_v6, %v4109_v31 }
0x124b   : > { %v8547_v7 = vpop.f32.mrb[36].mxu1 }
0x124c   : > { %v8582_v32 = vpop.f32.mrb[34].mxu0  ;;  %v8548_v33 = vpop.f32.mrb[37].mxu1 }
0x124d   : > { %v8549_v34 = vadd.f32 %v8548_v33, %v8547_v7  ;;  %v8583_v35 = vpop.f32.mrb[35].mxu0 }
0x124e   : > { %v8584_v38 = vadd.f32 %v8583_v35, %v8582_v32 }
0x124f   : > { %v4249_v39 = vadd.f32 %v8549_v34, %v4179_v57 }
0x1251   : > { %v4319_v40 = vadd.f32 %v8584_v38, %v4249_v39 }
0x1253   : > { %v4322_v60 = vadd.f32 %v4319_v40, %v11888_v22 }
0x1255   : > { %v4323_v59 = vsel %vm956_vm1, %v4322_v60, 0.0 }
0x1256   : > { %4324 = vadd.xlane.f32.xlu0 %v4323_v59 }
0x12e3   : > { %v4325_v43 = vpop.xlane.xlu0 %4324 }
0x12e4   : > { %v4326_v8 = vmul.f32 0.03125, %v4325_v43 }
0x12e6   : > { %v4327_v44 = vsub.f32 %v4322_v60, %v4326_v8 }
0x12e8   : > { %v4328_v45 = vmul.f32 %v4327_v44, %v4327_v44 }
0x12ea   : > { %v4329_v46 = vsel %vm956_vm1, %v4328_v45, 0.0 }
0x12eb   : > { %4330 = vadd.xlane.f32.xlu1 %v4329_v46 }
0x1378   : > { %v4331_v22 = vpop.xlane.xlu1 %4330 }
0x1379   : > { %v4332_v2 = vmul.f32 0.03125, %v4331_v22 }
0x137b   : > { %v4333_v41 = vadd.f32 1e-05, %v4332_v2 }
0x137d   : > { %10205 = vrsqrt.f32 %v4333_v41 }
0x1387   : > { %v10206_v3 = vpop.eup %10205 }
0x1388   : > { %v4335_v42 = vmul.f32 %v10206_v3, %v4327_v44 }
0x138a   : > { %v4336_v37 = vmul.f32 %v10245_v4, %v4335_v42 }
0x138c   : > { %v12015_v52 = vadd.f32 %v10246_v9, %v4336_v37 }
0x138e   : > { %9071 = vmatmul.mubr.msk.f32.vlgmr.msra.gmra.mrb[38].mxu1 %vm956_vm1, %v12015_v52 }
0x138f   : > { %9080 = vmatprep.mubr.msk.f32.mxu1 %vm10953_vm0, %v10954_v1 }
0x1461   : > { %v4424_v10 = vpop.f32.mrb[38].mxu1 }
0x1462   : > { %v12021_v28 = vadd.f32 %v8197_v54, %v4424_v10  ;;  %v9072_v11 = vpop.f32.mrb[39].mxu1 }
0x1464   : > { %4603 = vrot.lane.b32.xlu1 %v12021_v28, %s10957_s6  ;;  %4437 = vrot.lane.b32.xlu0 %v12021_v28, %s10955_s16  ;;  %v4435_v12 = vmul.f32 0.35355338, %v12021_v28 }
0x1468   : > { %4768 = vrot.lane.b32.xlu0 %v12021_v28, %s10958_s13  ;;  %4601 = vrot.lane.b32.xlu1 %v4435_v12, %s10956_s29 }
0x146c   : > { %4933 = vrot.lane.b32.xlu0 %v12021_v28, %s10960_s20  ;;  %4766 = vrot.lane.b32.xlu1 %v4435_v12, %s10959_s7 }
0x1470   : > { %4931 = vrot.lane.b32.xlu1 %v4435_v12, %s10961_s1 }
0x14d6   : > { %v4604_v13 = vpop.permute.xlu1 %4603  ;;  %v4438_v14 = vpop.permute.xlu0 %4437 }
0x14d7   : > { %9074 = vmatpush3.xpose.msk.msra.mxu0 %vm1039_vm2, %v4438_v14 }
0x14d8   : > { %9083 = vmatprep.subr.mxu0 %v10954_v1 }
0x14da   : > { %v4602_v29 = vpop.permute.xlu1 %4601  ;;  %9076 = vmatmul.mubr.msk.f32.vlgmr.msra.gmra.mrb[36].mxu0 %vm1039_vm2, %v4435_v12  ;;  %v4769_v5 = vpop.permute.xlu0 %4768 }
0x14db   : > { %9084 = vmatpush3.xpose.msk.msra.mxu0 %vm1039_vm2, %v4604_v13  ;;  %9085 = vmatprep.mubr.msk.f32.mxu0 %vm10953_vm0, %v10954_v1 }
0x14dc   : > { %9093 = vmatprep.subr.mxu0 %v10954_v1 }
0x14de   : > { %9086 = vmatmul.mubr.msk.f32.vlgmr.msra.gmra.mrb[38].mxu0 %vm1039_vm2, %v4602_v29  ;;  %v4767_v15 = vpop.permute.xlu1 %4766  ;;  %v4934_v21 = vpop.permute.xlu0 %4933  ;;  %v4429_v29 = vld [vmem:[#allocation10 + $0x20] sm:$0xff] }
0x14df   : > { %9094 = vmatpush3.xpose.msk.msra.mxu0 %vm1039_vm2, %v4769_v5  ;;  %9095 = vmatprep.mubr.msk.f32.mxu0 %vm10953_vm0, %v10954_v1  ;;  %v4430_v5 = vld [vmem:[#allocation10 + $0x28] sm:$0xff] }
0x14e0   : > { %9103 = vmatprep.subr.mxu0 %v10954_v1 }
0x14e2   : > { %9096 = vmatmul.mubr.msk.f32.vlgmr.msra.gmra.mrb[40].mxu0 %vm1039_vm2, %v4767_v15  ;;  %v4932_v16 = vpop.permute.xlu1 %4931  ;;  %v9565_v15 = vpack.c.bf16 %v4430_v5, %v4429_v29 }
0x14e3   : > { %9104 = vmatpush3.xpose.msk.msra.mxu0 %vm1039_vm2, %v4934_v21  ;;  %9105 = vmatprep.mubr.msk.f32.mxu0 %vm10953_vm0, %v10954_v1  ;;  %v4431_v21 = vld [vmem:[#allocation10 + $0x30] sm:$0xff] }
0x14e4   : > { %9564 = vmatprep.subr.bf16.mxu0 %v10952_v0 }
0x14e6   : > { %9106 = vmatmul.mubr.msk.f32.vlgmr.msra.gmra.mrb[42].mxu0 %vm1039_vm2, %v4932_v16  ;;  %v4432_v16 = vld [vmem:[#allocation10 + $0x38] sm:$0xff] }
0x14e7   : > { %9121 = vmatprep.mubr.msk.f32.mxu0 %vm10953_vm0, %v10954_v1  ;;  %9566 = vmatpush3.bf16.msra.mxu0 %v9565_v15 }
0x14e8   : > { %9567 = vmatprep.subr.bf16.mxu0 %v10952_v0 }
0x15ad   : > { %v4510_v17 = vpop.f32.mrb[36].mxu0 }
0x15ae   : > { %v9077_v18 = vpop.f32.mrb[37].mxu0  ;;  %v4514_v24 = vsel %vm1039_vm2, %v4510_v17, -inf }
0x15af   : > { %4515 = vmax.xlane.f32.xlu0 %v4514_v24 }
0x15b1   : > { %v4675_v25 = vpop.f32.mrb[38].mxu0 }
0x15b2   : > { %v9087_v23 = vpop.f32.mrb[39].mxu0  ;;  %v4679_v26 = vsel %vm1039_vm2, %v4675_v25, -inf }
0x15b3   : > { %4680 = vmax.xlane.f32.xlu1 %v4679_v26 }
0x15b5   : > { %v4840_v27 = vpop.f32.mrb[40].mxu0 }
0x15b6   : > { %v9097_v30 = vpop.f32.mrb[41].mxu0  ;;  %v4844_v55 = vsel %vm1039_vm2, %v4840_v27, -inf }
0x15b7   : > { %4845 = vmax.xlane.f32.xlu0 %v4844_v55 }
0x15b9   : > { %v5005_v6 = vpop.f32.mrb[42].mxu0 }
0x15ba   : > { %v9107_v31 = vpop.f32.mrb[43].mxu0  ;;  %v5009_v57 = vsel %vm1039_vm2, %v5005_v6, -inf }
0x15bb   : > { %5010 = vmax.xlane.f32.xlu0 %v5009_v57 }
0x15c4   : > { %4525 = vrot.lane.b32.xlu1 %v12021_v28, %s10963_s27 }
0x163c   : > { %v4516_v7 = vpop.xlane.xlu0 %4515 }
0x163d   : > { %v4517_v32 = vsub.f32 %v4510_v17, %v4516_v7  ;;  %v9568_v17 = vpack.c.bf16 %v4432_v16, %v4431_v21  ;;  %v8215_v16 = vld [vmem:[#allocation14 + $0x1] ss:$0 sm:$0xff] }
0x163f   : > { %v4518_v33 = vmul.f32 1.442695, %v4517_v32  ;;  %9569 = vmatpush3.bf16.msra.mxu0 %v9568_v17 }
0x1640   : > { %v4681_v34 = vpop.xlane.xlu1 %4680  ;;  %9576 = vmatprep.subr.bf16.mxu0 %v10952_v0 }
0x1641   : > { %10207 = vpow2.f32 %v4518_v33  ;;  %v4682_v35 = vsub.f32 %v4675_v25, %v4681_v34  ;;  %v8211_v34 = vld [vmem:[#allocation11 + $0x1] ss:$0 sm:$0xff] }
0x1643   : > { %v4683_v38 = vmul.f32 1.442695, %v4682_v35 }
0x1644   : > { %v4526_v39 = vpop.permute.xlu1 %4525  ;;  %v4846_v40 = vpop.xlane.xlu0 %4845 }
0x1645   : > { %10209 = vpow2.f32 %v4683_v38  ;;  %v4847_v60 = vsub.f32 %v4840_v27, %v4846_v40  ;;  %9079 = vmatpush3.msra.mxu1 %v4526_v39 }
0x1646   : > { %9088 = vmatprep.subr.mxu1 %v10954_v1 }
0x1647   : > { %v4848_v59 = vmul.f32 1.442695, %v4847_v60 }
0x1648   : > { %v5011_v43 = vpop.xlane.xlu0 %5010 }
0x1649   : > { %10211 = vpow2.f32 %v4848_v59  ;;  %v5012_v8 = vsub.f32 %v5005_v6, %v5011_v43 }
0x164b   : > { %v10208_v44 = vpop.eup %10207  ;;  %v5013_v45 = vmul.f32 1.442695, %v5012_v8 }
0x164c   : > { %v4520_v46 = vsel %vm1039_vm2, %v10208_v44, 0.0 }
0x164d   : > { %10213 = vpow2.f32 %v5013_v45  ;;  %4521 = vadd.xlane.f32.xlu1 %v4520_v46  ;;  %v5305_v46 = vld [vmem:[#allocation16 + $0x20] sm:$0xff] }
0x164f   : > { %v10210_v47 = vpop.eup %10209 }
0x1650   : > { %v4685_v48 = vsel %vm1039_vm2, %v10210_v47, 0.0 }
0x1651   : > { %4686 = vadd.xlane.f32.xlu0 %v4685_v48 }
0x1653   : > { %v10212_v49 = vpop.eup %10211 }
0x1654   : > { %v4850_v50 = vsel %vm1039_vm2, %v10212_v49, 0.0 }
0x1655   : > { %4851 = vadd.xlane.f32.xlu1 %v4850_v50  ;;  %v5220_v50 = vld [vmem:[#allocation13 + $0x28] sm:$0xff] }
0x1657   : > { %v10214_v53 = vpop.eup %10213 }
0x1658   : > { %v5015_v63 = vsel %vm1039_vm2, %v10214_v53, 0.0 }
0x1659   : > { %5016 = vadd.xlane.f32.xlu0 %v5015_v63  ;;  %v5308_v63 = vld [vmem:[#allocation16 + $0x38] sm:$0xff] }
0x1666   : > { %4855 = vrot.lane.b32.xlu1 %v12021_v28, %s10964_s22 }
0x166a   : > { %5020 = vrot.lane.b32.xlu1 %v12021_v28, %s10965_s8 }
0x166f   : > { %4690 = vrot.lane.b32.xlu0 %v12021_v28, %s10962_s18 }
0x16da   : > { %v4522_v22 = vpop.xlane.xlu1 %4521 }
0x16db   : > { %10215 = vrcp.f32 %v4522_v22  ;;  %v5221_v22 = vld [vmem:[#allocation13 + $0x30] sm:$0xff] }
0x16de   : > { %v4687_v2 = vpop.xlane.xlu0 %4686 }
0x16df   : > { %10217 = vrcp.f32 %v4687_v2 }
0x16e2   : > { %v4852_v41 = vpop.xlane.xlu1 %4851 }
0x16e3   : > { %10219 = vrcp.f32 %v4852_v41  ;;  %v5222_v41 = vld [vmem:[#allocation13 + $0x38] sm:$0xff] }
0x16e5   : > { %v10216_v3 = vpop.eup %10215 }
0x16e6   : > { %v4524_v42 = vmul.f32 %v10216_v3, %v10208_v44  ;;  %v5017_v4 = vpop.xlane.xlu0 %5016  ;;  %v4856_v54 = vpop.permute.xlu1 %4855  ;;  %v9574_v3 = vpack.c.bf16 %v5222_v41, %v5221_v22 }
0x16e7   : > { %10221 = vrcp.f32 %v5017_v4 }
0x16e8   : > { %9081 = vmatmul.mubr.msk.f32.vlgmr.msra.gmra.mrb[40].mxu1 %vm1039_vm2, %v4524_v42  ;;  %v10247_v42 = vld [vmem:[%s807_s21] sm:$0xff]  ;;  %s8245_s21 = sshll.u32 %s12462_s24, 7 }
0x16e9   : > { %v10218_v37 = vpop.eup %10217  ;;  %9090 = vmatprep.mubr.msk.f32.mxu1 %vm10953_vm0, %v10954_v1 }
0x16ea   : > { %v4689_v9 = vmul.f32 %v10218_v37, %v10210_v47  ;;  %v4691_v10 = vpop.permute.xlu0 %4690  ;;  %v5021_v12 = vpop.permute.xlu1 %5020  ;;  %v5306_v47 = vld [vmem:[#allocation16 + $0x28] sm:$0xff] }
0x16eb   : > { %9089 = vmatpush3.msra.mxu1 %v4691_v10  ;;  %v9577_v48 = vpack.c.bf16 %v5306_v47, %v5305_v46  ;;  %v12110_v10 = vld [vmem:[#allocation28 + $0x1] ss:$0 sm:$0xff] }
0x16ec   : > { %9091 = vmatmul.mubr.msk.f32.vlgmr.msra.gmra.mrb[42].mxu1 %vm1039_vm2, %v4689_v9  ;;  %9098 = vmatprep.subr.mxu1 %v10954_v1 }
0x16ed   : > { %v10220_v28 = vpop.eup %10219  ;;  %9099 = vmatpush3.msra.mxu1 %v4856_v54  ;;  %9100 = vmatprep.mubr.msk.f32.mxu1 %vm10953_vm0, %v10954_v1 }
0x16ee   : > { %v4854_v11 = vmul.f32 %v10220_v28, %v10212_v49  ;;  %9108 = vmatprep.subr.mxu1 %v10954_v1  ;;  %v5219_v49 = vld [vmem:[#allocation13 + $0x20] sm:$0xff] }
0x16f0   : > { %9101 = vmatmul.mubr.msk.f32.vlgmr.msra.gmra.mrb[44].mxu1 %vm1039_vm2, %v4854_v11  ;;  %v12112_v11 = vld [vmem:[#allocation29 + $0x1] ss:$0 sm:$0xff] }
0x16f1   : > { %v10222_v13 = vpop.eup %10221  ;;  %9109 = vmatpush3.msra.mxu1 %v5021_v12  ;;  %9110 = vmatprep.mubr.msk.f32.mxu1 %vm10953_vm0, %v10954_v1 }
0x16f2   : > { %v5019_v14 = vmul.f32 %v10222_v13, %v10214_v53  ;;  %9570 = vmatprep.subr.bf16.mxu1 %v10952_v0  ;;  %v9571_v53 = vpack.c.bf16 %v5220_v50, %v5219_v49 }
0x16f4   : > { %9111 = vmatmul.mubr.msk.f32.vlgmr.msra.gmra.mrb[46].mxu1 %vm1039_vm2, %v5019_v14  ;;  %v8217_v14 = vld [vmem:[#allocation17 + $0x1] ss:$0 sm:$0xff] }
0x16f5   : > { %9132 = vmatprep.mubr.msk.f32.mxu1 %vm10953_vm0, %v10954_v1  ;;  %9572 = vmatpush3.bf16.msra.mxu1 %v9571_v53 }
0x16f6   : > { %9573 = vmatprep.subr.bf16.mxu1 %v10952_v0 }
0x16f9   : > { %9575 = vmatpush3.bf16.msra.mxu1 %v9574_v3 }
0x16fa   : > { %9146 = vmatprep.subr.mxu1 %v10954_v1 }
0x17bb   : > { %v4597_v18 = vpop.f32.mrb[40].mxu1 }
0x17bc   : > { %v9082_v24 = vpop.f32.mrb[41].mxu1 }
0x17bf   : > { %v4762_v25 = vpop.f32.mrb[42].mxu1 }
0x17c0   : > { %5097 = vrot.lane.b32.xlu0 %v4762_v25, %s10966_s9  ;;  %v9092_v23 = vpop.f32.mrb[43].mxu1 }
0x17c3   : > { %v4927_v26 = vpop.f32.mrb[44].mxu1 }
0x17c4   : > { %5101 = vrot.lane.b32.xlu1 %v4927_v26, %s10967_s5  ;;  %v9102_v27 = vpop.f32.mrb[45].mxu1 }
0x17c7   : > { %v5092_v30 = vpop.f32.mrb[46].mxu1 }
0x17c8   : > { %5105 = vrot.lane.b32.xlu0 %v5092_v30, %s10968_s12  ;;  %v9112_v55 = vpop.f32.mrb[47].mxu1 }
0x1832   : > { %v5098_v6 = vpop.permute.xlu0 %5097 }
0x1833   : > { %v5108_v57 = vsel %vm1039_vm2, %v4597_v18, %v5098_v6 }
0x1836   : > { %v5102_v31 = vpop.permute.xlu1 %5101 }
0x1837   : > { %v5109_v7 = vsel %vm1710_vm3, %v5108_v57, %v5102_v31 }
0x183a   : > { %v5106_v32 = vpop.permute.xlu0 %5105 }
0x183b   : > { %v5110_v33 = vsel %vm1712_vm4, %v5109_v7, %v5106_v32 }
0x183c   : > { %9122 = vmatmul.mubr.msk.f32.vlgmr.msra.gmra.mrb[44].mxu0 %vm956_vm1, %v5110_v33 }
0x183d   : > { %9143 = vmatprep.mubr.msk.f32.mxu0 %vm10953_vm0, %v10954_v1  ;;  %9578 = vmatpush3.bf16.msra.mxu0 %v9577_v48 }
0x183e   : > { %9579 = vmatprep.subr.bf16.mxu0 %v10952_v0 }
0x190f   : > { %v5186_v35 = vpop.f32.mrb[44].mxu0 }
0x1910   : > { %v5187_v38 = vadd.f32 %v8211_v34, %v5186_v35  ;;  %v9123_v39 = vpop.f32.mrb[45].mxu0 }
0x1912   : > { %v5190_v40 = vadd.f32 %v5187_v38, %v12015_v52  ;;  %v5307_v52 = vld [vmem:[#allocation16 + $0x30] sm:$0xff] }
0x1913   : > { %v9580_v2 = vpack.c.bf16 %v5308_v63, %v5307_v52 }
0x1914   : > { %v5191_v60 = vsel %vm956_vm1, %v5190_v40, 0.0 }
0x1915   : > { %5192 = vadd.xlane.f32.xlu1 %v5191_v60  ;;  %9581 = vmatpush3.bf16.msra.mxu0 %v9580_v2 }
0x1916   : > { %9156 = vmatprep.subr.mxu0 %v10954_v1 }
0x1918   : > { %9144 = vmatmul.mubr.msk.f32.vlgmr.msra.gmra.mrb[46].mxu0 %vm956_vm1, %v10247_v42 }
0x1919   : > { %9158 = vmatprep.mubr.msk.f32.mxu0 %vm10953_vm0, %v10954_v1 }
0x19a2   : > { %v5193_v59 = vpop.xlane.xlu1 %5192 }
0x19a3   : > { %v5194_v43 = vmul.f32 0.03125, %v5193_v59 }
0x19a5   : > { %v5195_v8 = vsub.f32 %v5190_v40, %v5194_v43 }
0x19a7   : > { %v5196_v44 = vmul.f32 %v5195_v8, %v5195_v8 }
0x19a9   : > { %v5197_v45 = vsel %vm956_vm1, %v5196_v44, 0.0 }
0x19aa   : > { %5198 = vadd.xlane.f32.xlu0 %v5197_v45 }
0x19eb   : > { %v5383_v29 = vpop.f32.mrb[46].mxu0 }
0x19ec   : > { %v12122_v5 = vadd.f32 %v8217_v14, %v5383_v29  ;;  %v9145_v15 = vpop.f32.mrb[47].mxu0 }
0x19ee   : > { %5560 = vrot.lane.b32.xlu0 %v12122_v5, %s10956_s29 }
0x1a37   : > { %v5199_v4 = vpop.xlane.xlu0 %5198 }
0x1a38   : > { %v5200_v37 = vmul.f32 0.03125, %v5199_v4 }
0x1a3a   : > { %v5201_v9 = vadd.f32 1e-05, %v5200_v37 }
0x1a3c   : > { %10223 = vrsqrt.f32 %v5201_v9 }
0x1a46   : > { %v10224_v54 = vpop.eup %10223 }
0x1a47   : > { %v5203_v28 = vmul.f32 %v10224_v54, %v5195_v8 }
0x1a49   : > { %v5210_v12 = vmul.f32 %v12110_v10, %v5203_v28 }
0x1a4b   : > { %v12116_v13 = vadd.f32 %v12112_v11, %v5210_v12 }
0x1a4d   : > { %9133 = vmatmul.mubr.msk.f32.vlgmr.msra.gmra.mrb[48].mxu1 %vm956_vm1, %v12116_v13 }
0x1a4e   : > { %9148 = vmatprep.mubr.msk.f32.mxu1 %vm10953_vm0, %v10954_v1  ;;  %9147 = vmatpush3.xpose.msk.msra.mxu1 %vm1039_vm2, %v12122_v5 }
0x1a4f   : > { %9151 = vmatprep.subr.mxu1 %v10954_v1 }
0x1a60   : > { %v5561_v21 = vpop.permute.xlu0 %5560 }
0x1a61   : > { %9157 = vmatpush3.xpose.msk.msra.mxu0 %vm1039_vm2, %v5561_v21 }
0x1a62   : > { %9166 = vmatprep.subr.mxu0 %v10954_v1 }
0x1b20   : > { %v5300_v17 = vpop.f32.mrb[48].mxu1 }
0x1b21   : > { %v5301_v18 = vadd.f32 %v8215_v16, %v5300_v17  ;;  %v9134_v24 = vpop.f32.mrb[49].mxu1 }
0x1b23   : > { %v5394_v25 = vmul.f32 0.35355338, %v5301_v18 }
0x1b25   : > { %5723 = vrot.lane.b32.xlu0 %v5394_v25, %s10959_s7  ;;  %5558 = vrot.lane.b32.xlu1 %v5394_v25, %s10956_s29 }
0x1b26   : > { %9149 = vmatmul.mubr.msk.f32.vlgmr.msra.gmra.mrb[50].mxu1 %vm1039_vm2, %v5394_v25 }
0x1b27   : > { %9153 = vmatprep.mubr.msk.f32.mxu1 %vm10953_vm0, %v10954_v1 }
0x1b29   : > { %5888 = vrot.lane.b32.xlu0 %v5394_v25, %s10961_s1  ;;  %5725 = vrot.lane.b32.xlu1 %v12122_v5, %s10959_s7  ;;  %s12483_s7 = sld [smem:[#allocation71_spill]] }
0x1b2d   : > { %5890 = vrot.lane.b32.xlu1 %v12122_v5, %s10961_s1  ;;  %s7828_s1 = scalar_lea.sflag [#allocation4], %s11638_s11 }
0x1b97   : > { %v5559_v23 = vpop.permute.xlu1 %5558  ;;  %v5724_v27 = vpop.permute.xlu0 %5723 }
0x1b98   : > { %9159 = vmatmul.mubr.msk.f32.vlgmr.msra.gmra.mrb[48].mxu0 %vm1039_vm2, %v5559_v23 }
0x1b99   : > { %9168 = vmatprep.mubr.msk.f32.mxu0 %vm10953_vm0, %v10954_v1 }
0x1b9b   : > { %v5726_v26 = vpop.permute.xlu1 %5725  ;;  %v5889_v55 = vpop.permute.xlu0 %5888 }
0x1b9c   : > { %9167 = vmatpush3.xpose.msk.msra.mxu0 %vm1039_vm2, %v5726_v26 }
0x1b9d   : > { %9176 = vmatprep.subr.mxu0 %v10954_v1 }
0x1b9f   : > { %9169 = vmatmul.mubr.msk.f32.vlgmr.msra.gmra.mrb[50].mxu0 %vm1039_vm2, %v5724_v27  ;;  %v5891_v30 = vpop.permute.xlu1 %5890 }
0x1ba0   : > { %9177 = vmatpush3.xpose.msk.msra.mxu0 %vm1039_vm2, %v5891_v30  ;;  %9178 = vmatprep.mubr.msk.f32.mxu0 %vm10953_vm0, %v10954_v1 }
0x1ba1   : > { %9582 = vmatprep.subr.bf16.mxu0 %v10952_v0 }
0x1ba3   : > { %9179 = vmatmul.mubr.msk.f32.vlgmr.msra.gmra.mrb[52].mxu0 %vm1039_vm2, %v5889_v55  ;;  %v5388_v55 = vld [vmem:[#allocation19 + $0x20] sm:$0xff] }
0x1ba4   : > { %9194 = vmatprep.mubr.msk.f32.mxu0 %vm10953_vm0, %v10954_v1 }
0x1bf9   : > { %v5467_v6 = vpop.f32.mrb[50].mxu1 }
0x1bfa   : > { %v9150_v31 = vpop.f32.mrb[51].mxu1  ;;  %v5471_v57 = vsel %vm1039_vm2, %v5467_v6, -inf }
0x1bfb   : > { %5472 = vmax.xlane.f32.xlu1 %v5471_v57  ;;  %v5390_v57 = vld [vmem:[#allocation19 + $0x30] sm:$0xff] }
0x1c6b   : > { %v5632_v7 = vpop.f32.mrb[48].mxu0 }
0x1c6c   : > { %v9160_v32 = vpop.f32.mrb[49].mxu0  ;;  %v5636_v33 = vsel %vm1039_vm2, %v5632_v7, -inf }
0x1c6d   : > { %5637 = vmax.xlane.f32.xlu0 %v5636_v33 }
0x1c72   : > { %v5797_v34 = vpop.f32.mrb[50].mxu0 }
0x1c73   : > { %v9170_v35 = vpop.f32.mrb[51].mxu0  ;;  %v5801_v38 = vsel %vm1039_vm2, %v5797_v34, -inf }
0x1c74   : > { %5802 = vmax.xlane.f32.xlu0 %v5801_v38 }
0x1c76   : > { %v5962_v39 = vpop.f32.mrb[52].mxu0 }
0x1c77   : > { %v9180_v40 = vpop.f32.mrb[53].mxu0  ;;  %v5966_v60 = vsel %vm1039_vm2, %v5962_v39, -inf }
0x1c78   : > { %5967 = vmax.xlane.f32.xlu1 %v5966_v60 }
0x1c88   : > { %v5473_v59 = vpop.xlane.xlu1 %5472 }
0x1c89   : > { %v5474_v43 = vsub.f32 %v5467_v6, %v5473_v59  ;;  %5647 = vrot.lane.b32.xlu1 %v12122_v5, %s10957_s6  ;;  %v5389_v6 = vld [vmem:[#allocation19 + $0x28] sm:$0xff] }
0x1c8a   : > { %v9583_v31 = vpack.c.bf16 %v5389_v6, %v5388_v55  ;;  %v6169_v6 = vld [vmem:[#allocation22 + $0x228] sm:$0xff] }
0x1c8b   : > { %v5475_v8 = vmul.f32 1.442695, %v5474_v43 }
0x1c8c   : > { %9584 = vmatpush3.bf16.msra.mxu0 %v9583_v31  ;;  %v6185_v31 = vld [vmem:[#allocation22 + $0x2a8] sm:$0xff] }
0x1c8d   : > { %10225 = vpow2.f32 %v5475_v8  ;;  %9585 = vmatprep.subr.bf16.mxu0 %v10952_v0 }
0x1c97   : > { %v10226_v44 = vpop.eup %10225 }
0x1c98   : > { %v5477_v45 = vsel %vm1039_vm2, %v10226_v44, 0.0 }
0x1c99   : > { %5478 = vadd.xlane.f32.xlu0 %v5477_v45 }
0x1caf   : > { %5482 = vrot.lane.b32.xlu0 %v12122_v5, %s10955_s16  ;;  %s940_s16 = scalar_lea.vmem [#allocation34], %s11641_s2  ;;  %s10969_s2 = smov [#allocation34]  }
0x1cb0   : > { %s7841_s29 = sshll.u32 %s940_s16, 4  ;;  %s10818_s24 = sshll.u32 %s10969_s2, 4  ;;  %s12303_s29 = int_to_ptr.vmem [resolvable:$true] %s7841_s29  ;;  %s10819_s24 = int_to_ptr.vmem [resolvable:$false] %s10818_s24 }
0x1cb1   : > { %s10814_s18 = scalar_lea.vmem %s12303_s29, 128  ;;  %s10820_s27 = scalar_lea.vmem %s10819_s24, 256 }
0x1cb2   : > { %p10815_p12 = scmp.ne.s32.totalorder %s12303_s29, %s10814_s18  ;;  %p10821_p0 = scmp.lt.s32.totalorder %s12303_s29, %s10819_s24 }
0x1cb3   : > { %p10822_p2 = scmp.lt.s32.totalorder %s10820_s27, %s10814_s18 }
0x1cb4   : > { %p10816_p7 = pnand %p10815_p12, %p12484_p13 }
0x1cb5   : > { %p10823_p3 = por %p10822_p2, %p10821_p0 }
0x1cb6   : > { %p10817_p9 = pneg %p10816_p7 }
0x1cb8   : > { %p10824_p6 = pnand %p10823_p3, %p10817_p9 }
0x1cfa   : > { %v5638_v46 = vpop.xlane.xlu0 %5637 }
0x1cfb   : > { %v5639_v47 = vsub.f32 %v5632_v7, %v5638_v46  ;;  %v5391_v7 = vld [vmem:[#allocation19 + $0x38] sm:$0xff]  ;;  %v8231_v46 = vld [vmem:[#allocation20 + $0x1] ss:$0 sm:$0xff] }
0x1cfc   : > { %v9586_v32 = vpack.c.bf16 %v5391_v7, %v5390_v57  ;;  %v6171_v57 = vld [vmem:[#allocation22 + $0x238] sm:$0xff]  ;;  %v9604_v7 = vpack.c.bf16 %v6185_v31, %v6169_v6  ;;  %v6193_v6 = vld [vmem:[#allocation22 + $0x2e8] sm:$0xff] }
0x1cfd   : > { %v5640_v48 = vmul.f32 1.442695, %v5639_v47  ;;  %v6179_v31 = vld [vmem:[#allocation22 + $0x278] sm:$0xff] }
0x1cfe   : > { %9587 = vmatpush3.bf16.msra.mxu0 %v9586_v32  ;;  %v6187_v32 = vld [vmem:[#allocation22 + $0x2b8] sm:$0xff] }
0x1cff   : > { %10227 = vpow2.f32 %v5640_v48 }
0x1d01   : > { %v5803_v49 = vpop.xlane.xlu0 %5802 }
0x1d02   : > { %v5804_v50 = vsub.f32 %v5797_v34, %v5803_v49 }
0x1d04   : > { %v5805_v53 = vmul.f32 1.442695, %v5804_v50 }
0x1d05   : > { %v5968_v52 = vpop.xlane.xlu1 %5967 }
0x1d06   : > { %10229 = vpow2.f32 %v5805_v53  ;;  %v5969_v63 = vsub.f32 %v5962_v39, %v5968_v52 }
0x1d08   : > { %v5970_v22 = vmul.f32 1.442695, %v5969_v63 }
0x1d09   : > { %v10228_v2 = vpop.eup %10227  ;;  %v5648_v14 = vpop.permute.xlu1 %5647 }
0x1d0a   : > { %10231 = vpow2.f32 %v5970_v22  ;;  %v5642_v41 = vsel %vm1039_vm2, %v10228_v2, 0.0 }
0x1d0b   : > { %5643 = vadd.xlane.f32.xlu1 %v5642_v41 }
0x1d10   : > { %v10230_v3 = vpop.eup %10229 }
0x1d11   : > { %v5807_v42 = vsel %vm1039_vm2, %v10230_v3, 0.0 }
0x1d12   : > { %5808 = vadd.xlane.f32.xlu0 %v5807_v42  ;;  %v6181_v42 = vld [vmem:[#allocation22 + $0x288] sm:$0xff] }
0x1d14   : > { %v10232_v4 = vpop.eup %10231 }
0x1d15   : > { %v5972_v37 = vsel %vm1039_vm2, %v10232_v4, 0.0 }
0x1d16   : > { %5973 = vadd.xlane.f32.xlu1 %v5972_v37 }
0x1d26   : > { %v5479_v9 = vpop.xlane.xlu0 %5478 }
0x1d27   : > { %10233 = vrcp.f32 %v5479_v9  ;;  %5812 = vrot.lane.b32.xlu1 %v12122_v5, %s10958_s13  ;;  %v6183_v9 = vld [vmem:[#allocation22 + $0x298] sm:$0xff] }
0x1d28   : > { %5977 = vrot.lane.b32.xlu0 %v12122_v5, %s10960_s20  ;;  %s12301_s20 = scalar_lea.hbm %s12483_s7, %s8245_s21 }
0x1d2a   : > { %v5483_v54 = vpop.permute.xlu0 %5482 }
0x1d2b   : > { %9152 = vmatpush3.msra.mxu1 %v5483_v54  ;;  %v6164_v54 = vld [vmem:[#allocation22 + $0x200] sm:$0xff] }
0x1d2c   : > { %9161 = vmatprep.subr.mxu1 %v10954_v1 }
0x1d31   : > { %v10234_v28 = vpop.eup %10233 }
0x1d32   : > { %v5481_v12 = vmul.f32 %v10234_v28, %v10226_v44  ;;  %v6180_v28 = vld [vmem:[#allocation22 + $0x280] sm:$0xff] }
0x1d34   : > { %9154 = vmatmul.mubr.msk.f32.vlgmr.msra.gmra.mrb[52].mxu1 %vm1039_vm2, %v5481_v12 }
0x1d35   : > { %9162 = vmatpush3.msra.mxu1 %v5648_v14  ;;  %9163 = vmatprep.mubr.msk.f32.mxu1 %vm10953_vm0, %v10954_v1  ;;  %v9590_v14 = vpack.c.bf16 %v6180_v28, %v6164_v54  ;;  %v6188_v28 = vld [vmem:[#allocation22 + $0x2c0] sm:$0xff] }
0x1d36   : > { %9171 = vmatprep.subr.mxu1 %v10954_v1 }
0x1d98   : > { %v5644_v29 = vpop.xlane.xlu1 %5643 }
0x1d99   : > { %10235 = vrcp.f32 %v5644_v29  ;;  %v6182_v29 = vld [vmem:[#allocation22 + $0x290] sm:$0xff] }
0x1d9f   : > { %v5809_v15 = vpop.xlane.xlu0 %5808 }
0x1da0   : > { %10237 = vrcp.f32 %v5809_v15 }
0x1da3   : > { %v10236_v5 = vpop.eup %10235  ;;  %v5974_v21 = vpop.xlane.xlu1 %5973 }
0x1da4   : > { %v5646_v16 = vmul.f32 %v10236_v5, %v10228_v2  ;;  %10239 = vrcp.f32 %v5974_v21  ;;  %v5978_v25 = vpop.permute.xlu0 %5977  ;;  %v6197_v5 = vld [vmem:[#allocation22 + $0x308] sm:$0xff] }
0x1da5   : > { %v6213_v21 = vld [vmem:[#allocation22 + $0x388] sm:$0xff] }
0x1da6   : > { %9164 = vmatmul.mubr.msk.f32.vlgmr.msra.gmra.mrb[54].mxu1 %vm1039_vm2, %v5646_v16  ;;  %v6199_v16 = vld [vmem:[#allocation22 + $0x318] sm:$0xff] }
0x1da7   : > { %v5813_v17 = vpop.permute.xlu1 %5812  ;;  %9173 = vmatprep.mubr.msk.f32.mxu1 %vm10953_vm0, %v10954_v1 }
0x1da8   : > { %9172 = vmatpush3.msra.mxu1 %v5813_v17  ;;  %v9592_v17 = vpack.c.bf16 %v6213_v21, %v6197_v5  ;;  %v6221_v5 = vld [vmem:[#allocation22 + $0x3c8] sm:$0xff]  ;;  %v6207_v21 = vld [vmem:[#allocation22 + $0x358] sm:$0xff] }
0x1da9   : > { %9181 = vmatprep.subr.mxu1 %v10954_v1 }
0x1daa   : > { %v10238_v18 = vpop.eup %10237 }
0x1dab   : > { %v5811_v24 = vmul.f32 %v10238_v18, %v10230_v3  ;;  %v6165_v3 = vld [vmem:[#allocation22 + $0x208] sm:$0xff]  ;;  %v6215_v18 = vld [vmem:[#allocation22 + $0x398] sm:$0xff] }
0x1dac   : > { %v9588_v37 = vpack.c.bf16 %v6181_v42, %v6165_v3  ;;  %v6202_v3 = vld [vmem:[#allocation22 + $0x330] sm:$0xff] }
0x1dad   : > { %9174 = vmatmul.mubr.msk.f32.vlgmr.msra.gmra.mrb[56].mxu1 %vm1039_vm2, %v5811_v24  ;;  %v6196_v24 = vld [vmem:[#allocation22 + $0x300] sm:$0xff]  ;;  %v6218_v42 = vld [vmem:[#allocation22 + $0x3b0] sm:$0xff] }
0x1dae   : > { %v10240_v23 = vpop.eup %10239  ;;  %9182 = vmatpush3.msra.mxu1 %v5978_v25  ;;  %9183 = vmatprep.mubr.msk.f32.mxu1 %vm10953_vm0, %v10954_v1  ;;  %v6212_v25 = vld [vmem:[#allocation22 + $0x380] sm:$0xff]  ;;  %v9618_v54 = vpack.c.bf16 %v6218_v42, %v6202_v3  ;;  %v6950_v3 = vld [vmem:[#allocation25 + $0x988] sm:$0xff] }
0x1daf   : > { %v5976_v26 = vmul.f32 %v10240_v23, %v10232_v4  ;;  %v6167_v4 = vld [vmem:[#allocation22 + $0x218] sm:$0xff]  ;;  %9589 = vmatprep.subr.bf16.mxu1 %v9588_v37  ;;  %v9600_v23 = vpack.c.bf16 %v6215_v18, %v6199_v16 }
0x1db0   : > { %v9596_v12 = vpack.c.bf16 %v6183_v9, %v6167_v4  ;;  %v6189_v4 = vld [vmem:[#allocation22 + $0x2c8] sm:$0xff]  ;;  %v6175_v37 = vld [vmem:[#allocation22 + $0x258] sm:$0xff] }
0x1db1   : > { %9184 = vmatmul.mubr.msk.f32.vlgmr.msra.gmra.mrb[58].mxu1 %vm1039_vm2, %v5976_v26  ;;  %v9594_v26 = vpack.c.bf16 %v6212_v25, %v6196_v24  ;;  %v6191_v9 = vld [vmem:[#allocation22 + $0x2d8] sm:$0xff]  ;;  %v6204_v24 = vld [vmem:[#allocation22 + $0x340] sm:$0xff] }
0x1db2   : > { %6380 = vmatprep.mubr.f32.mxu1 %v10954_v1  ;;  %9597 = vmatprep.subr.bf16.mxu0 %v9596_v12  ;;  %v6223_v16 = vld [vmem:[#allocation22 + $0x3d8] sm:$0xff]  ;;  %v6220_v25 = vld [vmem:[#allocation22 + $0x3c0] sm:$0xff] }
0x1db3   : > { %9591 = vmatpush1.bf16.msra.mxu1 %v9590_v14  ;;  %v9628_v14 = vpack.c.bf16 %v6191_v9, %v6175_v37  ;;  %v6902_v37 = vld [vmem:[#allocation25 + $0x808] sm:$0xff] }
0x1db4   : > { %9593 = vmatprep.subr.bf16.mxu1 %v9592_v17 }
0x1db7   : > { %9595 = vmatpush1.bf16.msra.mxu1 %v9594_v26  ;;  %v9632_v26 = vpack.c.bf16 %v6223_v16, %v6207_v21  ;;  %v6904_v21 = vld [vmem:[#allocation25 + $0x818] sm:$0xff] }
0x1db8   : > { %9605 = vmatprep.subr.bf16.mxu1 %v9604_v7  ;;  %v9626_v7 = vpack.c.bf16 %v6220_v25, %v6204_v24  ;;  %v6936_v24 = vld [vmem:[#allocation25 + $0x918] sm:$0xff]  ;;  %v6921_v25 = vld [vmem:[#allocation25 + $0x8a0] sm:$0xff] }
0x1e07   : > { %v5554_v27 = vpop.f32.mrb[52].mxu1 }
0x1e08   : > { %v9155_v30 = vpop.f32.mrb[53].mxu1 }
0x1e09   : > { %v6214_v30 = vld [vmem:[#allocation22 + $0x390] sm:$0xff] }
0x1e79   : > { %v5719_v33 = vpop.f32.mrb[54].mxu1 }
0x1e7a   : > { %6054 = vrot.lane.b32.xlu1 %v5719_v33, %s10966_s9  ;;  %v9165_v34 = vpop.f32.mrb[55].mxu1  ;;  %v9612_v33 = vpack.c.bf16 %v6187_v32, %v6171_v57  ;;  %v6195_v57 = vld [vmem:[#allocation22 + $0x2f8] sm:$0xff] }
0x1e80   : > { %v5884_v35 = vpop.f32.mrb[56].mxu1 }
0x1e81   : > { %6058 = vrot.lane.b32.xlu0 %v5884_v35, %s10967_s5  ;;  %v9175_v38 = vpop.f32.mrb[57].mxu1 }
0x1e84   : > { %v6049_v39 = vpop.f32.mrb[58].mxu1 }
0x1e85   : > { %6062 = vrot.lane.b32.xlu1 %v6049_v39, %s10968_s12  ;;  %v9185_v40 = vpop.f32.mrb[59].mxu1 }
0x1e86   : > { %v6168_v40 = vld [vmem:[#allocation22 + $0x220] sm:$0xff] }
0x1eec   : > { %v6055_v60 = vpop.permute.xlu1 %6054 }
0x1eed   : > { %v6065_v43 = vsel %vm1039_vm2, %v5554_v27, %v6055_v60  ;;  %v6198_v27 = vld [vmem:[#allocation22 + $0x310] sm:$0xff]  ;;  %v6184_v60 = vld [vmem:[#allocation22 + $0x2a0] sm:$0xff] }
0x1eee   : > { %v9602_v55 = vpack.c.bf16 %v6214_v30, %v6198_v27  ;;  %v6206_v27 = vld [vmem:[#allocation22 + $0x350] sm:$0xff] }
0x1eef   : > { %v6222_v30 = vld [vmem:[#allocation22 + $0x3d0] sm:$0xff] }
0x1ef0   : > { %v9634_v32 = vpack.c.bf16 %v6222_v30, %v6206_v27  ;;  %v6954_v27 = vld [vmem:[#allocation25 + $0x9a8] sm:$0xff] }
0x1ef3   : > { %v6059_v59 = vpop.permute.xlu0 %6058 }
0x1ef4   : > { %v6066_v8 = vsel %vm1710_vm3, %v6065_v43, %v6059_v59  ;;  %v6170_v43 = vld [vmem:[#allocation22 + $0x230] sm:$0xff] }
0x1ef7   : > { %v6063_v44 = vpop.permute.xlu1 %6062 }
0x1ef8   : > { %v6067_v45 = vsel %vm1712_vm4, %v6066_v8, %v6063_v44  ;;  %v6186_v8 = vld [vmem:[#allocation22 + $0x2b0] sm:$0xff]  ;;  %v6201_v44 = vld [vmem:[#allocation22 + $0x328] sm:$0xff] }
0x1ef9   : > { %9195 = vmatmul.mubr.msk.f32.vlgmr.msra.gmra.mrb[54].mxu0 %vm956_vm1, %v6067_v45  ;;  %v6217_v45 = vld [vmem:[#allocation22 + $0x3a8] sm:$0xff] }
0x1efa   : > { %6451 = vmatprep.mubr.f32.mxu0 %v10954_v1 }
0x1fcc   : > { %v6143_v47 = vpop.f32.mrb[54].mxu0 }
0x1fcd   : > { %v6144_v48 = vadd.f32 %v8231_v46, %v6143_v47  ;;  %v9196_v49 = vpop.f32.mrb[55].mxu0  ;;  %v6203_v46 = vld [vmem:[#allocation22 + $0x338] sm:$0xff] }
0x1fce   : > { %v6219_v47 = vld [vmem:[#allocation22 + $0x3b8] sm:$0xff]  ;;  %v9606_v49 = vpack.c.bf16 %v6184_v60, %v6168_v40  ;;  %v6194_v40 = vld [vmem:[#allocation22 + $0x2f0] sm:$0xff]  ;;  %v6209_v60 = vld [vmem:[#allocation22 + $0x368] sm:$0xff] }
0x1fcf   : > { %v6147_v50 = vadd.f32 %v6144_v48, %v12116_v13  ;;  %v6166_v13 = vld [vmem:[#allocation22 + $0x210] sm:$0xff] }
0x1fd0   : > { %v9598_v15 = vpack.c.bf16 %v6182_v29, %v6166_v13  ;;  %v6174_v13 = vld [vmem:[#allocation22 + $0x250] sm:$0xff] }
0x1fd1   : > { %v6148_v53 = vsel %vm956_vm1, %v6147_v50, 0.0  ;;  %v6190_v29 = vld [vmem:[#allocation22 + $0x2d0] sm:$0xff] }
0x1fd2   : > { %6149 = vadd.xlane.f32.xlu0 %v6148_v53  ;;  %9599 = vmatpush1.bf16.msra.mxu0 %v9598_v15  ;;  %v6200_v53 = vld [vmem:[#allocation22 + $0x320] sm:$0xff]  ;;  %v6205_v15 = vld [vmem:[#allocation22 + $0x348] sm:$0xff]  ;;  %v9630_v18 = vpack.c.bf16 %v6190_v29, %v6174_v13  ;;  %v6952_v13 = vld [vmem:[#allocation25 + $0x998] sm:$0xff] }
0x1fd3   : > { %9601 = vmatprep.subr.bf16.mxu0 %v9600_v23  ;;  %v9624_v23 = vpack.c.bf16 %v6221_v5, %v6205_v15  ;;  %v6903_v5 = vld [vmem:[#allocation25 + $0x810] sm:$0xff] }
0x1fd4   : > { %v9658_v30 = vpack.c.bf16 %v6904_v21, %v6903_v5  ;;  %v6944_v5 = vld [vmem:[#allocation25 + $0x958] sm:$0xff]  ;;  %v6929_v21 = vld [vmem:[#allocation25 + $0x8e0] sm:$0xff] }
0x1fd6   : > { %9603 = vmatpush1.bf16.msra.mxu0 %v9602_v55  ;;  %v6177_v55 = vld [vmem:[#allocation22 + $0x268] sm:$0xff] }
0x1fd7   : > { %9613 = vmatprep.subr.bf16.mxu0 %v9612_v33  ;;  %v6176_v33 = vld [vmem:[#allocation22 + $0x260] sm:$0xff] }
0x205f   : > { %v6150_v52 = vpop.xlane.xlu0 %6149 }
0x2060   : > { %v6151_v63 = vmul.f32 0.03125, %v6150_v52  ;;  %v6216_v52 = vld [vmem:[#allocation22 + $0x3a0] sm:$0xff] }
0x2062   : > { %v6152_v22 = vsub.f32 %v6147_v50, %v6151_v63  ;;  %v9614_v50 = vpack.c.bf16 %v6186_v8, %v6170_v43  ;;  %v6211_v43 = vld [vmem:[#allocation22 + $0x378] sm:$0xff] }
0x2063   : > { %v6227_v8 = vld [vmem:[#allocation22 + $0x3f8] sm:$0xff] }
0x2064   : > { %v6153_v2 = vmul.f32 %v6152_v22, %v6152_v22 }
0x2066   : > { %v6154_v41 = vsel %vm956_vm1, %v6153_v2, 0.0  ;;  %v9608_v2 = vpack.c.bf16 %v6217_v45, %v6201_v44 }
0x2067   : > { %6155 = vadd.xlane.f32.xlu1 %v6154_v41  ;;  %v9616_v41 = vpack.c.bf16 %v6219_v47, %v6203_v46  ;;  %v6208_v46 = vld [vmem:[#allocation22 + $0x360] sm:$0xff] }
0x2068   : > { %v6224_v47 = vld [vmem:[#allocation22 + $0x3e0] sm:$0xff] }
0x2069   : > { %v9642_v42 = vpack.c.bf16 %v6224_v47, %v6208_v46  ;;  %v6940_v46 = vld [vmem:[#allocation25 + $0x938] sm:$0xff]  ;;  %v6925_v47 = vld [vmem:[#allocation25 + $0x8c0] sm:$0xff] }
0x20f4   : > { %v6156_v34 = vpop.xlane.xlu1 %6155 }
0x20f5   : > { %v6157_v35 = vmul.f32 0.03125, %v6156_v34  ;;  %v6192_v34 = vld [vmem:[#allocation22 + $0x2e0] sm:$0xff] }
0x20f6   : > { %v9638_v44 = vpack.c.bf16 %v6192_v34, %v6176_v33  ;;  %v6938_v33 = vld [vmem:[#allocation25 + $0x928] sm:$0xff]  ;;  %v6923_v34 = vld [vmem:[#allocation25 + $0x8b0] sm:$0xff] }
0x20f7   : > { %v6158_v38 = vadd.f32 1e-05, %v6157_v35  ;;  %v9636_v35 = vpack.c.bf16 %v6193_v6, %v6177_v55  ;;  %v6905_v6 = vld [vmem:[#allocation25 + $0x820] sm:$0xff] }
0x20f9   : > { %10241 = vrsqrt.f32 %v6158_v38  ;;  %v9644_v38 = vpack.c.bf16 %v6195_v57, %v6179_v31  ;;  %v6906_v31 = vld [vmem:[#allocation25 + $0x828] sm:$0xff] }
0x2103   : > { %v10242_v39 = vpop.eup %10241 }
0x2104   : > { %v6160_v59 = vmul.f32 %v10242_v39, %v6152_v22  ;;  %v6173_v22 = vld [vmem:[#allocation22 + $0x248] sm:$0xff]  ;;  %v6178_v39 = vld [vmem:[#allocation22 + $0x270] sm:$0xff] }
0x2105   : > { %v9620_v12 = vpack.c.bf16 %v6189_v4, %v6173_v22  ;;  %v9646_v45 = vpack.c.bf16 %v6194_v40, %v6178_v39  ;;  %v6901_v4 = vld [vmem:[#allocation25 + $0x800] sm:$0xff]  ;;  %v6956_v39 = vld [vmem:[#allocation25 + $0x9b8] sm:$0xff]  ;;  %v9662_v40 = vpack.c.bf16 %v6906_v31, %v6905_v6  ;;  %v6946_v6 = vld [vmem:[#allocation25 + $0x968] sm:$0xff] }
0x2106   : > { %v6161_v48 = vmul.f32 %v12110_v10, %v6160_v59  ;;  %v9610_v10 = vpack.c.bf16 %v6216_v52, %v6200_v53  ;;  %v6225_v59 = vld [vmem:[#allocation22 + $0x3e8] sm:$0xff]  ;;  %v6226_v53 = vld [vmem:[#allocation22 + $0x3f0] sm:$0xff]  ;;  %v6917_v52 = vld [vmem:[#allocation25 + $0x880] sm:$0xff]  ;;  %v9654_v29 = vpack.c.bf16 %v6902_v37, %v6901_v4 }
0x2107   : > { %v6942_v4 = vld [vmem:[#allocation25 + $0x948] sm:$0xff]  ;;  %v6927_v37 = vld [vmem:[#allocation25 + $0x8d0] sm:$0xff] }
0x2108   : > { %v12198_v63 = vadd.f32 %v12112_v11, %v6161_v48  ;;  %v6172_v11 = vld [vmem:[#allocation22 + $0x240] sm:$0xff]  ;;  %v9640_v48 = vpack.c.bf16 %v6225_v59, %v6209_v60  ;;  %v6907_v59 = vld [vmem:[#allocation25 + $0x830] sm:$0xff] }
0x2109   : > { %v9622_v17 = vpack.c.bf16 %v6188_v28, %v6172_v11  ;;  %v6934_v11 = vld [vmem:[#allocation25 + $0x908] sm:$0xff]  ;;  %v6919_v28 = vld [vmem:[#allocation25 + $0x890] sm:$0xff] }
0x210a   : > { %8233 = vmatmul.mubr.msk.f32.vlgmr.msra.gmra.mrb[60].mxu1 %vm956_vm1, %v12198_v63  ;;  %8234 = vmatmul.mubr.msk.f32.vlgmr.msra.gmra.mrb[56].mxu0 %vm956_vm1, %v12198_v63 }
0x210b   : > { %9607 = vmatpush1.bf16.msra.mxu1 %v9606_v49  ;;  %9615 = vmatpush1.bf16.msra.mxu0 %v9614_v50  ;;  %v9648_v49 = vpack.c.bf16 %v6227_v8, %v6211_v43  ;;  %v6210_v50 = vld [vmem:[#allocation22 + $0x370] sm:$0xff]  ;;  %v6908_v43 = vld [vmem:[#allocation25 + $0x838] sm:$0xff] }
0x210c   : > { %9609 = vmatprep.subr.bf16.mxu1 %v9608_v2  ;;  %9617 = vmatprep.subr.bf16.mxu0 %v9616_v41  ;;  %v6918_v2 = vld [vmem:[#allocation25 + $0x888] sm:$0xff]  ;;  %v6949_v41 = vld [vmem:[#allocation25 + $0x980] sm:$0xff]  ;;  %v9650_v22 = vpack.c.bf16 %v6226_v53, %v6210_v50  ;;  %v9666_v53 = vpack.c.bf16 %v6908_v43, %v6907_v59  ;;  %v6947_v59 = vld [vmem:[#allocation25 + $0x970] sm:$0xff] }
0x210d   : > { %6522 = vmatprep.mubr.f32.mxu1 %v10954_v1  ;;  %6593 = vmatprep.mubr.f32.mxu0 %v10954_v1  ;;  %v9652_v9 = vpack.c.bf16 %v6918_v2, %v6917_v52  ;;  %v6958_v50 = vld [vmem:[#allocation25 + $0x9c8] sm:$0xff]  ;;  %v6909_v2 = vld [vmem:[#allocation25 + $0x840] sm:$0xff]  ;;  %v6948_v43 = vld [vmem:[#allocation25 + $0x978] sm:$0xff] }
0x210f   : > { %9611 = vmatpush1.bf16.msra.mxu1 %v9610_v10  ;;  %9619 = vmatpush1.bf16.msra.mxu0 %v9618_v54  ;;  %v9684_v10 = vpack.c.bf16 %v6950_v3, %v6949_v41  ;;  %v6933_v54 = vld [vmem:[#allocation25 + $0x900] sm:$0xff]  ;;  %v6910_v41 = vld [vmem:[#allocation25 + $0x848] sm:$0xff] }
0x2110   : > { %9621 = vmatprep.subr.bf16.mxu1 %v9620_v12  ;;  %9629 = vmatprep.subr.bf16.mxu0 %v9628_v14  ;;  %v6920_v12 = vld [vmem:[#allocation25 + $0x898] sm:$0xff]  ;;  %v6951_v14 = vld [vmem:[#allocation25 + $0x990] sm:$0xff]  ;;  %v9686_v15 = vpack.c.bf16 %v6934_v11, %v6933_v54  ;;  %v9670_v11 = vpack.c.bf16 %v6910_v41, %v6909_v2 }
0x2111   : > { %v9656_v16 = vpack.c.bf16 %v6920_v12, %v6919_v28  ;;  %v6960_v54 = vld [vmem:[#allocation25 + $0x9d8] sm:$0xff]  ;;  %v6911_v12 = vld [vmem:[#allocation25 + $0x850] sm:$0xff] }
0x2112   : > { %8235 = vmatmul.mubr.msk.f32.vlgmr.msra.gmra.mrb[62].mxu1 %vm956_vm1, %v12198_v63  ;;  %8236 = vmatmul.mubr.msk.f32.vlgmr.msra.gmra.mrb[58].mxu0 %vm956_vm1, %v12198_v63 }
0x2113   : > { %9623 = vmatpush1.bf16.msra.mxu1 %v9622_v17  ;;  %9631 = vmatpush1.bf16.msra.mxu0 %v9630_v18  ;;  %v9688_v17 = vpack.c.bf16 %v6952_v13, %v6951_v14  ;;  %v6935_v18 = vld [vmem:[#allocation25 + $0x910] sm:$0xff]  ;;  %v6912_v14 = vld [vmem:[#allocation25 + $0x858] sm:$0xff] }
0x2114   : > { %9625 = vmatprep.subr.bf16.mxu1 %v9624_v23  ;;  %9633 = vmatprep.subr.bf16.mxu0 %v9632_v26  ;;  %v6922_v23 = vld [vmem:[#allocation25 + $0x8a8] sm:$0xff]  ;;  %v6953_v26 = vld [vmem:[#allocation25 + $0x9a0] sm:$0xff]  ;;  %v9690_v55 = vpack.c.bf16 %v6936_v24, %v6935_v18  ;;  %v9674_v24 = vpack.c.bf16 %v6912_v14, %v6911_v12  ;;  %v6983_v12 = vld [vmem:[#allocation25 + $0xa90] sm:$0xff] }
0x2115   : > { %6664 = vmatprep.mubr.f32.mxu1 %v10954_v1  ;;  %6735 = vmatprep.mubr.f32.mxu0 %v10954_v1  ;;  %v9660_v57 = vpack.c.bf16 %v6922_v23, %v6921_v25  ;;  %v6962_v18 = vld [vmem:[#allocation25 + $0x9e8] sm:$0xff]  ;;  %v6913_v23 = vld [vmem:[#allocation25 + $0x860] sm:$0xff] }
0x2117   : > { %9627 = vmatpush1.bf16.msra.mxu1 %v9626_v7  ;;  %9635 = vmatpush1.bf16.msra.mxu0 %v9634_v32  ;;  %v9692_v7 = vpack.c.bf16 %v6954_v27, %v6953_v26  ;;  %v6937_v32 = vld [vmem:[#allocation25 + $0x920] sm:$0xff] }
0x2118   : > { %9637 = vmatprep.subr.bf16.mxu1 %v9636_v35  ;;  %9645 = vmatprep.subr.bf16.mxu0 %v9644_v38  ;;  %v6924_v35 = vld [vmem:[#allocation25 + $0x8b8] sm:$0xff]  ;;  %v6955_v38 = vld [vmem:[#allocation25 + $0x9b0] sm:$0xff]  ;;  %v9694_v60 = vpack.c.bf16 %v6938_v33, %v6937_v32 }
0x2119   : > { %v9664_v8 = vpack.c.bf16 %v6924_v35, %v6923_v34  ;;  %v6932_v32 = vld [vmem:[#allocation25 + $0x8f8] sm:$0xff]  ;;  %v6963_v33 = vld [vmem:[#allocation25 + $0x9f0] sm:$0xff] }
0x211a   : > { %8237 = vmatmul.mubr.msk.f32.vlgmr.msra.gmra.mrb[64].mxu1 %vm956_vm1, %v12198_v63  ;;  %8238 = vmatmul.mubr.msk.f32.vlgmr.msra.gmra.mrb[60].mxu0 %vm956_vm1, %v12198_v63  ;;  %v6964_v35 = vld [vmem:[#allocation25 + $0x9f8] sm:$0xff] }
0x211b   : > { %9639 = vmatpush1.bf16.msra.mxu1 %v9638_v44  ;;  %9647 = vmatpush1.bf16.msra.mxu0 %v9646_v45  ;;  %v9696_v44 = vpack.c.bf16 %v6956_v39, %v6955_v38  ;;  %v6939_v45 = vld [vmem:[#allocation25 + $0x930] sm:$0xff]  ;;  %v6916_v39 = vld [vmem:[#allocation25 + $0x878] sm:$0xff] }
0x211c   : > { %9641 = vmatprep.subr.bf16.mxu1 %v9640_v48  ;;  %9649 = vmatprep.subr.bf16.mxu0 %v9648_v49  ;;  %v6926_v48 = vld [vmem:[#allocation25 + $0x8c8] sm:$0xff]  ;;  %v6957_v49 = vld [vmem:[#allocation25 + $0x9c0] sm:$0xff]  ;;  %v9698_v52 = vpack.c.bf16 %v6940_v46, %v6939_v45  ;;  %v6915_v38 = vld [vmem:[#allocation25 + $0x870] sm:$0xff] }
0x211d   : > { %6806 = vmatprep.mubr.f32.mxu1 %v10954_v1  ;;  %6877 = vmatprep.mubr.f32.mxu0 %v10954_v1  ;;  %v9668_v3 = vpack.c.bf16 %v6926_v48, %v6925_v47  ;;  %v6982_v45 = vld [vmem:[#allocation25 + $0xa88] sm:$0xff]  ;;  %v7013_v46 = vld [vmem:[#allocation25 + $0xb80] sm:$0xff] }
0x211e   : > { %v7014_v48 = vld [vmem:[#allocation25 + $0xb88] sm:$0xff] }
0x211f   : > { %9643 = vmatpush1.bf16.msra.mxu1 %v9642_v42  ;;  %9651 = vmatpush1.bf16.msra.mxu0 %v9650_v22  ;;  %v9700_v42 = vpack.c.bf16 %v6958_v50, %v6957_v49  ;;  %v6941_v22 = vld [vmem:[#allocation25 + $0x940] sm:$0xff]  ;;  %v9748_v49 = vpack.c.bf16 %v7014_v48, %v7013_v46  ;;  %v12222_v50 = vld [vmem:[#allocation23 + $0x10] sm:$0xff] }
0x2120   : > { %9653 = vmatprep.subr.bf16.mxu1 %v9652_v9  ;;  %9685 = vmatprep.subr.bf16.mxu0 %v9684_v10  ;;  %v6928_v9 = vld [vmem:[#allocation25 + $0x8d8] sm:$0xff]  ;;  %v6959_v10 = vld [vmem:[#allocation25 + $0x9d0] sm:$0xff]  ;;  %v9702_v28 = vpack.c.bf16 %v6942_v4, %v6941_v22  ;;  %v6240_v2 = vrot.slane %v12222_v50, %v11923_v61  ;;  %v6248_v41 = vrot.slane %v12222_v50, %v11926_v62  ;;  %v6965_v22 = vld [vmem:[#allocation25 + $0xa00] sm:$0xff] }
0x2121   : > { %v9672_v13 = vpack.c.bf16 %v6928_v9, %v6927_v37  ;;  %v6966_v4 = vld [vmem:[#allocation25 + $0xa08] sm:$0xff]  ;;  %v7001_v46 = vld [vmem:[#allocation25 + $0xb20] sm:$0xff]  ;;  %v6987_v48 = vld [vmem:[#allocation25 + $0xab0] sm:$0xff] }
0x2122   : > { %8239 = vmatmul.mubr.msk.f32.vlgmr.msra.gmra.mrb[66].mxu1 %vm956_vm1, %v12198_v63  ;;  %8240 = vmatmul.mubr.msk.f32.vlgmr.msra.gmra.mrb[62].mxu0 %vm956_vm1, %v12198_v63 }
0x2123   : > { %9655 = vmatpush3.bf16.msra.mxu1 %v9654_v29  ;;  %9687 = vmatpush3.bf16.msra.mxu0 %v9686_v15  ;;  %v9704_v29 = vpack.c.bf16 %v6960_v54, %v6959_v10  ;;  %v6943_v15 = vld [vmem:[#allocation25 + $0x950] sm:$0xff] }
0x2124   : > { %9657 = vmatprep.subr.bf16.mxu1 %v9656_v16  ;;  %9689 = vmatprep.subr.bf16.mxu0 %v9688_v17  ;;  %v6930_v16 = vld [vmem:[#allocation25 + $0x8e8] sm:$0xff]  ;;  %v6961_v17 = vld [vmem:[#allocation25 + $0x9e0] sm:$0xff]  ;;  %v9706_v25 = vpack.c.bf16 %v6944_v5, %v6943_v15  ;;  %v7015_v15 = vld [vmem:[#allocation25 + $0xb90] sm:$0xff] }
0x2125   : > { %v9676_v26 = vpack.c.bf16 %v6930_v16, %v6929_v21  ;;  %v9708_v27 = vpack.c.bf16 %v6962_v18, %v6961_v17  ;;  %v7016_v5 = vld [vmem:[#allocation25 + $0xb98] sm:$0xff]  ;;  %v9718_v17 = vpack.c.bf16 %v6966_v4, %v6965_v22 }
0x2127   : > { %9659 = vmatpush3.bf16.msra.mxu1 %v9658_v30  ;;  %9691 = vmatpush3.bf16.msra.mxu0 %v9690_v55  ;;  %v6914_v30 = vld [vmem:[#allocation25 + $0x868] sm:$0xff]  ;;  %v6945_v55 = vld [vmem:[#allocation25 + $0x960] sm:$0xff] }
0x2128   : > { %9661 = vmatprep.subr.bf16.mxu1 %v9660_v57  ;;  %9693 = vmatprep.subr.bf16.mxu0 %v9692_v7  ;;  %v9678_v31 = vpack.c.bf16 %v6914_v30, %v6913_v23  ;;  %v9710_v57 = vpack.c.bf16 %v6946_v6, %v6945_v55  ;;  %v6931_v7 = vld [vmem:[#allocation25 + $0x8f0] sm:$0xff]  ;;  %v9752_v30 = vpack.c.bf16 %v7016_v5, %v7015_v15  ;;  %v7000_v6 = vld [vmem:[#allocation25 + $0xb18] sm:$0xff] }
0x2129   : > { %v9680_v34 = vpack.c.bf16 %v6932_v32, %v6931_v7  ;;  %v6999_v55 = vld [vmem:[#allocation25 + $0xb10] sm:$0xff]  ;;  %v6264_v7 = vrot.slane %v12222_v50, %v11940_v20  ;;  %v6986_v32 = vld [vmem:[#allocation25 + $0xaa8] sm:$0xff] }
0x212b   : > { %9663 = vmatpush3.bf16.msra.mxu1 %v9662_v40  ;;  %9695 = vmatpush3.bf16.msra.mxu0 %v9694_v60  ;;  %v9712_v40 = vpack.c.bf16 %v6964_v35, %v6963_v33  ;;  %v9682_v60 = vpack.c.bf16 %v6916_v39, %v6915_v38  ;;  %v7017_v33 = vld [vmem:[#allocation25 + $0xba0] sm:$0xff] }
0x212c   : > { %9665 = vmatprep.subr.bf16.mxu1 %v9664_v8  ;;  %9697 = vmatprep.subr.bf16.mxu0 %v9696_v44  ;;  %v9714_v8 = vpack.c.bf16 %v6948_v43, %v6947_v59  ;;  %v6981_v44 = vld [vmem:[#allocation25 + $0xa80] sm:$0xff]  ;;  %v6970_v59 = vld [vmem:[#allocation25 + $0xa28] sm:$0xff] }
0x212d   : > { %v9716_v47 = vpack.c.bf16 %v6982_v45, %v6981_v44 }
0x212f   : > { %9667 = vmatpush3.bf16.msra.mxu1 %v9666_v53  ;;  %9699 = vmatpush3.bf16.msra.mxu0 %v9698_v52  ;;  %v6236_v53 = vrot.slane %v12222_v50, %v11915_v56  ;;  %v6244_v52 = vrot.slane %v12222_v50, %v11918_v58 }
0x2130   : > { %9669 = vmatprep.subr.bf16.mxu1 %v9668_v3  ;;  %9701 = vmatprep.subr.bf16.mxu0 %v9700_v42 }
0x2133   : > { %9671 = vmatpush3.bf16.msra.mxu1 %v9670_v11  ;;  %9703 = vmatpush3.bf16.msra.mxu0 %v9702_v28  ;;  %v6997_v11 = vld [vmem:[#allocation25 + $0xb00] sm:$0xff]  ;;  %v6998_v28 = vld [vmem:[#allocation25 + $0xb08] sm:$0xff] }
0x2134   : > { %9673 = vmatprep.subr.bf16.mxu1 %v9672_v13  ;;  %9705 = vmatprep.subr.bf16.mxu0 %v9704_v29  ;;  %v6984_v29 = vld [vmem:[#allocation25 + $0xa98] sm:$0xff]  ;;  %v9750_v18 = vpack.c.bf16 %v6998_v28, %v6997_v11  ;;  %v7003_v11 = vld [vmem:[#allocation25 + $0xb30] sm:$0xff] }
0x2135   : > { %v7004_v28 = vld [vmem:[#allocation25 + $0xb38] sm:$0xff] }
0x2137   : > { %9675 = vmatpush3.bf16.msra.mxu1 %v9674_v24  ;;  %9707 = vmatpush3.bf16.msra.mxu0 %v9706_v25  ;;  %v6967_v24 = vld [vmem:[#allocation25 + $0xa10] sm:$0xff]  ;;  %v6968_v25 = vld [vmem:[#allocation25 + $0xa18] sm:$0xff] }
0x2138   : > { %9677 = vmatprep.subr.bf16.mxu1 %v9676_v26  ;;  %9709 = vmatprep.subr.bf16.mxu0 %v9708_v27  ;;  %v9720_v27 = vpack.c.bf16 %v6984_v29, %v6983_v12  ;;  %v9722_v39 = vpack.c.bf16 %v6968_v25, %v6967_v24  ;;  %v6989_v12 = vld [vmem:[#allocation25 + $0xac0] sm:$0xff]  ;;  %v7022_v29 = vld [vmem:[#allocation25 + $0xbc8] sm:$0xff] }
0x213b   : > { %9679 = vmatpush3.bf16.msra.mxu1 %v9678_v31  ;;  %9711 = vmatpush3.bf16.msra.mxu0 %v9710_v57  ;;  %v6985_v31 = vld [vmem:[#allocation25 + $0xaa0] sm:$0xff]  ;;  %v6256_v57 = vrot.slane %v12222_v50, %v11937_v19 }
0x213c   : > { %9681 = vmatprep.subr.bf16.mxu1 %v9680_v34  ;;  %9713 = vmatprep.subr.bf16.mxu0 %v9712_v40  ;;  %v7018_v34 = vld [vmem:[#allocation25 + $0xba8] sm:$0xff]  ;;  %v9754_v40 = vpack.c.bf16 %v7000_v6, %v6999_v55  ;;  %v9724_v44 = vpack.c.bf16 %v6986_v32, %v6985_v31  ;;  %v6991_v55 = vld [vmem:[#allocation25 + $0xad0] sm:$0xff]  ;;  %v6992_v6 = vld [vmem:[#allocation25 + $0xad8] sm:$0xff] }
0x213d   : > { %v9756_v45 = vpack.c.bf16 %v7018_v34, %v7017_v33  ;;  %v7023_v31 = vld [vmem:[#allocation25 + $0xbd0] sm:$0xff] }
0x213e   : > { %v6975_v34 = vld [vmem:[#allocation25 + $0xa50] sm:$0xff] }
0x213f   : > { %9683 = vmatpush3.bf16.msra.mxu1 %v9682_v60  ;;  %9715 = vmatpush3.bf16.msra.mxu0 %v9714_v8  ;;  %v6969_v60 = vld [vmem:[#allocation25 + $0xa20] sm:$0xff] }
0x2140   : > { %9717 = vmatprep.subr.bf16.mxu1 %v9716_v47  ;;  %9749 = vmatprep.subr.bf16.mxu0 %v9748_v49  ;;  %v7002_v47 = vld [vmem:[#allocation25 + $0xb28] sm:$0xff]  ;;  %v9726_v22 = vpack.c.bf16 %v6970_v59, %v6969_v60  ;;  %v9736_v60 = vpack.c.bf16 %v6992_v6, %v6991_v55 }
0x2141   : > { %v9758_v4 = vpack.c.bf16 %v7002_v47, %v7001_v46  ;;  %v7025_v46 = vld [vmem:[#allocation25 + $0xbe0] sm:$0xff]  ;;  %v7026_v47 = vld [vmem:[#allocation25 + $0xbe8] sm:$0xff] }
0x2142   : > { %v7046_v55 = vld [vmem:[#allocation25 + $0xc88] sm:$0xff] }
0x21dd   : > { %v6382_v3 = vpop.f32.mrb[60].mxu1  ;;  %v6453_v42 = vpop.f32.mrb[56].mxu0 }
0x21de   : > { %v6383_v37 = vadd.f32 %v6382_v3, %v6236_v53  ;;  %v6454_v9 = vadd.f32 %v6453_v42, %v6244_v52  ;;  %v6384_v10 = vpop.f32.mrb[61].mxu1  ;;  %v6455_v54 = vpop.f32.mrb[57].mxu0  ;;  %v6988_v52 = vld [vmem:[#allocation25 + $0xab8] sm:$0xff] }
0x21df   : > { %v6385_v14 = vadd.f32 %v6384_v10, %v6240_v2  ;;  %v6456_v13 = vadd.f32 %v6455_v54, %v6248_v41  ;;  %v7019_v2 = vld [vmem:[#allocation25 + $0xbb0] sm:$0xff]  ;;  %v7020_v41 = vld [vmem:[#allocation25 + $0xbb8] sm:$0xff]  ;;  %v9728_v10 = vpack.c.bf16 %v6988_v52, %v6987_v48 }
0x21e0   : > { %v6884_v23 = vmax.f32 %v6383_v37, 0.0  ;;  %v6886_v26 = vmax.f32 %v6454_v9, 0.0  ;;  %v6971_v37 = vld [vmem:[#allocation25 + $0xa30] sm:$0xff]  ;;  %v6972_v9 = vld [vmem:[#allocation25 + $0xa38] sm:$0xff]  ;;  %v9760_v54 = vpack.c.bf16 %v7020_v41, %v7019_v2  ;;  %v6977_v2 = vld [vmem:[#allocation25 + $0xa60] sm:$0xff] }
0x21e1   : > { %v6885_v21 = vmax.f32 %v6385_v14, 0.0  ;;  %v6887_v16 = vmax.f32 %v6456_v13, 0.0  ;;  %v6990_v14 = vld [vmem:[#allocation25 + $0xac8] sm:$0xff]  ;;  %v7021_v13 = vld [vmem:[#allocation25 + $0xbc0] sm:$0xff] }
0x21e2   : > { %v6978_v41 = vld [vmem:[#allocation25 + $0xa68] sm:$0xff] }
0x21e3   : > { %7229 = vmatprep.mubr.f32.mxu1 %v6885_v21  ;;  %7299 = vmatprep.mubr.f32.mxu0 %v6887_v16  ;;  %v9730_v21 = vpack.c.bf16 %v6972_v9, %v6971_v37  ;;  %v9762_v16 = vpack.c.bf16 %v7004_v28, %v7003_v11  ;;  %v9772_v37 = vpack.c.bf16 %v7026_v47, %v7025_v46  ;;  %v7009_v9 = vld [vmem:[#allocation25 + $0xb60] sm:$0xff]  ;;  %v6996_v11 = vld [vmem:[#allocation25 + $0xaf8] sm:$0xff]  ;;  %v7027_v28 = vld [vmem:[#allocation25 + $0xbf0] sm:$0xff] }
0x21e4   : > { %7230 = vmatmul.mubr.f32.vlgmr.msra.gmra.mrb[68].mxu1 %v6884_v23  ;;  %7300 = vmatmul.mubr.f32.vlgmr.msra.gmra.mrb[64].mxu0 %v6886_v26  ;;  %v9732_v23 = vpack.c.bf16 %v6990_v14, %v6989_v12  ;;  %v9764_v26 = vpack.c.bf16 %v7022_v29, %v7021_v13  ;;  %v7028_v12 = vld [vmem:[#allocation25 + $0xbf8] sm:$0xff]  ;;  %v6252_v14 = vrot.slane %v12222_v50, %v11966_v51  ;;  %v7079_v46 = vld [vmem:[#allocation25 + $0xd90] sm:$0xff] }
0x21e5   : > { %v12236_v35 = vpop.f32.mrb[62].mxu1  ;;  %v12238_v38 = vpop.f32.mrb[58].mxu0  ;;  %9719 = vmatpush3.bf16.msra.mxu1 %v9718_v17  ;;  %9751 = vmatpush3.bf16.msra.mxu0 %v9750_v18  ;;  %v6973_v17 = vld [vmem:[#allocation25 + $0xa40] sm:$0xff]  ;;  %v6974_v18 = vld [vmem:[#allocation25 + $0xa48] sm:$0xff]  ;;  %v9742_v13 = vpack.c.bf16 %v6978_v41, %v6977_v2  ;;  %v7080_v47 = vld [vmem:[#allocation25 + $0xd98] sm:$0xff] }
0x21e6   : > { %v6526_v43 = vpop.f32.mrb[63].mxu1  ;;  %v6597_v8 = vpop.f32.mrb[59].mxu0  ;;  %9721 = vmatprep.subr.bf16.mxu1 %v9720_v27  ;;  %9753 = vmatprep.subr.bf16.mxu0 %v9752_v30  ;;  %v7005_v27 = vld [vmem:[#allocation25 + $0xb40] sm:$0xff]  ;;  %v7006_v30 = vld [vmem:[#allocation25 + $0xb48] sm:$0xff]  ;;  %v9734_v32 = vpack.c.bf16 %v6974_v18, %v6973_v17  ;;  %v7011_v17 = vld [vmem:[#allocation25 + $0xb70] sm:$0xff]  ;;  %v6260_v18 = vrot.slane %v12222_v50, %v11959_v36  ;;  %v6525_v50 = vadd.f32 %v12236_v35, %v6252_v14 }
0x21e7   : > { %v6527_v49 = vadd.f32 %v6526_v43, %v6256_v57  ;;  %v6598_v53 = vadd.f32 %v6597_v8, %v6264_v7  ;;  %v7024_v57 = vld [vmem:[#allocation25 + $0xbd8] sm:$0xff]  ;;  %v9766_v33 = vpack.c.bf16 %v7006_v30, %v7005_v27  ;;  %v7007_v43 = vld [vmem:[#allocation25 + $0xb50] sm:$0xff]  ;;  %v7045_v30 = vld [vmem:[#allocation25 + $0xc80] sm:$0xff] }
0x21e8   : > { %v12248_v7 = vld [vmem:[#allocation23 + $0x18] sm:$0xff]  ;;  %v9768_v59 = vpack.c.bf16 %v7024_v57, %v7023_v31  ;;  %v7077_v31 = vld [vmem:[#allocation25 + $0xd80] sm:$0xff]  ;;  %v7078_v57 = vld [vmem:[#allocation25 + $0xd88] sm:$0xff] }
0x21e9   : > { %v6889_v3 = vmax.f32 %v6527_v49, 0.0  ;;  %v6891_v42 = vmax.f32 %v6598_v53, 0.0  ;;  %9723 = vmatpush3.bf16.msra.mxu1 %v9722_v39  ;;  %9755 = vmatpush3.bf16.msra.mxu0 %v9754_v40  ;;  %v6976_v39 = vld [vmem:[#allocation25 + $0xa58] sm:$0xff]  ;;  %v6292_v40 = vrot.slane %v12248_v7, %v11959_v36  ;;  %v6272_v6 = vrot.slane %v12248_v7, %v11923_v61  ;;  %v7063_v41 = vld [vmem:[#allocation25 + $0xd10] sm:$0xff] }
0x21ea   : > { %9725 = vmatprep.subr.bf16.mxu1 %v9724_v44  ;;  %9757 = vmatprep.subr.bf16.mxu0 %v9756_v45  ;;  %v7008_v8 = vld [vmem:[#allocation25 + $0xb58] sm:$0xff]  ;;  %v6993_v44 = vld [vmem:[#allocation25 + $0xae0] sm:$0xff]  ;;  %v6994_v45 = vld [vmem:[#allocation25 + $0xae8] sm:$0xff]  ;;  %v9738_v53 = vpack.c.bf16 %v6976_v39, %v6975_v34  ;;  %v9780_v36 = vpack.c.bf16 %v7046_v55, %v7045_v30  ;;  %v6596_v39 = vadd.f32 %v12238_v38, %v6260_v18 }
0x21eb   : > { %7369 = vmatprep.mubr.f32.mxu1 %v6889_v3  ;;  %7439 = vmatprep.mubr.f32.mxu0 %v6891_v42  ;;  %v9770_v52 = vpack.c.bf16 %v7008_v8, %v7007_v43  ;;  %v7012_v27 = vld [vmem:[#allocation25 + $0xb78] sm:$0xff]  ;;  %v7061_v43 = vld [vmem:[#allocation25 + $0xd00] sm:$0xff]  ;;  %v7062_v8 = vld [vmem:[#allocation25 + $0xd08] sm:$0xff] }
0x21ec   : > { %v9778_v34 = vpack.c.bf16 %v7012_v27, %v7011_v17  ;;  %v6890_v38 = vmax.f32 %v6596_v39, 0.0  ;;  %v7032_v2 = vld [vmem:[#allocation25 + $0xc18] sm:$0xff]  ;;  %v7066_v18 = vld [vmem:[#allocation25 + $0xd28] sm:$0xff]  ;;  %v7083_v27 = vld [vmem:[#allocation25 + $0xdb0] sm:$0xff] }
0x21ed   : > { %v12240_v15 = vpop.f32.mrb[64].mxu1  ;;  %v12242_v5 = vpop.f32.mrb[60].mxu0  ;;  %9727 = vmatpush3.bf16.msra.mxu1 %v9726_v22  ;;  %9759 = vmatpush3.bf16.msra.mxu0 %v9758_v4  ;;  %v9740_v4 = vpack.c.bf16 %v6994_v45, %v6993_v44  ;;  %v7047_v44 = vld [vmem:[#allocation25 + $0xc90] sm:$0xff]  ;;  %v7048_v45 = vld [vmem:[#allocation25 + $0xc98] sm:$0xff]  ;;  %v7054_v39 = vld [vmem:[#allocation25 + $0xcc8] sm:$0xff] }
0x21ee   : > { %v12244_v24 = vpop.f32.mrb[65].mxu1  ;;  %v12246_v25 = vpop.f32.mrb[61].mxu0  ;;  %9729 = vmatprep.subr.bf16.mxu1 %v9728_v10  ;;  %9761 = vmatprep.subr.bf16.mxu0 %v9760_v54  ;;  %v7010_v10 = vld [vmem:[#allocation25 + $0xb68] sm:$0xff]  ;;  %v6995_v54 = vld [vmem:[#allocation25 + $0xaf0] sm:$0xff]  ;;  %v7084_v30 = vld [vmem:[#allocation25 + $0xdb8] sm:$0xff] }
0x21ef   : > { %v9774_v29 = vpack.c.bf16 %v7010_v10, %v7009_v9  ;;  %v6669_v61 = vadd.f32 %v12244_v24, %v6272_v6  ;;  %v7064_v9 = vld [vmem:[#allocation25 + $0xd18] sm:$0xff]  ;;  %v7049_v10 = vld [vmem:[#allocation25 + $0xca0] sm:$0xff] }
0x21f0   : > { %v9818_v14 = vpack.c.bf16 %v7064_v9, %v7063_v41  ;;  %v7039_v41 = vld [vmem:[#allocation25 + $0xc50] sm:$0xff]  ;;  %v7072_v9 = vld [vmem:[#allocation25 + $0xd58] sm:$0xff] }
0x21f1   : > { %9731 = vmatpush3.bf16.msra.mxu1 %v9730_v21  ;;  %9763 = vmatpush3.bf16.msra.mxu0 %v9762_v16  ;;  %v6979_v21 = vld [vmem:[#allocation25 + $0xa70] sm:$0xff]  ;;  %v6980_v16 = vld [vmem:[#allocation25 + $0xa78] sm:$0xff]  ;;  %v6893_v24 = vmax.f32 %v6669_v61, 0.0 }
0x21f2   : > { %9733 = vmatprep.subr.bf16.mxu1 %v9732_v23  ;;  %9765 = vmatprep.subr.bf16.mxu0 %v9764_v26  ;;  %v9744_v23 = vpack.c.bf16 %v6996_v11, %v6995_v54  ;;  %v9776_v26 = vpack.c.bf16 %v7028_v12, %v7027_v28  ;;  %v7081_v11 = vld [vmem:[#allocation25 + $0xda0] sm:$0xff]  ;;  %v7082_v28 = vld [vmem:[#allocation25 + $0xda8] sm:$0xff] }
0x21f3   : > { %v9820_v17 = vpack.c.bf16 %v7082_v28, %v7081_v11  ;;  %v7090_v11 = vld [vmem:[#allocation25 + $0xde8] sm:$0xff] }
0x21f5   : > { %v12252_v48 = vpop.f32.mrb[66].mxu1  ;;  %v6879_v49 = vpop.f32.mrb[62].mxu0  ;;  %9735 = vmatpush3.bf16.msra.mxu1 %v9734_v32  ;;  %9767 = vmatpush3.bf16.msra.mxu0 %v9766_v33  ;;  %v6280_v32 = vrot.slane %v12248_v7, %v11926_v62  ;;  %v9746_v33 = vpack.c.bf16 %v6980_v16, %v6979_v21  ;;  %v7034_v21 = vld [vmem:[#allocation25 + $0xc28] sm:$0xff]  ;;  %v7065_v16 = vld [vmem:[#allocation25 + $0xd20] sm:$0xff] }
0x21f6   : > { %v12254_v3 = vadd.f32 %v6879_v49, %v6292_v40  ;;  %v12256_v42 = vpop.f32.mrb[67].mxu1  ;;  %v12258_v22 = vpop.f32.mrb[63].mxu0  ;;  %9737 = vmatprep.subr.bf16.mxu1 %v9736_v60  ;;  %9769 = vmatprep.subr.bf16.mxu0 %v9768_v59  ;;  %v9812_v40 = vpack.c.bf16 %v7078_v57, %v7077_v31  ;;  %v7029_v60 = vld [vmem:[#allocation25 + $0xc00] sm:$0xff]  ;;  %v7030_v59 = vld [vmem:[#allocation25 + $0xc08] sm:$0xff]  ;;  %v6888_v49 = vmax.f32 %v6525_v50, 0.0  ;;  %v9822_v6 = vpack.c.bf16 %v7066_v18, %v7065_v16  ;;  %v7035_v57 = vld [vmem:[#allocation25 + $0xc30] sm:$0xff] }
0x21f7   : > { %v6740_v62 = vadd.f32 %v12246_v25, %v6280_v32  ;;  %v9782_v35 = vpack.c.bf16 %v7030_v59, %v7029_v60  ;;  %v7050_v25 = vld [vmem:[#allocation25 + $0xca8] sm:$0xff]  ;;  %v7036_v32 = vld [vmem:[#allocation25 + $0xc38] sm:$0xff]  ;;  %v7053_v50 = vld [vmem:[#allocation25 + $0xcc0] sm:$0xff] }
0x21f8   : > { %v7086_v60 = vld [vmem:[#allocation25 + $0xdc8] sm:$0xff]  ;;  %v9794_v59 = vpack.c.bf16 %v7036_v32, %v7035_v57  ;;  %v7059_v18 = vld [vmem:[#allocation25 + $0xcf0] sm:$0xff]  ;;  %v7044_v32 = vld [vmem:[#allocation25 + $0xc78] sm:$0xff] }
0x21f9   : > { %9739 = vmatpush3.bf16.msra.mxu1 %v9738_v53  ;;  %9771 = vmatpush3.bf16.msra.mxu0 %v9770_v52  ;;  %v9814_v53 = vpack.c.bf16 %v7062_v8, %v7061_v43  ;;  %v7031_v52 = vld [vmem:[#allocation25 + $0xc10] sm:$0xff]  ;;  %v6895_v54 = vmax.f32 %v6740_v62, 0.0  ;;  %v9796_v43 = vpack.c.bf16 %v7054_v39, %v7053_v50  ;;  %v7037_v8 = vld [vmem:[#allocation25 + $0xc40] sm:$0xff]  ;;  %v7076_v50 = vld [vmem:[#allocation25 + $0xd78] sm:$0xff] }
0x21fa   : > { %9741 = vmatprep.subr.bf16.mxu1 %v9740_v4  ;;  %9773 = vmatprep.subr.bf16.mxu0 %v9772_v37  ;;  %v9784_v4 = vpack.c.bf16 %v7048_v45, %v7047_v44  ;;  %v9816_v37 = vpack.c.bf16 %v7080_v47, %v7079_v46  ;;  %v9786_v12 = vpack.c.bf16 %v7032_v2, %v7031_v52  ;;  %v7038_v44 = vld [vmem:[#allocation25 + $0xc48] sm:$0xff]  ;;  %v7069_v62 = vld [vmem:[#allocation25 + $0xd40] sm:$0xff]  ;;  %v7055_v47 = vld [vmem:[#allocation25 + $0xcd0] sm:$0xff] }
0x21fb   : > { %v7070_v46 = vld [vmem:[#allocation25 + $0xd48] sm:$0xff]  ;;  %v7043_v57 = vld [vmem:[#allocation25 + $0xc70] sm:$0xff]  ;;  %v7109_v39 = vld [vmem:[#allocation25 + $0xe80] sm:$0xff] }
0x21fc   : > { %v9830_v52 = vpack.c.bf16 %v7070_v46, %v7069_v62  ;;  %v7093_v62 = vld [vmem:[#allocation25 + $0xe00] sm:$0xff] }
0x21fd   : > { %9743 = vmatpush3.bf16.msra.mxu1 %v9742_v13  ;;  %9775 = vmatpush3.bf16.msra.mxu0 %v9774_v29  ;;  %v9788_v13 = vpack.c.bf16 %v7050_v25, %v7049_v10  ;;  %v7033_v29 = vld [vmem:[#allocation25 + $0xc20] sm:$0xff]  ;;  %v7058_v25 = vld [vmem:[#allocation25 + $0xce8] sm:$0xff] }
0x21fe   : > { %9745 = vmatprep.subr.bf16.mxu1 %v9744_v23  ;;  %9777 = vmatprep.subr.bf16.mxu0 %v9776_v26  ;;  %v7051_v23 = vld [vmem:[#allocation25 + $0xcb0] sm:$0xff]  ;;  %v7052_v26 = vld [vmem:[#allocation25 + $0xcb8] sm:$0xff]  ;;  %v9790_v55 = vpack.c.bf16 %v7034_v21, %v7033_v29  ;;  %v7057_v10 = vld [vmem:[#allocation25 + $0xce0] sm:$0xff] }
0x21ff   : > { %v9792_v31 = vpack.c.bf16 %v7052_v26, %v7051_v23  ;;  %v7042_v29 = vld [vmem:[#allocation25 + $0xc68] sm:$0xff]  ;;  %v7073_v21 = vld [vmem:[#allocation25 + $0xd60] sm:$0xff]  ;;  %v7060_v23 = vld [vmem:[#allocation25 + $0xcf8] sm:$0xff] }
0x2200   : > { %v7091_v26 = vld [vmem:[#allocation25 + $0xdf0] sm:$0xff] }
0x2201   : > { %9747 = vmatpush3.bf16.msra.mxu1 %v9746_v33  ;;  %9779 = vmatpush3.bf16.msra.mxu0 %v9778_v34  ;;  %v7067_v33 = vld [vmem:[#allocation25 + $0xd30] sm:$0xff]  ;;  %v9824_v34 = vpack.c.bf16 %v7084_v30, %v7083_v27  ;;  %v7092_v27 = vld [vmem:[#allocation25 + $0xdf8] sm:$0xff] }
0x2202   : > { %9781 = vmatprep.subr.bf16.mxu1 %v9780_v36  ;;  %9813 = vmatprep.subr.bf16.mxu0 %v9812_v40  ;;  %v7068_v36 = vld [vmem:[#allocation25 + $0xd38] sm:$0xff]  ;;  %v7085_v40 = vld [vmem:[#allocation25 + $0xdc0] sm:$0xff] }
0x2203   : > { %v9826_v61 = vpack.c.bf16 %v7068_v36, %v7067_v33  ;;  %v9828_v45 = vpack.c.bf16 %v7086_v60, %v7085_v40  ;;  %v7075_v33 = vld [vmem:[#allocation25 + $0xd70] sm:$0xff]  ;;  %v9840_v36 = vpack.c.bf16 %v7092_v27, %v7091_v26  ;;  %v7110_v40 = vld [vmem:[#allocation25 + $0xe88] sm:$0xff]  ;;  %v6288_v60 = vrot.slane %v12248_v7, %v11937_v19  ;;  %v7125_v19 = vld [vmem:[#allocation25 + $0xf00] sm:$0xff] }
0x2204   : > { %7370 = vmatmul.mubr.f32.vlgmr.msra.gmra.mrb[70].mxu1 %v6888_v49  ;;  %7440 = vmatmul.mubr.f32.vlgmr.msra.gmra.mrb[66].mxu0 %v6890_v38  ;;  %v7087_v49 = vld [vmem:[#allocation25 + $0xdd0] sm:$0xff]  ;;  %v7088_v38 = vld [vmem:[#allocation25 + $0xdd8] sm:$0xff]  ;;  %v7130_v26 = vld [vmem:[#allocation25 + $0xf28] sm:$0xff] }
0x2205   : > { %9783 = vmatpush3.bf16.msra.mxu1 %v9782_v35  ;;  %7509 = vmatprep.mubr.f32.mxu1 %v6893_v24  ;;  %v7056_v35 = vld [vmem:[#allocation25 + $0xcd8] sm:$0xff]  ;;  %v7115_v27 = vld [vmem:[#allocation25 + $0xeb0] sm:$0xff] }
0x2206   : > { %9815 = vmatpush3.bf16.msra.mxu0 %v9814_v53  ;;  %7579 = vmatprep.mubr.f32.mxu0 %v6895_v54  ;;  %v9798_v53 = vpack.c.bf16 %v7038_v44, %v7037_v8  ;;  %v9800_v2 = vpack.c.bf16 %v7056_v35, %v7055_v47  ;;  %v7040_v24 = vld [vmem:[#allocation25 + $0xc58] sm:$0xff]  ;;  %v7089_v54 = vld [vmem:[#allocation25 + $0xde0] sm:$0xff]  ;;  %v9844_v44 = vpack.c.bf16 %v7110_v40, %v7109_v39  ;;  %v7126_v35 = vld [vmem:[#allocation25 + $0xf08] sm:$0xff] }
0x2207   : > { %9785 = vmatprep.subr.bf16.mxu1 %v9784_v4  ;;  %9817 = vmatprep.subr.bf16.mxu0 %v9816_v37  ;;  %v7071_v4 = vld [vmem:[#allocation25 + $0xd50] sm:$0xff]  ;;  %v9832_v37 = vpack.c.bf16 %v7088_v38, %v7087_v49  ;;  %v9802_v28 = vpack.c.bf16 %v7040_v24, %v7039_v41  ;;  %v9836_v16 = vpack.c.bf16 %v7090_v11, %v7089_v54  ;;  %v7114_v54 = vld [vmem:[#allocation25 + $0xea8] sm:$0xff]  ;;  %v7132_v39 = vld [vmem:[#allocation25 + $0xf38] sm:$0xff] }
0x2208   : > { %v6811_v49 = vadd.f32 %v12256_v42, %v6288_v60  ;;  %v7111_v38 = vld [vmem:[#allocation25 + $0xe90] sm:$0xff]  ;;  %v9878_v24 = vpack.c.bf16 %v7126_v35, %v7125_v19  ;;  %v7113_v42 = vld [vmem:[#allocation25 + $0xea0] sm:$0xff]  ;;  %v7118_v60 = vld [vmem:[#allocation25 + $0xec8] sm:$0xff] }
0x2209   : > { %9787 = vmatpush3.bf16.msra.mxu1 %v9786_v12  ;;  %v9834_v12 = vpack.c.bf16 %v7072_v9, %v7071_v4  ;;  %v7095_v4 = vld [vmem:[#allocation25 + $0xe10] sm:$0xff]  ;;  %v7117_v40 = vld [vmem:[#allocation25 + $0xec0] sm:$0xff]  ;;  %v7120_v19 = vld [vmem:[#allocation25 + $0xed8] sm:$0xff] }
0x220a   : > { %9819 = vmatpush3.bf16.msra.mxu0 %v9818_v14  ;;  %9789 = vmatprep.subr.bf16.mxu1 %v9788_v13  ;;  %v9804_v14 = vpack.c.bf16 %v7058_v25, %v7057_v10  ;;  %v7041_v13 = vld [vmem:[#allocation25 + $0xc60] sm:$0xff]  ;;  %v7128_v25 = vld [vmem:[#allocation25 + $0xf18] sm:$0xff]  ;;  %v6897_v11 = vmax.f32 %v6811_v49, 0.0  ;;  %v7151_v35 = vld [vmem:[#allocation25 + $0xfd0] sm:$0xff] }
0x220b   : > { %9821 = vmatprep.subr.bf16.mxu0 %v9820_v17  ;;  %v7074_v17 = vld [vmem:[#allocation25 + $0xd68] sm:$0xff]  ;;  %v9806_v30 = vpack.c.bf16 %v7042_v29, %v7041_v13  ;;  %v7152_v49 = vld [vmem:[#allocation25 + $0xfd8] sm:$0xff] }
0x220d   : > { %9791 = vmatpush3.bf16.msra.mxu1 %v9790_v55  ;;  %v6268_v55 = vrot.slane %v12248_v7, %v11915_v56  ;;  %v7142_v56 = vld [vmem:[#allocation25 + $0xf88] sm:$0xff] }
0x220e   : > { %9823 = vmatpush3.bf16.msra.mxu0 %v9822_v6  ;;  %9793 = vmatprep.subr.bf16.mxu1 %v9792_v31  ;;  %v9838_v6 = vpack.c.bf16 %v7074_v17, %v7073_v21  ;;  %v9808_v31 = vpack.c.bf16 %v7060_v23, %v7059_v18  ;;  %v9852_v21 = vpack.c.bf16 %v7114_v54, %v7113_v42  ;;  %v7098_v17 = vld [vmem:[#allocation25 + $0xe28] sm:$0xff]  ;;  %v7129_v18 = vld [vmem:[#allocation25 + $0xf20] sm:$0xff] }
0x220f   : > { %9825 = vmatprep.subr.bf16.mxu0 %v9824_v34  ;;  %v6276_v34 = vrot.slane %v12248_v7, %v11918_v58  ;;  %v6667_v8 = vadd.f32 %v12240_v15, %v6268_v55  ;;  %v9842_v58 = vpack.c.bf16 %v7076_v50, %v7075_v33  ;;  %v7147_v55 = vld [vmem:[#allocation25 + $0xfb0] sm:$0xff]  ;;  %v7105_v54 = vld [vmem:[#allocation25 + $0xe60] sm:$0xff] }
0x2210   : > { %v7099_v33 = vld [vmem:[#allocation25 + $0xe30] sm:$0xff] }
0x2211   : > { %9795 = vmatpush3.bf16.msra.mxu1 %v9794_v59  ;;  %v7141_v59 = vld [vmem:[#allocation25 + $0xf80] sm:$0xff]  ;;  %v6738_v46 = vadd.f32 %v12242_v5, %v6276_v34  ;;  %v6892_v41 = vmax.f32 %v6667_v8, 0.0  ;;  %v7096_v5 = vld [vmem:[#allocation25 + $0xe18] sm:$0xff]  ;;  %v9860_v8 = vpack.c.bf16 %v7118_v60, %v7117_v40 }
0x2212   : > { %9827 = vmatpush3.bf16.msra.mxu0 %v9826_v61  ;;  %9797 = vmatprep.subr.bf16.mxu1 %v9796_v43  ;;  %v6296_v61 = vrot.slane %v12248_v7, %v11940_v20  ;;  %v9810_v43 = vpack.c.bf16 %v7044_v32, %v7043_v57  ;;  %v9876_v47 = vpack.c.bf16 %v7142_v56, %v7141_v59  ;;  %v7112_v20 = vld [vmem:[#allocation25 + $0xe98] sm:$0xff]  ;;  %v7149_v59 = vld [vmem:[#allocation25 + $0xfc0] sm:$0xff]  ;;  %v7150_v56 = vld [vmem:[#allocation25 + $0xfc8] sm:$0xff] }
0x2213   : > { %9829 = vmatprep.subr.bf16.mxu0 %v9828_v45  ;;  %v7094_v45 = vld [vmem:[#allocation25 + $0xe08] sm:$0xff]  ;;  %v6894_v9 = vmax.f32 %v6738_v46, 0.0  ;;  %v9848_v10 = vpack.c.bf16 %v7112_v20, %v7111_v38  ;;  %v9850_v13 = vpack.c.bf16 %v7096_v5, %v7095_v4  ;;  %v9886_v57 = vpack.c.bf16 %v7130_v26, %v7129_v18  ;;  %v7100_v34 = vld [vmem:[#allocation25 + $0xe38] sm:$0xff]  ;;  %v7121_v4 = vld [vmem:[#allocation25 + $0xee0] sm:$0xff] }
0x2214   : > { %v9846_v15 = vpack.c.bf16 %v7094_v45, %v7093_v62  ;;  %v7133_v62 = vld [vmem:[#allocation25 + $0xf40] sm:$0xff]  ;;  %v9892_v45 = vpack.c.bf16 %v7150_v56, %v7149_v59  ;;  %v7134_v46 = vld [vmem:[#allocation25 + $0xf48] sm:$0xff]  ;;  %v7107_v26 = vld [vmem:[#allocation25 + $0xe70] sm:$0xff] }
0x2215   : > { %9799 = vmatpush3.bf16.msra.mxu1 %v9798_v53  ;;  %v6882_v53 = vadd.f32 %v12258_v22, %v6296_v61  ;;  %v9858_v61 = vpack.c.bf16 %v7100_v34, %v7099_v33  ;;  %v9894_v20 = vpack.c.bf16 %v7134_v46, %v7133_v62  ;;  %v7122_v5 = vld [vmem:[#allocation25 + $0xee8] sm:$0xff] }
0x2216   : > { %9831 = vmatpush3.bf16.msra.mxu0 %v9830_v52  ;;  %9801 = vmatprep.subr.bf16.mxu1 %v9800_v2  ;;  %v7143_v52 = vld [vmem:[#allocation25 + $0xf90] sm:$0xff]  ;;  %v7144_v2 = vld [vmem:[#allocation25 + $0xf98] sm:$0xff]  ;;  %v9868_v42 = vpack.c.bf16 %v7122_v5, %v7121_v4 }
0x2217   : > { %9833 = vmatprep.subr.bf16.mxu0 %v9832_v37  ;;  %v7127_v37 = vld [vmem:[#allocation25 + $0xf10] sm:$0xff]  ;;  %v9880_v22 = vpack.c.bf16 %v7144_v2, %v7143_v52  ;;  %v7104_v52 = vld [vmem:[#allocation25 + $0xe58] sm:$0xff] }
0x2218   : > { %v9882_v29 = vpack.c.bf16 %v7128_v25, %v7127_v37  ;;  %v7135_v2 = vld [vmem:[#allocation25 + $0xf50] sm:$0xff]  ;;  %v7153_v37 = vld [vmem:[#allocation25 + $0xfe0] sm:$0xff] }
0x2219   : > { %9803 = vmatpush3.bf16.msra.mxu1 %v9802_v28  ;;  %v7145_v28 = vld [vmem:[#allocation25 + $0xfa0] sm:$0xff] }
0x221a   : > { %9835 = vmatpush3.bf16.msra.mxu0 %v9834_v12  ;;  %9805 = vmatprep.subr.bf16.mxu1 %v9804_v14  ;;  %v7146_v12 = vld [vmem:[#allocation25 + $0xfa8] sm:$0xff]  ;;  %v6899_v14 = vmax.f32 %v6882_v53, 0.0 }
0x221b   : > { %9837 = vmatprep.subr.bf16.mxu0 %v9836_v16  ;;  %v7097_v16 = vld [vmem:[#allocation25 + $0xe20] sm:$0xff]  ;;  %v9884_v23 = vpack.c.bf16 %v7146_v12, %v7145_v28  ;;  %v7138_v12 = vld [vmem:[#allocation25 + $0xf68] sm:$0xff] }
0x221d   : > { %9807 = vmatpush3.bf16.msra.mxu1 %v9806_v30  ;;  %v7116_v30 = vld [vmem:[#allocation25 + $0xeb8] sm:$0xff] }
0x221e   : > { %9839 = vmatpush3.bf16.msra.mxu0 %v9838_v6  ;;  %9809 = vmatprep.subr.bf16.mxu1 %v9808_v31  ;;  %v7148_v6 = vld [vmem:[#allocation25 + $0xfb8] sm:$0xff]  ;;  %v9854_v31 = vpack.c.bf16 %v7098_v17, %v7097_v16  ;;  %v9856_v32 = vpack.c.bf16 %v7116_v30, %v7115_v27  ;;  %v6284_v17 = vrot.slane %v12248_v7, %v11966_v51  ;;  %v6898_v7 = vmax.f32 %v12254_v3, 0.0 }
0x221f   : > { %9841 = vmatprep.subr.bf16.mxu0 %v9840_v36  ;;  %v7131_v36 = vld [vmem:[#allocation25 + $0xf30] sm:$0xff]  ;;  %v9888_v50 = vpack.c.bf16 %v7148_v6, %v7147_v55  ;;  %v7108_v27 = vld [vmem:[#allocation25 + $0xe78] sm:$0xff] }
0x2220   : > { %v7139_v55 = vld [vmem:[#allocation25 + $0xf70] sm:$0xff]  ;;  %v7140_v6 = vld [vmem:[#allocation25 + $0xf78] sm:$0xff] }
0x2221   : > { %9811 = vmatpush3.bf16.msra.mxu1 %v9810_v43  ;;  %v9890_v43 = vpack.c.bf16 %v7132_v39, %v7131_v36  ;;  %v8241_v36 = vld [vmem:[#allocation26 + $0x1] ss:$0 sm:$0xff] }
0x2222   : > { %9843 = vmatpush3.bf16.msra.mxu0 %v9842_v58  ;;  %9845 = vmatprep.subr.bf16.mxu1 %v9844_v44  ;;  %v7101_v58 = vld [vmem:[#allocation25 + $0xe40] sm:$0xff]  ;;  %v7102_v44 = vld [vmem:[#allocation25 + $0xe48] sm:$0xff] }
0x2223   : > { %9877 = vmatprep.subr.bf16.mxu0 %v9876_v47  ;;  %v7119_v47 = vld [vmem:[#allocation25 + $0xed0] sm:$0xff]  ;;  %v9862_v38 = vpack.c.bf16 %v7102_v44, %v7101_v58 }
0x2224   : > { %7510 = vmatmul.mubr.f32.vlgmr.msra.gmra.mrb[72].mxu1 %v6892_v41  ;;  %v9864_v53 = vpack.c.bf16 %v7120_v19, %v7119_v47  ;;  %v9896_v41 = vpack.c.bf16 %v7152_v49, %v7151_v35 }
0x2225   : > { %7580 = vmatmul.mubr.f32.vlgmr.msra.gmra.mrb[68].mxu0 %v6894_v9  ;;  %9847 = vmatpush3.bf16.msra.mxu1 %v9846_v15  ;;  %v7103_v15 = vld [vmem:[#allocation25 + $0xe50] sm:$0xff]  ;;  %v7154_v9 = vld [vmem:[#allocation25 + $0xfe8] sm:$0xff] }
0x2226   : > { %7649 = vmatprep.mubr.f32.mxu1 %v6897_v11  ;;  %9879 = vmatpush3.bf16.msra.mxu0 %v9878_v24  ;;  %v7136_v24 = vld [vmem:[#allocation25 + $0xf58] sm:$0xff]  ;;  %v7106_v11 = vld [vmem:[#allocation25 + $0xe68] sm:$0xff]  ;;  %v9900_v28 = vpack.c.bf16 %v7154_v9, %v7153_v37 }
0x2227   : > { %7719 = vmatprep.mubr.f32.mxu0 %v6899_v14  ;;  %9849 = vmatprep.subr.bf16.mxu1 %v9848_v10  ;;  %v9866_v10 = vpack.c.bf16 %v7104_v52, %v7103_v15  ;;  %v9898_v25 = vpack.c.bf16 %v7136_v24, %v7135_v2  ;;  %v7123_v14 = vld [vmem:[#allocation25 + $0xef0] sm:$0xff]  ;;  %v9870_v16 = vpack.c.bf16 %v7106_v11, %v7105_v54  ;;  %v7741_v11 = vld [vmem:[#allocation31] sm:$0xff] }
0x2228   : > { %9881 = vmatprep.subr.bf16.mxu0 %v9880_v22  ;;  %v7137_v22 = vld [vmem:[#allocation25 + $0xf60] sm:$0xff] }
0x2229   : > { %9851 = vmatpush3.bf16.msra.mxu1 %v9850_v13  ;;  %v7124_v13 = vld [vmem:[#allocation25 + $0xef8] sm:$0xff]  ;;  %v9902_v18 = vpack.c.bf16 %v7138_v12, %v7137_v22  ;;  %v7742_v22 = vld [vmem:[#allocation31 + $0x8] sm:$0xff] }
0x222a   : > { %9883 = vmatpush3.bf16.msra.mxu0 %v9882_v29  ;;  %9853 = vmatprep.subr.bf16.mxu1 %v9852_v21  ;;  %v7155_v29 = vld [vmem:[#allocation25 + $0xff0] sm:$0xff]  ;;  %v7156_v21 = vld [vmem:[#allocation25 + $0xff8] sm:$0xff] }
0x222b   : > { %9885 = vmatprep.subr.bf16.mxu0 %v9884_v23  ;;  %v9872_v23 = vpack.c.bf16 %v7124_v13, %v7123_v14  ;;  %v9904_v30 = vpack.c.bf16 %v7156_v21, %v7155_v29  ;;  %v7743_v12 = vld [vmem:[#allocation31 + $0x10] sm:$0xff]  ;;  %v7744_v14 = vld [vmem:[#allocation31 + $0x18] sm:$0xff] }
0x222d   : > { %9855 = vmatpush3.bf16.msra.mxu1 %v9854_v31  ;;  %v9874_v31 = vpack.c.bf16 %v7108_v27, %v7107_v26  ;;  %v10249_v26 = vld [vmem:[#allocation29 + $0x1] ss:$0 sm:$0xff] }
0x222e   : > { %9887 = vmatpush3.bf16.msra.mxu0 %v9886_v57  ;;  %9857 = vmatprep.subr.bf16.mxu1 %v9856_v32  ;;  %v6809_v57 = vadd.f32 %v12252_v48, %v6284_v17  ;;  %v9906_v32 = vpack.c.bf16 %v7140_v6, %v7139_v55 }
0x222f   : > { %9889 = vmatprep.subr.bf16.mxu0 %v9888_v50 }
0x2230   : > { %v6896_v51 = vmax.f32 %v6809_v57, 0.0 }
0x2231   : > { %9859 = vmatpush3.bf16.msra.mxu1 %v9858_v61 }
0x2232   : > { %9891 = vmatpush3.bf16.msra.mxu0 %v9890_v43  ;;  %9861 = vmatprep.subr.bf16.mxu1 %v9860_v8 }
0x2233   : > { %9893 = vmatprep.subr.bf16.mxu0 %v9892_v45 }
0x2235   : > { %9863 = vmatpush3.bf16.msra.mxu1 %v9862_v38 }
0x2236   : > { %9895 = vmatpush3.bf16.msra.mxu0 %v9894_v20  ;;  %9865 = vmatprep.subr.bf16.mxu1 %v9864_v53 }
0x2237   : > { %9897 = vmatprep.subr.bf16.mxu0 %v9896_v41 }
0x2239   : > { %9867 = vmatpush3.bf16.msra.mxu1 %v9866_v10 }
0x223a   : > { %9899 = vmatpush3.bf16.msra.mxu0 %v9898_v25  ;;  %9869 = vmatprep.subr.bf16.mxu1 %v9868_v42 }
0x223b   : > { %9901 = vmatprep.subr.bf16.mxu0 %v9900_v28  ;;  %v9909_v28 = vpack.c.bf16 %v7742_v22, %v7741_v11 }
0x223d   : > { %9871 = vmatpush3.bf16.msra.mxu1 %v9870_v16 }
0x223e   : > { %9903 = vmatpush3.bf16.msra.mxu0 %v9902_v18  ;;  %9873 = vmatprep.subr.bf16.mxu1 %v9872_v23  ;;  %v10248_v18 = vld [vmem:[#allocation28 + $0x1] ss:$0 sm:$0xff] }
0x223f   : > { %9905 = vmatprep.subr.bf16.mxu0 %v9904_v30 }
0x2241   : > { %9875 = vmatpush3.bf16.msra.mxu1 %v9874_v31 }
0x2242   : > { %9907 = vmatpush3.bf16.msra.mxu0 %v9906_v32  ;;  %9908 = vmatprep.subr.bf16.mxu1 %v10952_v0 }
0x2244   : > { %7650 = vmatmul.mubr.f32.vlgmr.msra.gmra.mrb[74].mxu1 %v6896_v51 }
0x2245   : > { %7720 = vmatmul.mubr.f32.vlgmr.msra.gmra.mrb[70].mxu0 %v6898_v7  ;;  %9205 = vmatprep.mubr.msk.f32.mxu1 %vm10953_vm0, %v10954_v1 }
0x2246   : > { %9910 = vmatpush3.bf16.msra.mxu1 %v9909_v28 }
0x2247   : > { %9911 = vmatprep.subr.bf16.mxu1 %v10952_v0  ;;  %v8242_v0 = vld [vmem:[#allocation32] ss:$0 sm:$0xff] }
0x22b7   : > { %v8674_v33 = vpop.f32.mrb[68].mxu1  ;;  %v8709_v34 = vpop.f32.mrb[64].mxu0 }
0x22b8   : > { %v8675_v48 = vpop.f32.mrb[69].mxu1  ;;  %v8710_v50 = vpop.f32.mrb[65].mxu0 }
0x22b9   : > { %v8676_v39 = vadd.f32 %v8675_v48, %v8674_v33  ;;  %v8711_v40 = vadd.f32 %v8710_v50, %v8709_v34 }
0x22bb   : > { %v7232_v60 = vadd.f32 %v8676_v39, %v8241_v36 }
0x22bd   : > { %v7302_v59 = vadd.f32 %v8711_v40, %v7232_v60 }
0x22d7   : > { %v8744_v56 = vpop.f32.mrb[70].mxu1  ;;  %v8779_v61 = vpop.f32.mrb[66].mxu0 }
0x22d8   : > { %v8745_v43 = vpop.f32.mrb[71].mxu1  ;;  %v8780_v8 = vpop.f32.mrb[67].mxu0 }
0x22d9   : > { %v8746_v58 = vadd.f32 %v8745_v43, %v8744_v56  ;;  %v8781_v3 = vadd.f32 %v8780_v8, %v8779_v61 }
0x22db   : > { %v7372_v44 = vadd.f32 %v8746_v58, %v7302_v59 }
0x22dd   : > { %v7442_v62 = vadd.f32 %v8781_v3, %v7372_v44 }
0x22f7   : > { %v8814_v45 = vpop.f32.mrb[72].mxu1 }
0x22f8   : > { %v8849_v46 = vpop.f32.mrb[68].mxu0  ;;  %v8815_v1 = vpop.f32.mrb[73].mxu1 }
0x22f9   : > { %v8816_v47 = vadd.f32 %v8815_v1, %v8814_v45  ;;  %v8850_v19 = vpop.f32.mrb[69].mxu0 }
0x22fa   : > { %v8851_v35 = vadd.f32 %v8850_v19, %v8849_v46 }
0x22fb   : > { %v7512_v49 = vadd.f32 %v8816_v47, %v7442_v62 }
0x22fd   : > { %v7582_v38 = vadd.f32 %v8851_v35, %v7512_v49 }
0x2317   : > { %v8884_v20 = vpop.f32.mrb[74].mxu1 }
0x2318   : > { %v8919_v53 = vpop.f32.mrb[70].mxu0  ;;  %v8885_v15 = vpop.f32.mrb[75].mxu1 }
0x2319   : > { %v8886_v52 = vadd.f32 %v8885_v15, %v8884_v20  ;;  %v8920_v2 = vpop.f32.mrb[71].mxu0 }
0x231a   : > { %v8921_v41 = vadd.f32 %v8920_v2, %v8919_v53 }
0x231b   : > { %v7652_v24 = vadd.f32 %v8886_v52, %v7582_v38 }
0x231d   : > { %v7722_v4 = vadd.f32 %v8921_v41, %v7652_v24 }
0x231f   : > { %v7725_v5 = vadd.f32 %v7722_v4, %v12198_v63  ;;  %v9912_v63 = vpack.c.bf16 %v7744_v14, %v7743_v12 }
0x2321   : > { %v7726_v37 = vsel %vm956_vm1, %v7725_v5, 0.0  ;;  %9913 = vmatpush3.bf16.msra.mxu1 %v9912_v63 }
0x2322   : > { %7727 = vadd.xlane.f32.xlu0 %v7726_v37 }
0x23af   : > { %v7728_v9 = vpop.xlane.xlu0 %7727 }
0x23b0   : > { %v7729_v10 = vmul.f32 0.03125, %v7728_v9 }
0x23b2   : > { %v7730_v25 = vsub.f32 %v7725_v5, %v7729_v10 }
0x23b4   : > { %v7731_v42 = vmul.f32 %v7730_v25, %v7730_v25 }
0x23b6   : > { %v7732_v54 = vsel %vm956_vm1, %v7731_v42, 0.0 }
0x23b7   : > { %7733 = vadd.xlane.f32.xlu0 %v7732_v54 }
0x2444   : > { %v7734_v13 = vpop.xlane.xlu0 %7733 }
0x2445   : > { %v7735_v29 = vmul.f32 0.03125, %v7734_v13 }
0x2447   : > { %v7736_v21 = vadd.f32 1e-05, %v7735_v29 }
0x2449   : > { %10243 = vrsqrt.f32 %v7736_v21 }
0x2453   : > { %v10244_v16 = vpop.eup %10243 }
0x2454   : > { %v7738_v17 = vmul.f32 %v10244_v16, %v7730_v25 }
0x2456   : > { %v7739_v23 = vmul.f32 %v10248_v18, %v7738_v17 }
0x2458   : > { %v7740_v27 = vadd.f32 %v10249_v26, %v7739_v23 }
0x245a   : > { %9206 = vmatmul.mubr.msk.f32.vlgmr.msra.gmra.mrb[76].mxu1 %vm956_vm1, %v7740_v27 }
0x252d   : > { %v7821_v30 = vpop.f32.mrb[76].mxu1 }
0x252e   : > { %v7822_v55 = vadd.f32 %v8242_v0, %v7821_v30  ;;  %v9207_v6 = vpop.f32.mrb[77].mxu1 }
0x2530   : > { %7826 = vst.msk [vmem:[%s940_s16] sm:$0xff] %vm7825_vm5, %v7822_v55 }
0x2531   : > { %10827 = shalt.err (!%p10824_p6)
}
0x2532   : > { %s10828_s11 = scalar_lea.hbm %s12301_s20, 128  ;;  %s10832_s9 = scalar_lea.hbm %s12483_s7, 256 }
0x2533   : > { %p10829_p4 = scmp.ne.s32.totalorder %s12301_s20, %s10828_s11  ;;  %p10833_p10 = scmp.lt.u32.totalorder %s12301_s20, %s12483_s7 }
0x2534   : > { %p10834_p1 = scmp.lt.u32.totalorder %s10832_s9, %s10828_s11  ;;  %p10836_p12 = scmp.lt.u32.totalorder %s10828_s11, %s12301_s20 }
0x2535   : > { %p10830_p8 = pnand %p10829_p4, %p12484_p13 }
0x2536   : > { %p10835_p11 = por %p10834_p1, %p10833_p10 }
0x2537   : > { %p10831_p5 = pneg %p10830_p8 }
0x2538   : > { %p10837_p7 = por %p10836_p12, %p10835_p11 }
0x253a   : > { %p10838_p9 = pnand %p10837_p7, %p10831_p5 }
0x253c   : > { %10841 = shalt.err (!%p10838_p9)
}
0x253d   : > { %9990 = dma.vmem_to_hbm [thread:$0]  (%p12484_p13), %s12303_s29, 128, %s12301_s20, %s7828_s1  }
0x253e PF: > { %s12485_s21 = sld [smem:[#allocation48_spill]]  ;;  %s12486_s16 = sld [smem:[#allocation51_spill]] }
0x253f   : > { %p12487_p0 = scmp.ne.s32.totalorder %s12453_s0, 0 }
0x2544   : > { %s7853_s6 = sand.u32 1, %s12485_s21   ;;  %p12488_p2 = scmp.ge.s32.totalorder %s12486_s16, 2 }
0x2545   : > { %s7854_s13 = scalar_lea.sflag [#allocation4], %s7853_s6 }
0x2546   : > { %p10055_p3 = pnand %p12488_p2, %p12487_p0 }
0x2548   : > { %10907 = dma.done.wait (!%p10055_p3), %s7854_s13, 128  }
0x2549   : > { %10909 = vsyncadd (!%p10055_p3), %s7854_s13, 4294967168  ;;  %s12489_s1 = sld [smem:[#allocation49_spill]]  ;;  %s12490_s22 = sld [smem:[#allocation50_spill]] }
0x254a   : > { %p45_p6 = scmp.ge.s32.totalorder %s11531_s4, 4   ;;  %s12491_s24 = smov %s11531_s4 }
0x254c   :  { %47 = sbr.rel (!%p45_p6) target bundleno = 35 (0x23), region = 246 }
0x2553   :  { %7859 = vsyncpa [#allocation3], 1 }
0x2554   :  { %7861 = vsyncpa [#allocation3 + $0x1], 1 }
0x2555   :  { %7862 = vsyncpa [#allocation6], 1 }
0x2556   :  { %7864 = vsyncpa [#allocation6 + $0x1], 1 }
0x2557   :  { %7865 = vsyncpa [#allocation9], 1 }
0x2558   :  { %7866 = vsyncpa [#allocation12], 1 }
0x2559   :  { %7867 = vsyncpa [#allocation15], 1 }
0x255a   :  { %7868 = vsyncpa [#allocation18], 1 }
0x255b   :  { %7869 = vsyncpa [#allocation21], 1 }
0x255c   :  { %7870 = vsyncpa [#allocation24], 1 }
0x255d   :  { %7871 = vsyncpa [#allocation27], 1 }
0x255e   :  { %7872 = vsyncpa [#allocation30], 1 }
0x255f   :  { %7873 = vsyncpa [#allocation33], 1 }
0x2560   :  { %7874 = vsyncpa [#allocation4], 1 }
0x2561   :  { %7876 = vsyncpa [#allocation4 + $0x1], 1 }

</bundles_post_ra>
